<compile_context>
chip_gen: v6e
topology: v6e:2x2x1
jax: 0.10.0
libtpu: 0.0.40
codegen_flags: <defaults>
</compile_context>

<pallas_src>
import functools

import numpy as np
import jax
import jax.numpy as jnp
from jax import lax
from jax.experimental import pallas as pl
from jax.experimental.pallas import tpu as pltpu


# ----------------------------------------------------------------------------
# Fused whole-network kernel
# ----------------------------------------------------------------------------
def _alexnet_fused_kernel(xs_ref, t1_ref, b1_ref, t2_ref, b2_ref, t3_ref, b3_ref,
                          w1_ref, fb1_ref, w2_ref, fb2_ref, o_ref,
                          slab2_ref, slab3_ref, feat_ref, *, nb, spatial):
    """One grid step processes a block of `nb` samples end-to-end.

    xs_ref   : (1, nb*(s1+2)+2, s1*Cin)  bf16  H-padded, row-stacked input slabs
    tK_ref   : (3, W*Cin, W*Cout)        bf16  block-Toeplitz weights (W-pad baked,
                                               pooled layers have [even|odd] cols)
    bK_ref   : (1, W*Cout)               f32
    w1/w2    : (1024, 128) / (128, 128)  bf16  fc weights (fc1 rows pre-permuted,
                                               fc2 cols padded to 128)
    o_ref    : (nb, 128)                 f32
    slab2/3  : VMEM f32 scratch: next layer's padded, row-stacked input slabs
    feat_ref : VMEM f32 scratch: (nb, s3*s3*c3) flattened classifier input
    """
    kh = 3
    s1, s2, s3 = spatial, spatial // 2, spatial // 4
    hp1, hp2, hp3 = s1 + 2, s2 + 2, s3 + 2

    def conv_bias_relu(xb, t_ref, b_ref, m):
        nc = t_ref.shape[-1]
        acc = jnp.zeros((m, nc), jnp.float32)
        for i in range(kh):                       # kh bf16 GEMMs on the MXU
            acc = acc + jnp.dot(xb[i:i + m, :], t_ref[i],
                                preferred_element_type=jnp.float32)
        return jnp.maximum(acc + b_ref[...], 0.0)

    def pool2x2(acc):
        # W-pool: even/odd output columns were separated at prep time, so this
        # is a single max of two 128-aligned lane halves (result back in (w,c)
        # order).  H-pool: paired-row max via reshape (per-sample row pitch is
        # even, so pairs never straddle a sample boundary).
        m, nc = acc.shape
        acc = jnp.maximum(acc[:, :nc // 2], acc[:, nc // 2:])
        return jnp.max(acc.reshape(m // 2, 2, nc // 2), axis=1)

    # Zero the slabs so the per-sample SAME-padding rows (never overwritten
    # below) are zero.  Done every step: scratch is per-core persistent and a
    # step-0-only init would be wrong when the grid is sharded across cores.
    slab2_ref[...] = jnp.zeros_like(slab2_ref)
    slab3_ref[...] = jnp.zeros_like(slab3_ref)

    # ---- layer 1: conv3x3 + bias + ReLU + 2x2 max-pool ----------------------
    x1 = xs_ref[0]                                           # bf16 already
    h1 = pool2x2(conv_bias_relu(x1, t1_ref, b1_ref, nb * hp1))   # (nb*hp1//2, s2*c1)
    g1 = hp1 // 2
    for n in range(nb):    # repack valid pooled rows into layer-2's padded slab
        slab2_ref[n * hp2 + 1:n * hp2 + 1 + s2, :] = h1[n * g1:n * g1 + s2, :]

    # ---- layer 2: conv3x3 + bias + ReLU + 2x2 max-pool ----------------------
    x2 = slab2_ref[...].astype(jnp.bfloat16)                 # cast once, then slice
    h2 = pool2x2(conv_bias_relu(x2, t2_ref, b2_ref, nb * hp2))   # (nb*hp2//2, s3*c2)
    g2 = hp2 // 2
    for n in range(nb):
        slab3_ref[n * hp3 + 1:n * hp3 + 1 + s3, :] = h2[n * g2:n * g2 + s3, :]

    # ---- layer 3: conv3x3 + bias + ReLU (no pool) ---------------------------
    x3 = slab3_ref[...].astype(jnp.bfloat16)
    a3 = conv_bias_relu(x3, t3_ref, b3_ref, nb * hp3)        # (nb*hp3, s3*c3)

    # ---- flatten valid rows in (h, w, c) order into the classifier scratch --
    k3 = a3.shape[-1]                                        # = s3 * c3 (lane-aligned)
    for n in range(nb):
        for r in range(s3):
            feat_ref[n:n + 1, r * k3:(r + 1) * k3] = a3[n * hp3 + r:n * hp3 + r + 1, :]

    # ---- classifier: fc1 + bias + ReLU + fc2 + bias (all in VMEM) -----------
    f = feat_ref[...].astype(jnp.bfloat16)
    z1 = jnp.dot(f, w1_ref[...], preferred_element_type=jnp.float32) + fb1_ref[...]
    z1 = jnp.maximum(z1, 0.0).astype(jnp.bfloat16)
    z2 = jnp.dot(z1, w2_ref[...], preferred_element_type=jnp.float32) + fb2_ref[...]
    o_ref[...] = z2.astype(o_ref.dtype)


# ----------------------------------------------------------------------------
# pallas_call wrapper
# ----------------------------------------------------------------------------
def _alexnet_fused_call(xs, prep, *, nb, spatial):
    s1, s2, s3 = spatial, spatial // 2, spatial // 4
    hp2, hp3 = s2 + 2, s3 + 2
    nblocks, ms1, k1 = xs.shape
    c1 = prep["conv1_T"].shape[2] // s1
    c2 = prep["conv2_T"].shape[2] // s2
    c3 = prep["conv3_T"].shape[2] // s3
    ncls_pad = prep["fc2_w"].shape[1]

    kern = functools.partial(_alexnet_fused_kernel, nb=nb, spatial=spatial)

    in_specs = [
        pl.BlockSpec((1, ms1, k1), lambda n: (n, 0, 0)),
        pl.BlockSpec(prep["conv1_T"].shape, lambda n: (0, 0, 0)),
        pl.BlockSpec(prep["conv1_b"].shape, lambda n: (0, 0)),
        pl.BlockSpec(prep["conv2_T"].shape, lambda n: (0, 0, 0)),
        pl.BlockSpec(prep["conv2_b"].shape, lambda n: (0, 0)),
        pl.BlockSpec(prep["conv3_T"].shape, lambda n: (0, 0, 0)),
        pl.BlockSpec(prep["conv3_b"].shape, lambda n: (0, 0)),
        pl.BlockSpec(prep["fc1_w"].shape, lambda n: (0, 0)),
        pl.BlockSpec(prep["fc1_b"].shape, lambda n: (0, 0)),
        pl.BlockSpec(prep["fc2_w"].shape, lambda n: (0, 0)),
        pl.BlockSpec(prep["fc2_b"].shape, lambda n: (0, 0)),
    ]

    return pl.pallas_call(
        kern,
        out_shape=jax.ShapeDtypeStruct((nblocks * nb, ncls_pad), jnp.float32),
        grid_spec=pltpu.PrefetchScalarGridSpec(
            num_scalar_prefetch=0,
            grid=(nblocks,),
            in_specs=in_specs,
            out_specs=pl.BlockSpec((nb, ncls_pad), lambda n: (n, 0)),
            scratch_shapes=[
                pltpu.VMEM((nb * hp2 + 2, s2 * c1), jnp.float32),   # layer-2 slab
                pltpu.VMEM((nb * hp3 + 2, s3 * c2), jnp.float32),   # layer-3 slab
                pltpu.VMEM((nb, s3 * s3 * c3), jnp.float32),        # flat features
            ]),
        compiler_params=pltpu.CompilerParams(
            dimension_semantics=("parallel",)),
    )(xs, prep["conv1_T"], prep["conv1_b"], prep["conv2_T"], prep["conv2_b"],
      prep["conv3_T"], prep["conv3_b"], prep["fc1_w"], prep["fc1_b"],
      prep["fc2_w"], prep["fc2_b"])


# ----------------------------------------------------------------------------
# Cheap XLA glue: build the H-padded, row-stacked, bf16 input slabs once
# ----------------------------------------------------------------------------
def _prep_input(x_nchw, *, nb, spatial, in_channels):
    N = x_nchw.shape[0]
    x = jnp.transpose(x_nchw, (0, 2, 3, 1)).astype(jnp.float32)        # NHWC
    x = x.reshape(N, spatial, spatial * in_channels)                   # (w, c) lanes
    x = jnp.pad(x, ((0, 0), (1, 1), (0, 0)))                           # SAME pad in H
    pad_n = (-N) % nb
    if pad_n:
        x = jnp.pad(x, ((0, pad_n), (0, 0), (0, 0)))
    nblocks = (N + pad_n) // nb
    x = x.reshape(nblocks, nb * (spatial + 2), spatial * in_channels)  # stack samples
    x = jnp.pad(x, ((0, 0), (0, 2), (0, 0)))                           # kh-1 slack rows
    return x.astype(jnp.bfloat16), nblocks


# ----------------------------------------------------------------------------
# Parameters: torch-like init + one-time repack to the device layout
# ----------------------------------------------------------------------------
def init_params(key, in_channels, num_classes, spatial):
    assert spatial % 4 == 0, "two 2x2 pools require spatial divisible by 4"
    ks = jax.random.split(key, 10)

    def conv_w(k, kh, kw, cin, cout):
        fan_in = kh * kw * cin
        return jax.random.normal(k, (kh, kw, cin, cout), jnp.float32) * (
            2.0 / fan_in) ** 0.5

    def lin_w(k, cin, cout):
        return jax.random.normal(k, (cin, cout), jnp.float32) * (2.0 / cin) ** 0.5

    c1, c2, c3 = 32, 64, 64
    feat_hw = spatial // 4
    flat = c3 * feat_hw * feat_hw
    hidden = 128
    return {
        "conv1_w": conv_w(ks[0], 3, 3, in_channels, c1),
        "conv1_b": 0.1 * jax.random.normal(ks[1], (c1,), jnp.float32),
        "conv2_w": conv_w(ks[2], 3, 3, c1, c2),
        "conv2_b": 0.1 * jax.random.normal(ks[3], (c2,), jnp.float32),
        "conv3_w": conv_w(ks[4], 3, 3, c2, c3),
        "conv3_b": 0.1 * jax.random.normal(ks[5], (c3,), jnp.float32),
        "fc1_w": lin_w(ks[6], flat, hidden),
        "fc1_b": 0.1 * jax.random.normal(ks[7], (hidden,), jnp.float32),
        "fc2_w": lin_w(ks[8], hidden, num_classes),
        "fc2_b": 0.1 * jax.random.normal(ks[9], (num_classes,), jnp.float32),
    }


def _toeplitz_conv_weight(w_hwio, width, *, pool):
    """Block-Toeplitz weights with SAME W-padding baked in.

    T[i, wi*Cin+ci, col(wo)*Cout+co] = w[i, wi-wo+1, ci, co] for 0 <= wi-wo+1 < kw,
    so (row-slab @ T[i]) performs the kw x Cin contraction of kernel row i.
    For pooled layers the output column blocks are reordered to
    [all even wo | all odd wo] so the W-pool is one aligned lane-half max.
    """
    kh, kw, cin, cout = w_hwio.shape
    pad = (kw - 1) // 2
    w_np = np.asarray(w_hwio, dtype=np.float32)
    if pool:
        wo_order = list(range(0, width, 2)) + list(range(1, width, 2))
    else:
        wo_order = list(range(width))
    t = np.zeros((kh, width * cin, width * cout), np.float32)
    for i in range(kh):
        for col, wo in enumerate(wo_order):
            for j in range(kw):
                wi = wo + j - pad
                if 0 <= wi < width:
                    t[i, wi * cin:(wi + 1) * cin, col * cout:(col + 1) * cout] = w_np[i, j]
    return jnp.asarray(t, dtype=jnp.bfloat16)


def _bias_row(b, width):
    return jnp.asarray(np.tile(np.asarray(b, np.float32), width)[None, :])


def prep_params(params, spatial):
    s1, s2, s3 = spatial, spatial // 2, spatial // 4
    c3 = params["conv3_w"].shape[-1]
    prep = {
        "conv1_T": _toeplitz_conv_weight(params["conv1_w"], s1, pool=True),
        "conv1_b": _bias_row(params["conv1_b"], s1),
        "conv2_T": _toeplitz_conv_weight(params["conv2_w"], s2, pool=True),
        "conv2_b": _bias_row(params["conv2_b"], s2),
        "conv3_T": _toeplitz_conv_weight(params["conv3_w"], s3, pool=False),
        "conv3_b": _bias_row(params["conv3_b"], s3),
    }
    # Fold torch's NCHW flatten order (c, h, w) into fc1 rows; device order is (h, w, c).
    perm = np.array([c * (s3 * s3) + h * s3 + w
                     for h in range(s3) for w in range(s3) for c in range(c3)])
    prep["fc1_w"] = jnp.asarray(np.asarray(params["fc1_w"], np.float32)[perm],
                                dtype=jnp.bfloat16)
    prep["fc1_b"] = jnp.asarray(np.asarray(params["fc1_b"], np.float32)[None, :])
    # Pad fc2's output lane dim to a multiple of 128 -> unmasked final store.
    ncls = params["fc2_w"].shape[1]
    ncls_pad = max(128, ((ncls + 127) // 128) * 128)
    w2 = np.zeros((params["fc2_w"].shape[0], ncls_pad), np.float32)
    w2[:, :ncls] = np.asarray(params["fc2_w"], np.float32)
    b2 = np.zeros((1, ncls_pad), np.float32)
    b2[0, :ncls] = np.asarray(params["fc2_b"], np.float32)
    prep["fc2_w"] = jnp.asarray(w2, jnp.bfloat16)
    prep["fc2_b"] = jnp.asarray(b2, jnp.float32)
    return prep


# ----------------------------------------------------------------------------
# Forward pass (fused Pallas) and pure-JAX reference
# ----------------------------------------------------------------------------
def alexnet_forward(prep, x_nchw, *, spatial, in_channels, num_classes, nb=None):
    assert spatial % 4 == 0, "two 2x2 pools require spatial divisible by 4"
    N = x_nchw.shape[0]
    if nb is None:
        nb = min(N, 8)          # samples per grid step (GEMM M batching)
    xs, _ = _prep_input(x_nchw, nb=nb, spatial=spatial, in_channels=in_channels)
    out = _alexnet_fused_call(xs, prep, nb=nb, spatial=spatial)
    return out[:N, :num_classes]


def alexnet_reference(params, x_nchw):
    x = jnp.transpose(x_nchw, (0, 2, 3, 1)).astype(jnp.float32)

    def conv(h, w, b):
        y = lax.conv_general_dilated(h, w, (1, 1), "SAME",
                                     dimension_numbers=("NHWC", "HWIO", "NHWC"))
        return jnp.maximum(y + b, 0.0)

    def pool(h):
        n, hh, ww, c = h.shape
        return h.reshape(n, hh // 2, 2, ww // 2, 2, c).max(axis=(2, 4))

    h = pool(conv(x, params["conv1_w"], params["conv1_b"]))
    h = pool(conv(h, params["conv2_w"], params["conv2_b"]))
    h = conv(h, params["conv3_w"], params["conv3_b"])
    n = h.shape[0]
    hf = jnp.transpose(h, (0, 3, 1, 2)).reshape(n, -1)            # torch flatten
    z = jnp.maximum(hf @ params["fc1_w"] + params["fc1_b"], 0.0)
    return z @ params["fc2_w"] + params["fc2_b"]


if __name__ == "__main__":
    batch, in_channels, spatial, num_classes = 2, 4, 16, 10

    key = jax.random.PRNGKey(0)
    k_x, k_p = jax.random.split(key)
    x = jax.random.normal(k_x, (batch, in_channels, spatial, spatial), jnp.float32)
    params = init_params(k_p, in_channels, num_classes, spatial)
    prep = prep_params(params, spatial)

    fwd = jax.jit(functools.partial(alexnet_forward, spatial=spatial,
                                    in_channels=in_channels,
                                    num_classes=num_classes))
    logits = fwd(prep, x)
    jax.block_until_ready(logits)
    assert logits.shape == (batch, num_classes)

    ref = alexnet_reference(params, x)
    err = float(jnp.max(jnp.abs(logits - ref)) / (jnp.max(jnp.abs(ref)) + 1e-6))
    assert err < 3e-2, f"mismatch vs reference: rel-max-err={err}"

    print("KERNEL_OK")
</pallas_src>

<mosaic_0001>
module attributes {stable_mosaic.version = 11 : i64} {
  func.func @_alexnet_fused_kernel(%arg0: i32, %arg1: memref<1x38x64xbf16, #tpu.memory_space<vmem>>, %arg2: memref<3x64x512xbf16, #tpu.memory_space<vmem>>, %arg3: memref<1x512xf32, #tpu.memory_space<vmem>>, %arg4: memref<3x256x512xbf16, #tpu.memory_space<vmem>>, %arg5: memref<1x512xf32, #tpu.memory_space<vmem>>, %arg6: memref<3x256x256xbf16, #tpu.memory_space<vmem>>, %arg7: memref<1x256xf32, #tpu.memory_space<vmem>>, %arg8: memref<1024x128xbf16, #tpu.memory_space<vmem>>, %arg9: memref<1x128xf32, #tpu.memory_space<vmem>>, %arg10: memref<128x128xbf16, #tpu.memory_space<vmem>>, %arg11: memref<1x128xf32, #tpu.memory_space<vmem>>, %arg12: memref<2x128xf32, #tpu.memory_space<vmem>>, %arg13: memref<22x256xf32, #tpu.memory_space<vmem>>, %arg14: memref<14x256xf32, #tpu.memory_space<vmem>>, %arg15: memref<2x1024xf32, #tpu.memory_space<vmem>>) attributes {dimension_semantics = [#tpu.dimension_semantics<parallel>], iteration_bounds = array<i64: 1>, scalar_prefetch = 0 : i64, scratch_operands = 3 : i64, tpu.core_type = #tpu.core_type<tc>, window_params = [{transform_indices = @transform_0, window_bounds = array<i64: 1, 38, 64>}, {pipeline_mode = #tpu.pipeline_mode<synchronous>, transform_indices = @transform_1, window_bounds = array<i64: 3, 64, 512>}, {pipeline_mode = #tpu.pipeline_mode<synchronous>, transform_indices = @transform_2, window_bounds = array<i64: 1, 512>}, {pipeline_mode = #tpu.pipeline_mode<synchronous>, transform_indices = @transform_3, window_bounds = array<i64: 3, 256, 512>}, {pipeline_mode = #tpu.pipeline_mode<synchronous>, transform_indices = @transform_4, window_bounds = array<i64: 1, 512>}, {pipeline_mode = #tpu.pipeline_mode<synchronous>, transform_indices = @transform_5, window_bounds = array<i64: 3, 256, 256>}, {pipeline_mode = #tpu.pipeline_mode<synchronous>, transform_indices = @transform_6, window_bounds = array<i64: 1, 256>}, {pipeline_mode = #tpu.pipeline_mode<synchronous>, transform_indices = @transform_7, window_bounds = array<i64: 1024, 128>}, {pipeline_mode = #tpu.pipeline_mode<synchronous>, transform_indices = @transform_8, window_bounds = array<i64: 1, 128>}, {pipeline_mode = #tpu.pipeline_mode<synchronous>, transform_indices = @transform_9, window_bounds = array<i64: 128, 128>}, {pipeline_mode = #tpu.pipeline_mode<synchronous>, transform_indices = @transform_10, window_bounds = array<i64: 1, 128>}, {transform_indices = @transform_11, window_bounds = array<i64: 2, 128>}]} {
    %cst = arith.constant 0.000000e+00 : f32
    %0 = vector.broadcast %cst : f32 to vector<22x256xf32>
    %c0 = arith.constant 0 : index
    %c0_0 = arith.constant 0 : index
    %1 = vector.load %arg13[%c0, %c0_0] : memref<22x256xf32, #tpu.memory_space<vmem>>, vector<22x256xf32>
    tpu.vector_store %arg13[%c0, %c0_0], %0 {strides = array<i32>} : memref<22x256xf32, #tpu.memory_space<vmem>>, vector<22x256xf32>,
    %cst_1 = arith.constant 0.000000e+00 : f32
    %2 = vector.broadcast %cst_1 : f32 to vector<14x256xf32>
    %c0_2 = arith.constant 0 : index
    %c0_3 = arith.constant 0 : index
    %3 = vector.load %arg14[%c0_2, %c0_3] : memref<14x256xf32, #tpu.memory_space<vmem>>, vector<14x256xf32>
    tpu.vector_store %arg14[%c0_2, %c0_3], %2 {strides = array<i32>} : memref<14x256xf32, #tpu.memory_space<vmem>>, vector<14x256xf32>,
    %c0_4 = arith.constant 0 : index
    %c0_5 = arith.constant 0 : index
    %c0_6 = arith.constant 0 : index
    %4 = vector.load %arg1[%c0_4, %c0_5, %c0_6] : memref<1x38x64xbf16, #tpu.memory_space<vmem>>, vector<1x38x64xbf16>
    %5 = vector.shape_cast %4 : vector<1x38x64xbf16> to vector<38x64xbf16>
    %cst_7 = arith.constant 0.000000e+00 : f32
    %6 = vector.broadcast %cst_7 : f32 to vector<36x512xf32>
    %7 = vector.extract_strided_slice %5 {offsets = [0, 0], sizes = [36, 64], strides = [1, 1]} : vector<38x64xbf16> to vector<36x64xbf16>
    %c0_8 = arith.constant 0 : index
    %c0_9 = arith.constant 0 : index
    %c0_10 = arith.constant 0 : index
    %8 = vector.load %arg2[%c0_8, %c0_9, %c0_10] : memref<3x64x512xbf16, #tpu.memory_space<vmem>>, vector<1x64x512xbf16>
    %9 = vector.shape_cast %8 : vector<1x64x512xbf16> to vector<64x512xbf16>
    %cst_11 = arith.constant dense<0.000000e+00> : vector<36x512xf32>
    %10 = tpu.matmul %7, %9, %cst_11 {dimension_numbers = #tpu.dot_dimension_numbers<[1], [0], [0], [1], [0, 0, 1, 1], [], []>} : vector<36x64xbf16>, vector<64x512xbf16>, vector<36x512xf32> -> vector<36x512xf32>
    %11 = arith.addf %6, %10 : vector<36x512xf32>
    %12 = vector.extract_strided_slice %5 {offsets = [1, 0], sizes = [36, 64], strides = [1, 1]} : vector<38x64xbf16> to vector<36x64xbf16>
    %c1 = arith.constant 1 : index
    %c0_12 = arith.constant 0 : index
    %c0_13 = arith.constant 0 : index
    %13 = vector.load %arg2[%c1, %c0_12, %c0_13] : memref<3x64x512xbf16, #tpu.memory_space<vmem>>, vector<1x64x512xbf16>
    %14 = vector.shape_cast %13 : vector<1x64x512xbf16> to vector<64x512xbf16>
    %cst_14 = arith.constant dense<0.000000e+00> : vector<36x512xf32>
    %15 = tpu.matmul %12, %14, %cst_14 {dimension_numbers = #tpu.dot_dimension_numbers<[1], [0], [0], [1], [0, 0, 1, 1], [], []>} : vector<36x64xbf16>, vector<64x512xbf16>, vector<36x512xf32> -> vector<36x512xf32>
    %16 = arith.addf %11, %15 : vector<36x512xf32>
    %17 = vector.extract_strided_slice %5 {offsets = [2, 0], sizes = [36, 64], strides = [1, 1]} : vector<38x64xbf16> to vector<36x64xbf16>
    %c2 = arith.constant 2 : index
    %c0_15 = arith.constant 0 : index
    %c0_16 = arith.constant 0 : index
    %18 = vector.load %arg2[%c2, %c0_15, %c0_16] : memref<3x64x512xbf16, #tpu.memory_space<vmem>>, vector<1x64x512xbf16>
    %19 = vector.shape_cast %18 : vector<1x64x512xbf16> to vector<64x512xbf16>
    %cst_17 = arith.constant dense<0.000000e+00> : vector<36x512xf32>
    %20 = tpu.matmul %17, %19, %cst_17 {dimension_numbers = #tpu.dot_dimension_numbers<[1], [0], [0], [1], [0, 0, 1, 1], [], []>} : vector<36x64xbf16>, vector<64x512xbf16>, vector<36x512xf32> -> vector<36x512xf32>
    %21 = arith.addf %16, %20 : vector<36x512xf32>
    %c0_18 = arith.constant 0 : index
    %c0_19 = arith.constant 0 : index
    %22 = vector.load %arg3[%c0_18, %c0_19] : memref<1x512xf32, #tpu.memory_space<vmem>>, vector<1x512xf32>
    %23 = vector.broadcast %22 : vector<1x512xf32> to vector<36x512xf32>
    %24 = arith.addf %21, %23 : vector<36x512xf32>
    %cst_20 = arith.constant 0.000000e+00 : f32
    %25 = vector.broadcast %cst_20 : f32 to vector<36x512xf32>
    %26 = arith.maximumf %24, %25 : vector<36x512xf32>
    %27 = vector.extract_strided_slice %26 {offsets = [0, 0], sizes = [36, 256], strides = [1, 1]} : vector<36x512xf32> to vector<36x256xf32>
    %28 = vector.extract_strided_slice %26 {offsets = [0, 256], sizes = [36, 256], strides = [1, 1]} : vector<36x512xf32> to vector<36x256xf32>
    %29 = arith.maximumf %27, %28 : vector<36x256xf32>
    %30 = vector.shape_cast %29 : vector<36x256xf32> to vector<18x2x256xf32>
    %cst_21 = arith.constant dense<0xFF800000> : vector<18x256xf32>
    %31 = vector.multi_reduction <maximumf>, %30, %cst_21 [1] : vector<18x2x256xf32> to vector<18x256xf32>
    %32 = vector.extract_strided_slice %31 {offsets = [0, 0], sizes = [8, 256], strides = [1, 1]} : vector<18x256xf32> to vector<8x256xf32>
    %c1_22 = arith.constant 1 : index
    %c0_23 = arith.constant 0 : index
    %33 = vector.load %arg13[%c1_22, %c0_23] : memref<22x256xf32, #tpu.memory_space<vmem>>, vector<8x256xf32>
    tpu.vector_store %arg13[%c1_22, %c0_23], %32 {strides = array<i32>} : memref<22x256xf32, #tpu.memory_space<vmem>>, vector<8x256xf32>,
    %34 = vector.extract_strided_slice %31 {offsets = [9, 0], sizes = [8, 256], strides = [1, 1]} : vector<18x256xf32> to vector<8x256xf32>
    %c11 = arith.constant 11 : index
    %c0_24 = arith.constant 0 : index
    %35 = vector.load %arg13[%c11, %c0_24] : memref<22x256xf32, #tpu.memory_space<vmem>>, vector<8x256xf32>
    tpu.vector_store %arg13[%c11, %c0_24], %34 {strides = array<i32>} : memref<22x256xf32, #tpu.memory_space<vmem>>, vector<8x256xf32>,
    %c0_25 = arith.constant 0 : index
    %c0_26 = arith.constant 0 : index
    %36 = vector.load %arg13[%c0_25, %c0_26] : memref<22x256xf32, #tpu.memory_space<vmem>>, vector<22x256xf32>
    %37 = arith.truncf %36 : vector<22x256xf32> to vector<22x256xbf16>
    %cst_27 = arith.constant 0.000000e+00 : f32
    %38 = vector.broadcast %cst_27 : f32 to vector<20x512xf32>
    %39 = vector.extract_strided_slice %37 {offsets = [0, 0], sizes = [20, 256], strides = [1, 1]} : vector<22x256xbf16> to vector<20x256xbf16>
    %c0_28 = arith.constant 0 : index
    %c0_29 = arith.constant 0 : index
    %c0_30 = arith.constant 0 : index
    %40 = vector.load %arg4[%c0_28, %c0_29, %c0_30] : memref<3x256x512xbf16, #tpu.memory_space<vmem>>, vector<1x256x512xbf16>
    %41 = vector.shape_cast %40 : vector<1x256x512xbf16> to vector<256x512xbf16>
    %cst_31 = arith.constant dense<0.000000e+00> : vector<20x512xf32>
    %42 = tpu.matmul %39, %41, %cst_31 {dimension_numbers = #tpu.dot_dimension_numbers<[1], [0], [0], [1], [0, 0, 1, 1], [], []>} : vector<20x256xbf16>, vector<256x512xbf16>, vector<20x512xf32> -> vector<20x512xf32>
    %43 = arith.addf %38, %42 : vector<20x512xf32>
    %44 = vector.extract_strided_slice %37 {offsets = [1, 0], sizes = [20, 256], strides = [1, 1]} : vector<22x256xbf16> to vector<20x256xbf16>
    %c1_32 = arith.constant 1 : index
    %c0_33 = arith.constant 0 : index
    %c0_34 = arith.constant 0 : index
    %45 = vector.load %arg4[%c1_32, %c0_33, %c0_34] : memref<3x256x512xbf16, #tpu.memory_space<vmem>>, vector<1x256x512xbf16>
    %46 = vector.shape_cast %45 : vector<1x256x512xbf16> to vector<256x512xbf16>
    %cst_35 = arith.constant dense<0.000000e+00> : vector<20x512xf32>
    %47 = tpu.matmul %44, %46, %cst_35 {dimension_numbers = #tpu.dot_dimension_numbers<[1], [0], [0], [1], [0, 0, 1, 1], [], []>} : vector<20x256xbf16>, vector<256x512xbf16>, vector<20x512xf32> -> vector<20x512xf32>
    %48 = arith.addf %43, %47 : vector<20x512xf32>
    %49 = vector.extract_strided_slice %37 {offsets = [2, 0], sizes = [20, 256], strides = [1, 1]} : vector<22x256xbf16> to vector<20x256xbf16>
    %c2_36 = arith.constant 2 : index
    %c0_37 = arith.constant 0 : index
    %c0_38 = arith.constant 0 : index
    %50 = vector.load %arg4[%c2_36, %c0_37, %c0_38] : memref<3x256x512xbf16, #tpu.memory_space<vmem>>, vector<1x256x512xbf16>
    %51 = vector.shape_cast %50 : vector<1x256x512xbf16> to vector<256x512xbf16>
    %cst_39 = arith.constant dense<0.000000e+00> : vector<20x512xf32>
    %52 = tpu.matmul %49, %51, %cst_39 {dimension_numbers = #tpu.dot_dimension_numbers<[1], [0], [0], [1], [0, 0, 1, 1], [], []>} : vector<20x256xbf16>, vector<256x512xbf16>, vector<20x512xf32> -> vector<20x512xf32>
    %53 = arith.addf %48, %52 : vector<20x512xf32>
    %c0_40 = arith.constant 0 : index
    %c0_41 = arith.constant 0 : index
    %54 = vector.load %arg5[%c0_40, %c0_41] : memref<1x512xf32, #tpu.memory_space<vmem>>, vector<1x512xf32>
    %55 = vector.broadcast %54 : vector<1x512xf32> to vector<20x512xf32>
    %56 = arith.addf %53, %55 : vector<20x512xf32>
    %cst_42 = arith.constant 0.000000e+00 : f32
    %57 = vector.broadcast %cst_42 : f32 to vector<20x512xf32>
    %58 = arith.maximumf %56, %57 : vector<20x512xf32>
    %59 = vector.extract_strided_slice %58 {offsets = [0, 0], sizes = [20, 256], strides = [1, 1]} : vector<20x512xf32> to vector<20x256xf32>
    %60 = vector.extract_strided_slice %58 {offsets = [0, 256], sizes = [20, 256], strides = [1, 1]} : vector<20x512xf32> to vector<20x256xf32>
    %61 = arith.maximumf %59, %60 : vector<20x256xf32>
    %62 = vector.shape_cast %61 : vector<20x256xf32> to vector<10x2x256xf32>
    %cst_43 = arith.constant dense<0xFF800000> : vector<10x256xf32>
    %63 = vector.multi_reduction <maximumf>, %62, %cst_43 [1] : vector<10x2x256xf32> to vector<10x256xf32>
    %64 = vector.extract_strided_slice %63 {offsets = [0, 0], sizes = [4, 256], strides = [1, 1]} : vector<10x256xf32> to vector<4x256xf32>
    %c1_44 = arith.constant 1 : index
    %c0_45 = arith.constant 0 : index
    %65 = vector.load %arg14[%c1_44, %c0_45] : memref<14x256xf32, #tpu.memory_space<vmem>>, vector<4x256xf32>
    tpu.vector_store %arg14[%c1_44, %c0_45], %64 {strides = array<i32>} : memref<14x256xf32, #tpu.memory_space<vmem>>, vector<4x256xf32>,
    %66 = vector.extract_strided_slice %63 {offsets = [5, 0], sizes = [4, 256], strides = [1, 1]} : vector<10x256xf32> to vector<4x256xf32>
    %c7 = arith.constant 7 : index
    %c0_46 = arith.constant 0 : index
    %67 = vector.load %arg14[%c7, %c0_46] : memref<14x256xf32, #tpu.memory_space<vmem>>, vector<4x256xf32>
    tpu.vector_store %arg14[%c7, %c0_46], %66 {strides = array<i32>} : memref<14x256xf32, #tpu.memory_space<vmem>>, vector<4x256xf32>,
    %c0_47 = arith.constant 0 : index
    %c0_48 = arith.constant 0 : index
    %68 = vector.load %arg14[%c0_47, %c0_48] : memref<14x256xf32, #tpu.memory_space<vmem>>, vector<14x256xf32>
    %69 = arith.truncf %68 : vector<14x256xf32> to vector<14x256xbf16>
    %cst_49 = arith.constant 0.000000e+00 : f32
    %70 = vector.broadcast %cst_49 : f32 to vector<12x256xf32>
    %71 = vector.extract_strided_slice %69 {offsets = [0, 0], sizes = [12, 256], strides = [1, 1]} : vector<14x256xbf16> to vector<12x256xbf16>
    %c0_50 = arith.constant 0 : index
    %c0_51 = arith.constant 0 : index
    %c0_52 = arith.constant 0 : index
    %72 = vector.load %arg6[%c0_50, %c0_51, %c0_52] : memref<3x256x256xbf16, #tpu.memory_space<vmem>>, vector<1x256x256xbf16>
    %73 = vector.shape_cast %72 : vector<1x256x256xbf16> to vector<256x256xbf16>
    %cst_53 = arith.constant dense<0.000000e+00> : vector<12x256xf32>
    %74 = tpu.matmul %71, %73, %cst_53 {dimension_numbers = #tpu.dot_dimension_numbers<[1], [0], [0], [1], [0, 0, 1, 1], [], []>} : vector<12x256xbf16>, vector<256x256xbf16>, vector<12x256xf32> -> vector<12x256xf32>
    %75 = arith.addf %70, %74 : vector<12x256xf32>
    %76 = vector.extract_strided_slice %69 {offsets = [1, 0], sizes = [12, 256], strides = [1, 1]} : vector<14x256xbf16> to vector<12x256xbf16>
    %c1_54 = arith.constant 1 : index
    %c0_55 = arith.constant 0 : index
    %c0_56 = arith.constant 0 : index
    %77 = vector.load %arg6[%c1_54, %c0_55, %c0_56] : memref<3x256x256xbf16, #tpu.memory_space<vmem>>, vector<1x256x256xbf16>
    %78 = vector.shape_cast %77 : vector<1x256x256xbf16> to vector<256x256xbf16>
    %cst_57 = arith.constant dense<0.000000e+00> : vector<12x256xf32>
    %79 = tpu.matmul %76, %78, %cst_57 {dimension_numbers = #tpu.dot_dimension_numbers<[1], [0], [0], [1], [0, 0, 1, 1], [], []>} : vector<12x256xbf16>, vector<256x256xbf16>, vector<12x256xf32> -> vector<12x256xf32>
    %80 = arith.addf %75, %79 : vector<12x256xf32>
    %81 = vector.extract_strided_slice %69 {offsets = [2, 0], sizes = [12, 256], strides = [1, 1]} : vector<14x256xbf16> to vector<12x256xbf16>
    %c2_58 = arith.constant 2 : index
    %c0_59 = arith.constant 0 : index
    %c0_60 = arith.constant 0 : index
    %82 = vector.load %arg6[%c2_58, %c0_59, %c0_60] : memref<3x256x256xbf16, #tpu.memory_space<vmem>>, vector<1x256x256xbf16>
    %83 = vector.shape_cast %82 : vector<1x256x256xbf16> to vector<256x256xbf16>
    %cst_61 = arith.constant dense<0.000000e+00> : vector<12x256xf32>
    %84 = tpu.matmul %81, %83, %cst_61 {dimension_numbers = #tpu.dot_dimension_numbers<[1], [0], [0], [1], [0, 0, 1, 1], [], []>} : vector<12x256xbf16>, vector<256x256xbf16>, vector<12x256xf32> -> vector<12x256xf32>
    %85 = arith.addf %80, %84 : vector<12x256xf32>
    %c0_62 = arith.constant 0 : index
    %c0_63 = arith.constant 0 : index
    %86 = vector.load %arg7[%c0_62, %c0_63] : memref<1x256xf32, #tpu.memory_space<vmem>>, vector<1x256xf32>
    %87 = vector.broadcast %86 : vector<1x256xf32> to vector<12x256xf32>
    %88 = arith.addf %85, %87 : vector<12x256xf32>
    %cst_64 = arith.constant 0.000000e+00 : f32
    %89 = vector.broadcast %cst_64 : f32 to vector<12x256xf32>
    %90 = arith.maximumf %88, %89 : vector<12x256xf32>
    %91 = vector.extract_strided_slice %90 {offsets = [0, 0], sizes = [1, 256], strides = [1, 1]} : vector<12x256xf32> to vector<1x256xf32>
    %c0_65 = arith.constant 0 : index
    %c0_66 = arith.constant 0 : index
    %92 = vector.load %arg15[%c0_65, %c0_66] : memref<2x1024xf32, #tpu.memory_space<vmem>>, vector<1x256xf32>
    tpu.vector_store %arg15[%c0_65, %c0_66], %91 {strides = array<i32>} : memref<2x1024xf32, #tpu.memory_space<vmem>>, vector<1x256xf32>,
    %93 = vector.extract_strided_slice %90 {offsets = [1, 0], sizes = [1, 256], strides = [1, 1]} : vector<12x256xf32> to vector<1x256xf32>
    %c0_67 = arith.constant 0 : index
    %c256 = arith.constant 256 : index
    %94 = vector.load %arg15[%c0_67, %c256] : memref<2x1024xf32, #tpu.memory_space<vmem>>, vector<1x256xf32>
    tpu.vector_store %arg15[%c0_67, %c256], %93 {strides = array<i32>} : memref<2x1024xf32, #tpu.memory_space<vmem>>, vector<1x256xf32>,
    %95 = vector.extract_strided_slice %90 {offsets = [2, 0], sizes = [1, 256], strides = [1, 1]} : vector<12x256xf32> to vector<1x256xf32>
    %c0_68 = arith.constant 0 : index
    %c512 = arith.constant 512 : index
    %96 = vector.load %arg15[%c0_68, %c512] : memref<2x1024xf32, #tpu.memory_space<vmem>>, vector<1x256xf32>
    tpu.vector_store %arg15[%c0_68, %c512], %95 {strides = array<i32>} : memref<2x1024xf32, #tpu.memory_space<vmem>>, vector<1x256xf32>,
    %97 = vector.extract_strided_slice %90 {offsets = [3, 0], sizes = [1, 256], strides = [1, 1]} : vector<12x256xf32> to vector<1x256xf32>
    %c0_69 = arith.constant 0 : index
    %c768 = arith.constant 768 : index
    %98 = vector.load %arg15[%c0_69, %c768] : memref<2x1024xf32, #tpu.memory_space<vmem>>, vector<1x256xf32>
    tpu.vector_store %arg15[%c0_69, %c768], %97 {strides = array<i32>} : memref<2x1024xf32, #tpu.memory_space<vmem>>, vector<1x256xf32>,
    %99 = vector.extract_strided_slice %90 {offsets = [6, 0], sizes = [1, 256], strides = [1, 1]} : vector<12x256xf32> to vector<1x256xf32>
    %c1_70 = arith.constant 1 : index
    %c0_71 = arith.constant 0 : index
    %100 = vector.load %arg15[%c1_70, %c0_71] : memref<2x1024xf32, #tpu.memory_space<vmem>>, vector<1x256xf32>
    tpu.vector_store %arg15[%c1_70, %c0_71], %99 {strides = array<i32>} : memref<2x1024xf32, #tpu.memory_space<vmem>>, vector<1x256xf32>,
    %101 = vector.extract_strided_slice %90 {offsets = [7, 0], sizes = [1, 256], strides = [1, 1]} : vector<12x256xf32> to vector<1x256xf32>
    %c1_72 = arith.constant 1 : index
    %c256_73 = arith.constant 256 : index
    %102 = vector.load %arg15[%c1_72, %c256_73] : memref<2x1024xf32, #tpu.memory_space<vmem>>, vector<1x256xf32>
    tpu.vector_store %arg15[%c1_72, %c256_73], %101 {strides = array<i32>} : memref<2x1024xf32, #tpu.memory_space<vmem>>, vector<1x256xf32>,
    %103 = vector.extract_strided_slice %90 {offsets = [8, 0], sizes = [1, 256], strides = [1, 1]} : vector<12x256xf32> to vector<1x256xf32>
    %c1_74 = arith.constant 1 : index
    %c512_75 = arith.constant 512 : index
    %104 = vector.load %arg15[%c1_74, %c512_75] : memref<2x1024xf32, #tpu.memory_space<vmem>>, vector<1x256xf32>
    tpu.vector_store %arg15[%c1_74, %c512_75], %103 {strides = array<i32>} : memref<2x1024xf32, #tpu.memory_space<vmem>>, vector<1x256xf32>,
    %105 = vector.extract_strided_slice %90 {offsets = [9, 0], sizes = [1, 256], strides = [1, 1]} : vector<12x256xf32> to vector<1x256xf32>
    %c1_76 = arith.constant 1 : index
    %c768_77 = arith.constant 768 : index
    %106 = vector.load %arg15[%c1_76, %c768_77] : memref<2x1024xf32, #tpu.memory_space<vmem>>, vector<1x256xf32>
    tpu.vector_store %arg15[%c1_76, %c768_77], %105 {strides = array<i32>} : memref<2x1024xf32, #tpu.memory_space<vmem>>, vector<1x256xf32>,
    %c0_78 = arith.constant 0 : index
    %c0_79 = arith.constant 0 : index
    %107 = vector.load %arg15[%c0_78, %c0_79] : memref<2x1024xf32, #tpu.memory_space<vmem>>, vector<2x1024xf32>
    %108 = arith.truncf %107 : vector<2x1024xf32> to vector<2x1024xbf16>
    %c0_80 = arith.constant 0 : index
    %c0_81 = arith.constant 0 : index
    %109 = vector.load %arg8[%c0_80, %c0_81] : memref<1024x128xbf16, #tpu.memory_space<vmem>>, vector<1024x128xbf16>
    %cst_82 = arith.constant dense<0.000000e+00> : vector<2x128xf32>
    %110 = tpu.matmul %108, %109, %cst_82 {dimension_numbers = #tpu.dot_dimension_numbers<[1], [0], [0], [1], [0, 0, 1, 1], [], []>} : vector<2x1024xbf16>, vector<1024x128xbf16>, vector<2x128xf32> -> vector<2x128xf32>
    %c0_83 = arith.constant 0 : index
    %c0_84 = arith.constant 0 : index
    %111 = vector.load %arg9[%c0_83, %c0_84] : memref<1x128xf32, #tpu.memory_space<vmem>>, vector<1x128xf32>
    %112 = vector.broadcast %111 : vector<1x128xf32> to vector<2x128xf32>
    %113 = arith.addf %110, %112 : vector<2x128xf32>
    %cst_85 = arith.constant 0.000000e+00 : f32
    %114 = vector.broadcast %cst_85 : f32 to vector<2x128xf32>
    %115 = arith.maximumf %113, %114 : vector<2x128xf32>
    %116 = arith.truncf %115 : vector<2x128xf32> to vector<2x128xbf16>
    %c0_86 = arith.constant 0 : index
    %c0_87 = arith.constant 0 : index
    %117 = vector.load %arg10[%c0_86, %c0_87] : memref<128x128xbf16, #tpu.memory_space<vmem>>, vector<128x128xbf16>
    %cst_88 = arith.constant dense<0.000000e+00> : vector<2x128xf32>
    %118 = tpu.matmul %116, %117, %cst_88 {dimension_numbers = #tpu.dot_dimension_numbers<[1], [0], [0], [1], [0, 0, 1, 1], [], []>} : vector<2x128xbf16>, vector<128x128xbf16>, vector<2x128xf32> -> vector<2x128xf32>
    %c0_89 = arith.constant 0 : index
    %c0_90 = arith.constant 0 : index
    %119 = vector.load %arg11[%c0_89, %c0_90] : memref<1x128xf32, #tpu.memory_space<vmem>>, vector<1x128xf32>
    %120 = vector.broadcast %119 : vector<1x128xf32> to vector<2x128xf32>
    %121 = arith.addf %118, %120 : vector<2x128xf32>
    %c0_91 = arith.constant 0 : index
    %c0_92 = arith.constant 0 : index
    %122 = vector.load %arg12[%c0_91, %c0_92] : memref<2x128xf32, #tpu.memory_space<vmem>>, vector<2x128xf32>
    tpu.vector_store %arg12[%c0_91, %c0_92], %121 {strides = array<i32>} : memref<2x128xf32, #tpu.memory_space<vmem>>, vector<2x128xf32>,
    return
  }
  func.func @transform_0(%arg0: i32) -> (i32, i32, i32) {
    %c0_i32 = arith.constant 0 : i32
    %c0_i32_0 = arith.constant 0 : i32
    %c0_i32_1 = arith.constant 0 : i32
    return %arg0, %c0_i32, %c0_i32_0 : i32, i32, i32
  }
  func.func @transform_1(%arg0: i32) -> (i32, i32, i32) {
    %c0_i32 = arith.constant 0 : i32
    %c0_i32_0 = arith.constant 0 : i32
    %c0_i32_1 = arith.constant 0 : i32
    %c0_i32_2 = arith.constant 0 : i32
    return %c0_i32, %c0_i32_0, %c0_i32_1 : i32, i32, i32
  }
  func.func @transform_2(%arg0: i32) -> (i32, i32) {
    %c0_i32 = arith.constant 0 : i32
    %c0_i32_0 = arith.constant 0 : i32
    %c0_i32_1 = arith.constant 0 : i32
    return %c0_i32, %c0_i32_0 : i32, i32
  }
  func.func @transform_3(%arg0: i32) -> (i32, i32, i32) {
    %c0_i32 = arith.constant 0 : i32
    %c0_i32_0 = arith.constant 0 : i32
    %c0_i32_1 = arith.constant 0 : i32
    %c0_i32_2 = arith.constant 0 : i32
    return %c0_i32, %c0_i32_0, %c0_i32_1 : i32, i32, i32
  }
  func.func @transform_4(%arg0: i32) -> (i32, i32) {
    %c0_i32 = arith.constant 0 : i32
    %c0_i32_0 = arith.constant 0 : i32
    %c0_i32_1 = arith.constant 0 : i32
    return %c0_i32, %c0_i32_0 : i32, i32
  }
  func.func @transform_5(%arg0: i32) -> (i32, i32, i32) {
    %c0_i32 = arith.constant 0 : i32
    %c0_i32_0 = arith.constant 0 : i32
    %c0_i32_1 = arith.constant 0 : i32
    %c0_i32_2 = arith.constant 0 : i32
    return %c0_i32, %c0_i32_0, %c0_i32_1 : i32, i32, i32
  }
  func.func @transform_6(%arg0: i32) -> (i32, i32) {
    %c0_i32 = arith.constant 0 : i32
    %c0_i32_0 = arith.constant 0 : i32
    %c0_i32_1 = arith.constant 0 : i32
    return %c0_i32, %c0_i32_0 : i32, i32
  }
  func.func @transform_7(%arg0: i32) -> (i32, i32) {
    %c0_i32 = arith.constant 0 : i32
    %c0_i32_0 = arith.constant 0 : i32
    %c0_i32_1 = arith.constant 0 : i32
    return %c0_i32, %c0_i32_0 : i32, i32
  }
  func.func @transform_8(%arg0: i32) -> (i32, i32) {
    %c0_i32 = arith.constant 0 : i32
    %c0_i32_0 = arith.constant 0 : i32
    %c0_i32_1 = arith.constant 0 : i32
    return %c0_i32, %c0_i32_0 : i32, i32
  }
  func.func @transform_9(%arg0: i32) -> (i32, i32) {
    %c0_i32 = arith.constant 0 : i32
    %c0_i32_0 = arith.constant 0 : i32
    %c0_i32_1 = arith.constant 0 : i32
    return %c0_i32, %c0_i32_0 : i32, i32
  }
  func.func @transform_10(%arg0: i32) -> (i32, i32) {
    %c0_i32 = arith.constant 0 : i32
    %c0_i32_0 = arith.constant 0 : i32
    %c0_i32_1 = arith.constant 0 : i32
    return %c0_i32, %c0_i32_0 : i32, i32
  }
  func.func @transform_11(%arg0: i32) -> (i32, i32) {
    %c0_i32 = arith.constant 0 : i32
    %c0_i32_0 = arith.constant 0 : i32
    return %arg0, %c0_i32 : i32, i32
  }
}

</mosaic_0001>

<bundles_post_ra>
// kernel: alexnet_forward.1
= control target key start
LH: loop header
LB: loop body
LE: loop exit
PB: predicated region body
PF: predicated region fallthrough
CT: control target
= control target key end

     0   :  { %16 = vsyncpa [#allocation6], 0  ;;  %s7176_s0 = inlined_call_operand.vmem [shape: bf16[1,38,64], index: 0, kind: input, shape index: {}]   ;;  %s7177_s1 = inlined_call_operand.hbm [shape: bf16[3,64,512], index: 1, kind: input, shape index: {}]   ;;  %s7178_s2 = inlined_call_operand.vmem [shape: f32[1,512], index: 2, kind: input, shape index: {}]   ;;  %s7179_s3 = inlined_call_operand.hbm [shape: bf16[3,256,512], index: 3, kind: input, shape index: {}]   ;;  %s7180_s4 = inlined_call_operand.vmem [shape: f32[1,512], index: 4, kind: input, shape index: {}]   ;;  %s7181_s5 = inlined_call_operand.hbm [shape: bf16[3,256,256], index: 5, kind: input, shape index: {}]   ;;  %s7182_s6 = inlined_call_operand.vmem [shape: f32[1,256], index: 6, kind: input, shape index: {}]   ;;  %s7183_s7 = inlined_call_operand.vmem [shape: bf16[1024,128], index: 7, kind: input, shape index: {}]   ;;  %s7184_s8 = inlined_call_operand.vmem [shape: f32[1,128], index: 8, kind: input, shape index: {}]   ;;  %s7185_s9 = inlined_call_operand.hbm [shape: bf16[128,128], index: 9, kind: input, shape index: {}]   ;;  %s7186_s10 = inlined_call_operand.vmem [shape: f32[1,128], index: 10, kind: input, shape index: {}]   ;;  %s7187_s11 = inlined_call_operand.hbm [shape: f32[2,128], index: 11, kind: output, shape index: {}]  }
   0x1   :  { %17 = vsyncpa [#allocation9], 0 }
   0x2   :  { %18 = vsyncpa [#allocation12], 0 }
   0x3   :  { %19 = vsyncpa [#allocation7], 0  ;;  %s6322_s17 = smov [#allocation8]   ;;  %s6323_s19 = smov [#allocation5]  }
   0x4   :  { %s41_s18 = sshll.u32 %s6322_s17, 4  ;;  %s27_s20 = sshll.u32 %s6323_s19, 4  ;;  %s42_s18 = int_to_ptr.vmem [resolvable:$true] %s41_s18  ;;  %s28_s20 = int_to_ptr.vmem [resolvable:$true] %s27_s20 }
   0x5   :  { %s6222_s21 = scalar_lea.vmem %s42_s18, 24576  ;;  %p6227_p1 = scmp.lt.s32.totalorder %s42_s18, %s42_s18 }
   0x6   :  { %p6223_p0 = scmp.ne.s32.totalorder %s42_s18, %s6222_s21  ;;  %p6228_p2 = scmp.lt.s32.totalorder %s6222_s21, %s6222_s21 }
   0x8   :  { %p6229_p3 = por %p6228_p2, %p6227_p1 }
   0xa   :  { %p6230_p4 = pnand %p6229_p3, %p6223_p0 }
   0xc   :  { %6233 = shalt.err (!%p6230_p4)
}
   0xd   :  { %s6324_s22 = smov 256   ;;  %s6325_s23 = smov 16  }
   0xe   :  { %47 = dma.hbm_to_vmem [thread:$0]  %s7179_s3, 24576, %s42_s18, [#allocation9], %s6324_s22, %s6324_s22, %s6325_s23  }
   0xf   :  { %s6242_s26 = scalar_lea.vmem %s28_s20, 6144  ;;  %p6247_p6 = scmp.lt.s32.totalorder %s28_s20, %s28_s20 }
  0x10   :  { %p6243_p5 = scmp.ne.s32.totalorder %s28_s20, %s6242_s26  ;;  %p6248_p7 = scmp.lt.s32.totalorder %s6242_s26, %s6242_s26 }
  0x12   :  { %p6249_p8 = por %p6248_p7, %p6247_p6 }
  0x14   :  { %p6250_p9 = pnand %p6249_p8, %p6243_p5 }
  0x16   :  { %6253 = shalt.err (!%p6250_p9)
}
  0x17   :  { %33 = dma.hbm_to_vmem [thread:$0]  %s7177_s1, 6144, %s28_s20, [#allocation6], %s6324_s22, %s6324_s22, %s6325_s23  }
  0x18   :  { %s6326_s29 = smov [#allocation10]  }
  0x19   :  { %s55_s30 = sshll.u32 %s6326_s29, 4  ;;  %s56_s30 = int_to_ptr.vmem [resolvable:$true] %s55_s30 }
  0x1a   :  { %s6262_s12 = scalar_lea.vmem %s56_s30, 12288  ;;  %p6267_p11 = scmp.lt.s32.totalorder %s56_s30, %s56_s30 }
  0x1b   :  { %p6263_p10 = scmp.ne.s32.totalorder %s56_s30, %s6262_s12  ;;  %p6268_p12 = scmp.lt.s32.totalorder %s6262_s12, %s6262_s12 }
  0x1d   :  { %p6269_p13 = por %p6268_p12, %p6267_p11 }
  0x1f   :  { %p6270_p0 = pnand %p6269_p13, %p6263_p10 }
  0x21   :  { %6273 = shalt.err (!%p6270_p0)
}
  0x22   :  { %s6327_s3 = smov 128   ;;  %s6328_s13 = smov 8  }
  0x23   :  { %61 = dma.hbm_to_vmem [thread:$0]  %s7181_s5, 12288, %s56_s30, [#allocation9], %s6327_s3, %s6327_s3, %s6328_s13  }
  0x24   :  { %s6329_s16 = smov [#allocation11]  }
  0x25   :  { %s73_s17 = sshll.u32 %s6329_s16, 4  ;;  %s74_s17 = int_to_ptr.vmem [resolvable:$true] %s73_s17 }
  0x26   :  { %s6282_s1 = scalar_lea.vmem %s74_s17, 1024  ;;  %p6287_p2 = scmp.lt.s32.totalorder %s74_s17, %s74_s17 }
  0x27   :  { %p6283_p1 = scmp.ne.s32.totalorder %s74_s17, %s6282_s1  ;;  %p6288_p3 = scmp.lt.s32.totalorder %s6282_s1, %s6282_s1 }
  0x29   :  { %p6289_p4 = por %p6288_p3, %p6287_p2 }
  0x2b   :  { %p6290_p5 = pnand %p6289_p4, %p6283_p1 }
  0x2d   :  { %6293 = shalt.err (!%p6290_p5)
}
  0x2e   :  { %s6330_s18 = smov 64   ;;  %s6331_s19 = smov 4  }
  0x2f   :  { %79 = dma.hbm_to_vmem [thread:$0]  %s7185_s9, 1024, %s74_s17, [#allocation12], %s6330_s18, %s6330_s18, %s6331_s19  }
  0x30   :  { %6314 = dma.done.wait [#allocation6], 6144  }
  0x31   :  { %6315 = vsyncadd [#allocation6], 4294961152 }
  0x32   :  { %6316 = dma.done.wait [#allocation9], 36864  }
  0x33   :  { %6317 = vsyncadd [#allocation9], 4294930432 }
  0x34   :  { %6318 = dma.done.wait [#allocation12], 1024  }
  0x35   :  { %6319 = vsyncadd [#allocation12], 4294966272  ;;  %v6332_v0 = vmov 0   ;;  %v5633_v1 = vld [vmem:[#allocation5 + $0xe4] ss:$16 sps:$4 sm:$0xff]   ;;  %v6420_v18 = vld [vmem:[%s7176_s0 + $0x8] sm:$0xff]  }
  0x36   :  { %302 = vmatprep.mubr.bf16.mxu1 %v6332_v0  ;;  %510 = vmatprep.mubr.bf16.mxu0 %v6332_v0  ;;  %v5635_v2 = vld [vmem:[#allocation5 + $0x64] ss:$16 sps:$4 sm:$0xff]   ;;  %v5637_v3 = vld [vmem:[#allocation5 + $0xe0] ss:$16 sps:$4 sm:$0xff]   ;;  %v5661_v19 = vld [vmem:[#allocation5 + $0xec] ss:$16 sps:$4 sm:$0xff]  }
  0x37   :  { %278 = vmatprep.subr.bf16.mxu1 %v5633_v1  ;;  %v5638_v4 = vld [vmem:[#allocation5 + $0x60] ss:$16 sps:$4 sm:$0xff]   ;;  %486 = vmatprep.subr.bf16.mxu0 %v5635_v2  ;;  %v5639_v5 = vld [vmem:[#allocation5 + $0xc4] ss:$16 sps:$4 sm:$0xff]   ;;  %v165_v22 = vshll.u32 %v6420_v18, 16  ;;  %vm260_vm1 = vcmask 523264  }
  0x38   :  { %279 = vmatpush1.bf16.msra.mxu1 %v5637_v3  ;;  %487 = vmatpush1.bf16.msra.mxu0 %v5638_v4  ;;  %v5641_v6 = vld [vmem:[#allocation5 + $0x44] ss:$16 sps:$4 sm:$0xff]   ;;  %v5643_v7 = vld [vmem:[#allocation5 + $0xc0] ss:$16 sps:$4 sm:$0xff]   ;;  %vm156_vm0 = vsmask.f32 7424 }
  0x39   :  { %280 = vmatprep.subr.bf16.mxu1 %v5639_v5  ;;  %v5644_v8 = vld [vmem:[#allocation5 + $0x40] ss:$16 sps:$4 sm:$0xff]   ;;  %488 = vmatprep.subr.bf16.mxu0 %v5641_v6  ;;  %v5645_v9 = vld [vmem:[#allocation5 + $0xa4] ss:$16 sps:$4 sm:$0xff]   ;;  %v167_v24 = vrot.slane %v165_v22, 1  ;;  %v169_v30 = vshrl.u32 %v6420_v18, 16 }
  0x3a   :  { %v5647_v10 = vld [vmem:[#allocation5 + $0x24] ss:$16 sps:$4 sm:$0xff]   ;;  %v5649_v11 = vld [vmem:[#allocation5 + $0xa0] ss:$16 sps:$4 sm:$0xff]   ;;  %v5659_v29 = vld [vmem:[#allocation5 + $0xe8] ss:$16 sps:$4 sm:$0xff]  }
  0x3b   :  { %v5650_v12 = vld [vmem:[#allocation5 + $0x20] ss:$16 sps:$4 sm:$0xff]   ;;  %v5651_v13 = vld [vmem:[#allocation5 + $0x84] ss:$16 sps:$4 sm:$0xff]   ;;  %v5664_v32 = vld [vmem:[#allocation5 + $0xcc] ss:$16 sps:$4 sm:$0xff]   ;;  %v171_v38 = vor.u32 %v169_v30, %v167_v24 }
  0x3c   :  { %281 = vmatpush1.bf16.msra.mxu1 %v5643_v7  ;;  %489 = vmatpush1.bf16.msra.mxu0 %v5644_v8  ;;  %v5653_v14 = vld [vmem:[#allocation5 + $0x4] ss:$16 sps:$4 sm:$0xff]   ;;  %v5655_v15 = vld [vmem:[#allocation5 + $0x80] ss:$16 sps:$4 sm:$0xff]   ;;  %v5662_v37 = vld [vmem:[#allocation5 + $0xc8] ss:$16 sps:$4 sm:$0xff]  }
  0x3d   :  { %282 = vmatprep.subr.bf16.mxu1 %v5645_v9  ;;  %490 = vmatprep.subr.bf16.mxu0 %v5647_v10  ;;  %v5656_v16 = vld [vmem:[#allocation5] ss:$16 sps:$4 sm:$0xff]   ;;  %v5668_v27 = vld [vmem:[#allocation5 + $0x164] ss:$16 sps:$4 sm:$0xff]   ;;  %v5671_v40 = vld [vmem:[#allocation5 + $0xac] ss:$16 sps:$4 sm:$0xff]  }
  0x3e   :  { %v6415_v17 = vld [vmem:[%s7176_s0] sm:$0xff]   ;;  %v6428_v25 = vld [vmem:[%s7176_s0 + $0x10] ss:$0 sps:$4 sm:$0x77]   ;;  %v5669_v44 = vld [vmem:[#allocation5 + $0xa8] ss:$16 sps:$4 sm:$0xff]  }
  0x3f   :  { %v158_v20 = vshrl.u32 %v6415_v17, 16  ;;  %v160_v21 = vshll.u32 %v6415_v17, 16  ;;  %v5666_v26 = vld [vmem:[#allocation5 + $0x160] ss:$16 sps:$4 sm:$0xff]   ;;  %v173_v31 = vshll.u32 %v6428_v25, 16  ;;  %v177_v47 = vshrl.u32 %v6428_v25, 16 }
  0x40   :  { %283 = vmatpush1.bf16.msra.mxu1 %v5649_v11  ;;  %491 = vmatpush1.bf16.msra.mxu0 %v5650_v12  ;;  %v5672_v34 = vld [vmem:[#allocation5 + $0x140] ss:$16 sps:$4 sm:$0xff]   ;;  %v5674_v35 = vld [vmem:[#allocation5 + $0x144] ss:$16 sps:$4 sm:$0xff]   ;;  %v5680_v45 = vld [vmem:[#allocation5 + $0x8c] ss:$16 sps:$4 sm:$0xff]  }
  0x41   :  { %284 = vmatprep.subr.bf16.mxu1 %v5651_v13  ;;  %492 = vmatprep.subr.bf16.mxu0 %v5653_v14  ;;  %v162_v23 = vrot.slane %v160_v21, 1  ;;  %v5677_v36 = vld [vmem:[#allocation5 + $0x124] ss:$16 sps:$4 sm:$0xff]   ;;  %v175_v39 = vrot.slane %v173_v31, 1  ;;  %v5675_v41 = vld [vmem:[#allocation5 + $0x120] ss:$16 sps:$4 sm:$0xff]  }
  0x42   :  { %v5683_v42 = vld [vmem:[#allocation5 + $0x104] ss:$16 sps:$4 sm:$0xff]   ;;  %v5681_v46 = vld [vmem:[#allocation5 + $0x100] ss:$16 sps:$4 sm:$0xff]   ;;  %v5678_v48 = vld [vmem:[#allocation5 + $0x88] ss:$16 sps:$4 sm:$0xff]  }
  0x43   :  { %v163_v28 = vor.u32 %v162_v23, %v158_v20  ;;  %v176_v43 = vsel %vm156_vm0, %v171_v38, %v175_v39  ;;  %v5686_v49 = vld [vmem:[#allocation5 + $0x6c] ss:$16 sps:$4 sm:$0xff]   ;;  %v179_v50 = vor.u32 %v177_v47, %v175_v39  ;;  %v618_v51 = vrot.slane %v6415_v17, 1  ;;  %v5684_v53 = vld [vmem:[#allocation5 + $0x68] ss:$16 sps:$4 sm:$0xff]  }
  0x44   :  { %285 = vmatpush1.bf16.msra.mxu1 %v5655_v15  ;;  %493 = vmatpush1.bf16.msra.mxu0 %v5656_v16  ;;  %v619_v52 = vrot.slane %v6420_v18, 1  ;;  %vm617_vm2 = vcmask 1046528   ;;  %v5689_v55 = vld [vmem:[#allocation5 + $0x4c] ss:$16 sps:$4 sm:$0xff]   ;;  %v5687_v56 = vld [vmem:[#allocation5 + $0x48] ss:$16 sps:$4 sm:$0xff]  }
  0x45   :  { %339 = vmatprep.subr.bf16.mxu1 %v5661_v19  ;;  %720 = vmatprep.subr.bf16.mxu0 %v5668_v27  ;;  %v168_v33 = vsel %vm156_vm0, %v163_v28, %v167_v24  ;;  %v621_v57 = vrot.slane %v6428_v25, 1  ;;  %v5692_v58 = vld [vmem:[#allocation5 + $0x2c] ss:$16 sps:$4 sm:$0xff]   ;;  %v5690_v60 = vld [vmem:[#allocation5 + $0x28] ss:$16 sps:$4 sm:$0xff]   ;;  %v6333_v19 = vmov 0.0  }
  0x46   :  { %v620_v54 = vsel %vm617_vm2, %v618_v51, %v619_v52  ;;  %v5695_v61 = vld [vmem:[#allocation5 + $0xc] ss:$16 sps:$4 sm:$0xff]   ;;  %v5693_v62 = vld [vmem:[#allocation5 + $0x8] ss:$16 sps:$4 sm:$0xff]   ;;  %v5710_v8 = vld [vmem:[#allocation8 + $0x2e4] ss:$16 sps:$4 sm:$0xff]  }
  0x47   :  { %5110 = vmatmul.mubr.msk.bf16.vlgmr.msra.gmra.mxu0 %vm260_vm1, %v6415_v17  ;;  %5088 = vmatmul.mubr.msk.bf16.vlgmr.msra.gmra.mxu1 %vm260_vm1, %v168_v33  ;;  %v622_v59 = vsel %vm617_vm2, %v619_v52, %v621_v57  ;;  %v5698_v63 = vld [vmem:[#allocation5 + $0x16c] ss:$16 sps:$4 sm:$0xff]   ;;  %v5696_v1 = vld [vmem:[#allocation5 + $0x168] ss:$16 sps:$4 sm:$0xff]   ;;  %v5708_v10 = vld [vmem:[#allocation8 + $0x2e0] ss:$16 sps:$4 sm:$0xff]  }
  0x48   :  { %520 = vmatprep.mubr.bf16.mxu0 %v6332_v0  ;;  %721 = vmatpush1.bf16.msra.mxu0 %v5666_v26  ;;  %v5701_v2 = vld [vmem:[#allocation5 + $0x14c] ss:$16 sps:$4 sm:$0xff]   ;;  %v5699_v3 = vld [vmem:[#allocation5 + $0x148] ss:$16 sps:$4 sm:$0xff]   ;;  %v5716_v12 = vld [vmem:[#allocation8 + $0x2c4] ss:$16 sps:$4 sm:$0xff]  }
  0x49   :  { %340 = vmatpush1.bf16.msra.mxu1 %v5659_v29  ;;  %312 = vmatprep.mubr.bf16.mxu1 %v6332_v0  ;;  %v5704_v4 = vld [vmem:[#allocation5 + $0x12c] ss:$16 sps:$4 sm:$0xff]   ;;  %v5702_v5 = vld [vmem:[#allocation5 + $0x128] ss:$16 sps:$4 sm:$0xff]   ;;  %v5714_v14 = vld [vmem:[#allocation8 + $0x2c0] ss:$16 sps:$4 sm:$0xff]  }
  0x4a   :  { %341 = vmatprep.subr.bf16.mxu1 %v5664_v32  ;;  %722 = vmatprep.subr.bf16.mxu0 %v5674_v35  ;;  %v5707_v6 = vld [vmem:[#allocation5 + $0x10c] ss:$16 sps:$4 sm:$0xff]   ;;  %v5705_v7 = vld [vmem:[#allocation5 + $0x108] ss:$16 sps:$4 sm:$0xff]   ;;  %v5722_v16 = vld [vmem:[#allocation8 + $0x2a4] ss:$16 sps:$4 sm:$0xff]  }
  0x4b   :  { %v5713_v9 = vld [vmem:[#allocation8 + $0x2ec] ss:$16 sps:$4 sm:$0xff]   ;;  %v5711_v11 = vld [vmem:[#allocation8 + $0x2e8] ss:$16 sps:$4 sm:$0xff]   ;;  %95 = vst [vmem:[#allocation2 + $0x28] sm:$0xff] %v6333_v19  ;;  %96 = vst [vmem:[#allocation2 + $0x10] sm:$0xff] %v6333_v19 }
  0x4c   :  { %723 = vmatpush1.bf16.msra.mxu0 %v5672_v34  ;;  %v5719_v13 = vld [vmem:[#allocation8 + $0x2cc] ss:$16 sps:$4 sm:$0xff]   ;;  %v5717_v15 = vld [vmem:[#allocation8 + $0x2c8] ss:$16 sps:$4 sm:$0xff]   ;;  %97 = vst [vmem:[#allocation2 + $0x8] sm:$0xff] %v6333_v19  ;;  %98 = vst [vmem:[#allocation2] sm:$0xff] %v6333_v19 }
  0x4d   :  { %724 = vmatprep.subr.bf16.mxu0 %v5677_v36  ;;  %342 = vmatpush1.bf16.msra.mxu1 %v5662_v37  ;;  %99 = vst [vmem:[#allocation2 + $0x18] sm:$0x3f] %v6333_v19  ;;  %100 = vst [vmem:[#allocation2 + $0x20] sm:$0x3f] %v6333_v19  ;;  %v5728_v20 = vld [vmem:[#allocation8 + $0x284] ss:$16 sps:$4 sm:$0xff]  }
  0x4e   :  { %343 = vmatprep.subr.bf16.mxu1 %v5671_v40  ;;  %101 = vst [vmem:[#allocation3] sm:$0xff] %v6333_v19  ;;  %102 = vst [vmem:[#allocation3 + $0x8] sm:$0xff] %v6333_v19  ;;  %v5731_v21 = vld [vmem:[#allocation8 + $0x28c] ss:$16 sps:$4 sm:$0xff]   ;;  %v5726_v22 = vld [vmem:[#allocation8 + $0x280] ss:$16 sps:$4 sm:$0xff]  }
  0x4f   :  { %5111 = vmatmul.mubr.msk.bf16.gmra.mxu0 %vm260_vm1, %v6420_v18  ;;  %5089 = vmatmul.mubr.msk.bf16.gmra.mxu1 %vm260_vm1, %v176_v43  ;;  %103 = vst [vmem:[#allocation3 + $0x10] sm:$0x3f] %v6333_v19  ;;  %104 = vst [vmem:[#allocation3 + $0x18] sm:$0x3f] %v6333_v19  ;;  %v5729_v23 = vld [vmem:[#allocation8 + $0x288] ss:$16 sps:$4 sm:$0xff]  }
  0x50   :  { %530 = vmatprep.mubr.bf16.mxu0 %v6332_v0  ;;  %725 = vmatpush1.bf16.msra.mxu0 %v5675_v41  ;;  %v5734_v37 = vld [vmem:[#allocation8 + $0x264] ss:$16 sps:$4 sm:$0xff]   ;;  %v5737_v38 = vld [vmem:[#allocation8 + $0x26c] ss:$16 sps:$4 sm:$0xff]   ;;  %v5732_v41 = vld [vmem:[#allocation8 + $0x260] ss:$16 sps:$4 sm:$0xff]  }
  0x51   :  { %726 = vmatprep.subr.bf16.mxu0 %v5683_v42  ;;  %344 = vmatpush1.bf16.msra.mxu1 %v5669_v44  ;;  %v5735_v42 = vld [vmem:[#allocation8 + $0x268] ss:$16 sps:$4 sm:$0xff]   ;;  %vm1176_vm3 = vcmask 1041408   ;;  %vm1417_vm4 = vcmask 1042434   ;;  %vm1419_vm5 = vcmask 1043459   ;;  %vm1421_vm6 = vcmask 1044484  }
  0x52   :  { %322 = vmatprep.mubr.bf16.mxu1 %v6332_v0  ;;  %345 = vmatprep.subr.bf16.mxu1 %v5680_v45  ;;  %vm1423_vm7 = vcmask 1045509   ;;  %vm1425_vm8 = vcmask 1046534   ;;  %vm1427_vm9 = vcmask 1047559   ;;  %vm1467_vm10 = vcmask 1041409  }
  0x53   :  { %vm6336_vm12 = vmmov 0  }
  0x54   :  { %727 = vmatpush1.bf16.msra.mxu0 %v5681_v46 }
  0x55   :  { %346 = vmatpush1.bf16.msra.mxu1 %v5678_v48  ;;  %1973 = vmatprep.subr.bf16.mxu0 %v5710_v8 }
  0x56   :  { %547 = vmatprep.subr.bf16.mxu1 %v5686_v49 }
  0x57   :  { %5112 = vmatmul.mubr.msk.bf16.gmra.mxu0 %vm260_vm1, %v6428_v25  ;;  %5090 = vmatmul.mubr.msk.bf16.gmra.mxu1 %vm260_vm1, %v179_v50 }
  0x58   :  { %744 = vmatprep.mubr.bf16.mxu0 %v6332_v0  ;;  %363 = vmatprep.mubr.bf16.mxu1 %v6332_v0 }
  0x5f   :  { %5132 = vmatmul.mubr.msk.bf16.vlgmr.msra.gmra.mxu0 %vm260_vm1, %v620_v54  ;;  %5091 = vmatmul.mubr.msk.bf16.vlgmr.msra.gmra.mxu1 %vm260_vm1, %v168_v33 }
  0x60   :  { %754 = vmatprep.mubr.bf16.mxu0 %v6332_v0  ;;  %548 = vmatpush1.bf16.msra.mxu1 %v5684_v53 }
  0x61   :  { %373 = vmatprep.mubr.bf16.mxu1 %v6332_v0  ;;  %549 = vmatprep.subr.bf16.mxu1 %v5689_v55 }
  0x62   :  { %1974 = vmatpush1.bf16.msra.mxu0 %v5708_v10 }
  0x63   :  { %1975 = vmatprep.subr.bf16.mxu0 %v5716_v12  ;;  %v5749_v12 = vld [vmem:[#allocation8 + $0x22c] ss:$16 sps:$4 sm:$0xff]  }
  0x64   :  { %550 = vmatpush1.bf16.msra.mxu1 %v5687_v56 }
  0x65   :  { %551 = vmatprep.subr.bf16.mxu1 %v5692_v58 }
  0x66   :  { %1976 = vmatpush1.bf16.msra.mxu0 %v5714_v14 }
  0x67   :  { %5133 = vmatmul.mubr.msk.bf16.gmra.mxu0 %vm260_vm1, %v622_v59  ;;  %5092 = vmatmul.mubr.msk.bf16.gmra.mxu1 %vm260_vm1, %v176_v43 }
  0x68   :  { %764 = vmatprep.mubr.bf16.mxu0 %v6332_v0  ;;  %552 = vmatpush1.bf16.msra.mxu1 %v5690_v60 }
  0x69   :  { %383 = vmatprep.mubr.bf16.mxu1 %v6332_v0  ;;  %553 = vmatprep.subr.bf16.mxu1 %v5695_v61 }
  0x6a   :  { %1977 = vmatprep.subr.bf16.mxu0 %v5722_v16  ;;  %v5747_v16 = vld [vmem:[#allocation8 + $0x228] ss:$16 sps:$4 sm:$0xff]  }
  0x6c   :  { %554 = vmatpush1.bf16.msra.mxu1 %v5693_v62 }
  0x6d   :  { %781 = vmatprep.subr.bf16.mxu1 %v5698_v63 }
  0x6f   :  { %5134 = vmatmul.mubr.msk.bf16.gmra.mxu0 %vm260_vm1, %v621_v57  ;;  %5093 = vmatmul.mubr.msk.bf16.gmra.mxu1 %vm260_vm1, %v179_v50 }
  0x70   :  { %571 = vmatprep.mubr.bf16.mxu1 %v6332_v0 }
  0x77   :  { %5113 = vmatmul.mubr.msk.bf16.vlgmr.msra.gmra.mxu1 %vm260_vm1, %v6415_v17  ;;  %v5720_v17 = vld [vmem:[#allocation8 + $0x2a0] ss:$16 sps:$4 sm:$0xff]  }
  0x78   :  { %782 = vmatpush1.bf16.msra.mxu1 %v5696_v1  ;;  %581 = vmatprep.mubr.bf16.mxu1 %v6332_v0  ;;  %v5740_v1 = vld [vmem:[#allocation8 + $0x244] ss:$16 sps:$4 sm:$0xff]  }
  0x79   :  { %783 = vmatprep.subr.bf16.mxu1 %v5701_v2  ;;  %1978 = vmatpush1.bf16.msra.mxu0 %v5720_v17  ;;  %v5743_v2 = vld [vmem:[#allocation8 + $0x24c] ss:$16 sps:$4 sm:$0xff]  }
  0x7a   :  { %1979 = vmatprep.subr.bf16.mxu0 %v5728_v20 }
  0x7c   :  { %784 = vmatpush1.bf16.msra.mxu1 %v5699_v3 }
  0x7d   :  { %785 = vmatprep.subr.bf16.mxu1 %v5704_v4  ;;  %1980 = vmatpush1.bf16.msra.mxu0 %v5726_v22  ;;  %v5755_v22 = vld [vmem:[#allocation8 + $0x20c] ss:$16 sps:$4 sm:$0xff]  }
  0x7e   :  { %1981 = vmatprep.subr.bf16.mxu0 %v5734_v37 }
  0x7f   :  { %5114 = vmatmul.mubr.msk.bf16.gmra.mxu1 %vm260_vm1, %v6420_v18  ;;  %v5723_v18 = vld [vmem:[#allocation8 + $0x2a8] ss:$16 sps:$4 sm:$0xff]  }
  0x80   :  { %786 = vmatpush1.bf16.msra.mxu1 %v5702_v5  ;;  %591 = vmatprep.mubr.bf16.mxu1 %v6332_v0  ;;  %v5738_v5 = vld [vmem:[#allocation8 + $0x240] ss:$16 sps:$4 sm:$0xff]  }
  0x81   :  { %787 = vmatprep.subr.bf16.mxu1 %v5707_v6  ;;  %1982 = vmatpush1.bf16.msra.mxu0 %v5732_v41  ;;  %v5741_v6 = vld [vmem:[#allocation8 + $0x248] ss:$16 sps:$4 sm:$0xff]  }
  0x82   :  { %1983 = vmatprep.subr.bf16.mxu0 %v5740_v1 }
  0x84   :  { %788 = vmatpush1.bf16.msra.mxu1 %v5705_v7 }
  0x85   :  { %2024 = vmatprep.subr.bf16.mxu1 %v5713_v9  ;;  %1984 = vmatpush1.bf16.msra.mxu0 %v5738_v5  ;;  %v856_v9 = vlaneseq  ;;  %v5771_v5 = vld [vmem:[#allocation8 + $0x3a8] ss:$16 sps:$4 sm:$0xff]  }
  0x87   :  { %5115 = vmatmul.mubr.msk.bf16.gmra.mxu1 %vm260_vm1, %v6428_v25  ;;  %vm7042_vm11 = vcmp.lt.s32.totalorder %v856_v9, 256 }
  0x88   :  { %805 = vmatprep.mubr.bf16.mxu1 %v6332_v0 }
  0x8f   :  { %5135 = vmatmul.mubr.msk.bf16.vlgmr.msra.gmra.mxu1 %vm260_vm1, %v620_v54 }
  0x90   :  { %815 = vmatprep.mubr.bf16.mxu1 %v6332_v0  ;;  %2025 = vmatpush1.bf16.msra.mxu1 %v5711_v11  ;;  %v5746_v11 = vld [vmem:[#allocation8 + $0x224] ss:$16 sps:$4 sm:$0xff]  }
  0x91   :  { %2026 = vmatprep.subr.bf16.mxu1 %v5719_v13  ;;  %1985 = vmatprep.subr.bf16.mxu0 %v5746_v11 }
  0x94   :  { %2027 = vmatpush1.bf16.msra.mxu1 %v5717_v15  ;;  %v5744_v15 = vld [vmem:[#allocation8 + $0x220] ss:$16 sps:$4 sm:$0xff]  }
  0x95   :  { %1986 = vmatpush1.bf16.msra.mxu0 %v5744_v15  ;;  %v5777_v15 = vld [vmem:[#allocation8 + $0x388] ss:$16 sps:$4 sm:$0xff]  }
  0x97   :  { %5136 = vmatmul.mubr.msk.bf16.gmra.mxu1 %vm260_vm1, %v622_v59 }
  0x98   :  { %825 = vmatprep.mubr.bf16.mxu1 %v6332_v0  ;;  %v5725_v0 = vld [vmem:[#allocation8 + $0x2ac] ss:$16 sps:$4 sm:$0xff]  }
  0x99   :  { %2028 = vmatprep.subr.bf16.mxu1 %v5725_v0 }
  0x9a   :  { %2029 = vmatpush1.bf16.msra.mxu1 %v5723_v18  ;;  %v6517_v18 = vshrl.u32 %v856_v9, 7 }
  0x9b   :  { %2030 = vmatprep.subr.bf16.mxu1 %v5731_v21  ;;  %v5752_v21 = vld [vmem:[#allocation8 + $0x204] ss:$16 sps:$4 sm:$0xff]  }
  0x9c   :  { %1987 = vmatprep.subr.bf16.mxu0 %v5752_v21  ;;  %v6540_v41 = vsub.s32 1, %v6517_v18  ;;  %v5785_v21 = vld [vmem:[#allocation8 + $0x36c] ss:$16 sps:$4 sm:$0xff]  }
  0x9e   :  { %2031 = vmatpush1.bf16.msra.mxu1 %v5729_v23 }
  0x9f   :  { %5137 = vmatmul.mubr.msk.bf16.gmra.mxu1 %vm260_vm1, %v621_v57  ;;  %2032 = vmatprep.subr.bf16.mxu1 %v5737_v38 }
  0xa2   :  { %2033 = vmatpush1.bf16.msra.mxu1 %v5735_v42 }
  0xa3   :  { %2034 = vmatprep.subr.bf16.mxu1 %v5743_v2  ;;  %v5768_v2 = vld [vmem:[#allocation8 + $0x3a0] ss:$16 sps:$4 sm:$0xff]  }
  0xa6   :  { %2035 = vmatpush1.bf16.msra.mxu1 %v5741_v6 }
  0xa7   :  { %2036 = vmatprep.subr.bf16.mxu1 %v5749_v12  ;;  %v5774_v12 = vld [vmem:[#allocation8 + $0x380] ss:$16 sps:$4 sm:$0xff]  }
  0xaa   :  { %2037 = vmatpush1.bf16.msra.mxu1 %v5747_v16 }
  0xab   :  { %2038 = vmatprep.subr.bf16.mxu1 %v5755_v22 }
 0x107   :  { %v512_v24 = vpop.f32.mrf.mxu0  ;;  %v304_v25 = vpop.f32.mrf.mxu1 }
 0x108   :  { %v513_v27 = vadd.f32 %v512_v24, %v304_v25  ;;  %v5750_v25 = vld [vmem:[#allocation8 + $0x200] ss:$16 sps:$4 sm:$0xff]  }
 0x109   :  { %v514_v26 = vpop.f32.mrf.mxu0  ;;  %v306_v28 = vpop.f32.mrf.mxu1  ;;  %1988 = vmatpush1.bf16.msra.mxu0 %v5750_v25  ;;  %v5783_v25 = vld [vmem:[#allocation8 + $0x368] ss:$16 sps:$4 sm:$0xff]  }
 0x10a   :  { %v6490_v30 = vadd.f32 %v514_v26, %v306_v28  ;;  %v5753_v26 = vld [vmem:[#allocation8 + $0x208] ss:$16 sps:$4 sm:$0xff]  }
 0x10b   :  { %v516_v29 = vpop.f32.mrf.mxu0  ;;  %v308_v31 = vpop.f32.mrf.mxu1  ;;  %2039 = vmatpush1.bf16.msra.mxu1 %v5753_v26 }
 0x10c   :  { %v517_v33 = vadd.f32 %v516_v29, %v308_v31  ;;  %v6528_v31 = vsub.s32 0, %v6517_v18 }
 0x10d   :  { %v518_v32 = vpop.f32.mrf.mxu0  ;;  %v310_v34 = vpop.f32.mrf.mxu1 }
 0x10e   :  { %v6492_v36 = vadd.f32 %v518_v32, %v310_v34  ;;  %v5761_v34 = vld [vmem:[#allocation8 + $0x3ec] ss:$16 sps:$4 sm:$0xff]  }
 0x10f   :  { %v522_v35 = vpop.f32.mrf.mxu0  ;;  %v314_v39 = vpop.f32.mrf.mxu1  ;;  %2040 = vmatprep.subr.bf16.mxu1 %v5761_v34  ;;  %v5789_v34 = vld [vmem:[#allocation8 + $0x348] ss:$16 sps:$4 sm:$0xff]  }
 0x110   :  { %v523_v43 = vadd.f32 %v522_v35, %v314_v39  ;;  %v6535_v35 = vld [vmem:[%s7178_s2] sm:$0xf] }
 0x111   :  { %v524_v40 = vpop.f32.mrf.mxu0  ;;  %v316_v44 = vpop.f32.mrf.mxu1  ;;  %v5756_v39 = vld [vmem:[#allocation8 + $0x3e0] ss:$16 sps:$4 sm:$0xff]  }
 0x112   :  { %v525_v46 = vadd.f32 %v524_v40, %v316_v44  ;;  %v5759_v40 = vld [vmem:[#allocation8 + $0x3e8] ss:$16 sps:$4 sm:$0xff]  }
 0x113   :  { %v526_v45 = vpop.f32.mrf.mxu0  ;;  %v318_v47 = vpop.f32.mrf.mxu1  ;;  %2041 = vmatpush2.bf16.msra.mxu1 %v5759_v40 }
 0x114   :  { %v527_v49 = vadd.f32 %v526_v45, %v318_v47  ;;  %v6549_v45 = vrot.slane %v6535_v35, %v6528_v31  ;;  %v5764_v47 = vld [vmem:[#allocation8 + $0x3c4] ss:$16 sps:$4 sm:$0xff]  }
 0x115   :  { %v528_v48 = vpop.f32.mrf.mxu0  ;;  %v320_v50 = vpop.f32.mrf.mxu1 }
 0x116   :  { %v6494_v52 = vadd.f32 %v528_v48, %v320_v50  ;;  %v5767_v48 = vld [vmem:[#allocation8 + $0x3cc] ss:$16 sps:$4 sm:$0xff]  }
 0x117   :  { %v532_v51 = vpop.f32.mrf.mxu0  ;;  %v324_v53 = vpop.f32.mrf.mxu1  ;;  %2042 = vmatprep.subr.bf16.mxu1 %v5767_v48  ;;  %v5792_v48 = vld [vmem:[#allocation8 + $0x320] ss:$16 sps:$4 sm:$0xff]  }
 0x118   :  { %v6496_v55 = vadd.f32 %v532_v51, %v324_v53  ;;  %v5762_v51 = vld [vmem:[#allocation8 + $0x3c0] ss:$16 sps:$4 sm:$0xff]   ;;  %v6556_v53 = vrot.slane %v6535_v35, %v6540_v41 }
 0x119   :  { %v534_v54 = vpop.f32.mrf.mxu0  ;;  %v326_v56 = vpop.f32.mrf.mxu1 }
 0x11a   :  { %v6498_v58 = vadd.f32 %v534_v54, %v326_v56 }
 0x11b   :  { %v536_v57 = vpop.f32.mrf.mxu0  ;;  %v328_v59 = vpop.f32.mrf.mxu1 }
 0x11d   :  { %v537_v60 = vpop.f32.mrf.mxu0  ;;  %v329_v61 = vpop.f32.mrf.mxu1 }
 0x11e   :  { %v5770_v60 = vld [vmem:[#allocation8 + $0x3a4] ss:$16 sps:$4 sm:$0xff]   ;;  %v5773_v61 = vld [vmem:[#allocation8 + $0x3ac] ss:$16 sps:$4 sm:$0xff]  }
 0x11f   :  { %v746_v62 = vpop.f32.mrf.mxu0  ;;  %v6502_v3 = vpop.f32.mrf.mxu1 }
 0x120   :  { %v6500_v63 = vadd.f32 %v746_v62, %v513_v27 }
 0x121   :  { %v6504_v4 = vpop.f32.mrf.mxu0  ;;  %v6506_v7 = vpop.f32.mrf.mxu1 }
 0x123   :  { %v750_v8 = vpop.f32.mrf.mxu0  ;;  %v6510_v13 = vpop.f32.mrf.mxu1 }
 0x124   :  { %v6508_v10 = vadd.f32 %v750_v8, %v517_v33  ;;  %v5758_v33 = vld [vmem:[#allocation8 + $0x3e4] ss:$16 sps:$4 sm:$0xff]   ;;  %v5779_v8 = vld [vmem:[#allocation8 + $0x38c] ss:$16 sps:$4 sm:$0xff]  }
 0x125   :  { %v6512_v14 = vpop.f32.mrf.mxu0  ;;  %v6514_v0 = vpop.f32.mrf.mxu1  ;;  %1989 = vmatprep.subr.bf16.mxu0 %v5758_v33  ;;  %v5788_v33 = vld [vmem:[#allocation8 + $0x344] ss:$16 sps:$4 sm:$0xff]  }
 0x126   :  { %1990 = vmatpush2.bf16.msra.mxu0 %v5756_v39  ;;  %v5794_v39 = vld [vmem:[#allocation8 + $0x324] ss:$16 sps:$4 sm:$0xff]  }
 0x127   :  { %v756_v17 = vpop.f32.mrf.mxu0  ;;  %v6521_v23 = vpop.f32.mrf.mxu1  ;;  %1991 = vmatprep.subr.bf16.mxu0 %v5764_v47 }
 0x128   :  { %v6519_v20 = vadd.f32 %v756_v17, %v523_v43  ;;  %v5782_v17 = vld [vmem:[#allocation8 + $0x364] ss:$16 sps:$4 sm:$0xff]  }
 0x129   :  { %v758_v24 = vpop.f32.mrf.mxu0  ;;  %v6525_v28 = vpop.f32.mrf.mxu1 }
 0x12a   :  { %v6523_v27 = vadd.f32 %v758_v24, %v525_v46  ;;  %1992 = vmatpush2.bf16.msra.mxu0 %v5762_v51  ;;  %v5780_v24 = vld [vmem:[#allocation8 + $0x360] ss:$16 sps:$4 sm:$0xff]  }
 0x12b   :  { %v760_v29 = vpop.f32.mrf.mxu0  ;;  %v6537_v37 = vpop.f32.mrf.mxu1  ;;  %1993 = vmatprep.subr.bf16.mxu0 %v5770_v60 }
 0x12c   :  { %v6530_v32 = vadd.f32 %v760_v29, %v527_v49  ;;  %v5786_v29 = vld [vmem:[#allocation8 + $0x340] ss:$16 sps:$4 sm:$0xff]  }
 0x12d   :  { %v762_v38 = vpop.f32.mrf.mxu0  ;;  %v6545_v43 = vpop.f32.mrf.mxu1 }
 0x12e   :  { %v6543_v42 = vadd.f32 %v762_v38, %v6494_v52  ;;  %v5765_v52 = vld [vmem:[#allocation8 + $0x3c8] ss:$16 sps:$4 sm:$0xff]   ;;  %1994 = vmatpush2.bf16.msra.mxu0 %v5768_v2  ;;  %v5791_v38 = vld [vmem:[#allocation8 + $0x34c] ss:$16 sps:$4 sm:$0xff]  }
 0x12f   :  { %v766_v44 = vpop.f32.mrf.mxu0  ;;  %v6552_v49 = vpop.f32.mrf.mxu1  ;;  %2043 = vmatpush2.bf16.msra.mxu1 %v5765_v52  ;;  %v5800_v52 = vld [vmem:[#allocation8 + $0x304] ss:$16 sps:$4 sm:$0xff]  }
 0x130   :  { %v850_v46 = vadd.f32 %v766_v44, %v6496_v55  ;;  %2044 = vmatprep.subr.bf16.mxu1 %v5773_v61  ;;  %v5797_v44 = vld [vmem:[#allocation8 + $0x32c] ss:$16 sps:$4 sm:$0xff]  }
 0x131   :  { %v768_v50 = vpop.f32.mrf.mxu0  ;;  %v6562_v57 = vpop.f32.mrf.mxu1 }
 0x132   :  { %v6559_v54 = vadd.f32 %v6549_v45, %v850_v46  ;;  %v851_v56 = vadd.f32 %v768_v50, %v6498_v58  ;;  %v5776_v58 = vld [vmem:[#allocation8 + $0x384] ss:$16 sps:$4 sm:$0xff]   ;;  %v5795_v50 = vld [vmem:[#allocation8 + $0x328] ss:$16 sps:$4 sm:$0xff]  }
 0x133   :  { %v770_v55 = vpop.f32.mrf.mxu0  ;;  %v389_v62 = vpop.f32.mrf.mxu1  ;;  %2045 = vmatpush2.bf16.msra.mxu1 %v5771_v5  ;;  %1995 = vmatprep.subr.bf16.mxu0 %v5776_v58  ;;  %v5806_v58 = vld [vmem:[#allocation8 + $0xe4] ss:$16 sps:$4 sm:$0xff]  }
 0x134   :  { %v6565_v59 = vadd.f32 %v6556_v53, %v851_v56  ;;  %2046 = vmatprep.subr.bf16.mxu1 %v5779_v8  ;;  %1996 = vmatpush2.bf16.msra.mxu0 %v5774_v12  ;;  %v5803_v56 = vld [vmem:[#allocation8 + $0x30c] ss:$16 sps:$4 sm:$0xff]   ;;  %v5801_v62 = vld [vmem:[#allocation8 + $0x308] ss:$16 sps:$4 sm:$0xff]  }
 0x135   :  { %v771_v1 = vpop.f32.mrf.mxu0  ;;  %v390_v6 = vpop.f32.mrf.mxu1  ;;  %1997 = vmatprep.subr.bf16.mxu0 %v5782_v17  ;;  %v5809_v8 = vld [vmem:[#allocation8 + $0xec] ss:$16 sps:$4 sm:$0xff]  }
 0x136   :  { %v866_v6 = vsub.s32 2, %v6517_v18 }
 0x137   :  { %v6567_v11 = vpop.f32.mrf.mxu1  ;;  %2047 = vmatpush2.bf16.msra.mxu1 %v5777_v15  ;;  %v835_v15 = vadd.f32 %v6504_v4, %v6490_v30 }
 0x138   :  { %2048 = vmatprep.subr.bf16.mxu1 %v5785_v21  ;;  %1998 = vmatpush2.bf16.msra.mxu0 %v5780_v24  ;;  %v574_v17 = vadd.f32 %v6567_v11, %v6502_v3  ;;  %v6334_v21 = vmov 1983009808   ;;  %v876_v3 = vadd.f32 %v6549_v45, %v6500_v63  ;;  %v839_v11 = vadd.f32 %v6512_v14, %v6492_v36 }
 0x139   :  { %v6569_v16 = vpop.f32.mrf.mxu1  ;;  %1999 = vmatprep.subr.bf16.mxu0 %v5788_v33  ;;  %v939_v24 = vunpack.c.l.s4 %v6334_v21  ;;  %v877_v4 = vadd.f32 %v6556_v53, %v835_v15  ;;  %v880_v36 = vadd.f32 %v6549_v45, %v6508_v10  ;;  %v6637_v10 = vadd.f32 %v6549_v45, %v6530_v32 }
 0x13a   :  { %v881_v14 = vadd.f32 %v6556_v53, %v839_v11 }
 0x13b   :  { %v6571_v22 = vpop.f32.mrf.mxu1  ;;  %2049 = vmatpush2.bf16.msra.mxu1 %v5783_v25  ;;  %v908_v32 = vmax.f32 %v6637_v10, 0.0 }
 0x13c   :  { %2050 = vmatprep.subr.bf16.mxu1 %v5791_v38  ;;  %2000 = vmatpush2.bf16.msra.mxu0 %v5786_v29  ;;  %v576_v29 = vadd.f32 %v6569_v16, %v6506_v7  ;;  %v578_v38 = vadd.f32 %v6571_v22, %v6510_v13  ;;  %v884_v22 = vadd.f32 %v6549_v45, %v6519_v20 }
 0x13d   :  { %v6573_v26 = vpop.f32.mrf.mxu1  ;;  %2001 = vmatprep.subr.bf16.mxu0 %v5794_v39  ;;  %v940_v39 = vunpack.c.0.s8 %v939_v24 }
 0x13e   :  { %v904_v15 = vmax.f32 %v884_v22, 0.0 }
 0x13f   :  { %v583_v40 = vpop.f32.mrf.mxu1  ;;  %2051 = vmatpush2.bf16.msra.mxu1 %v5789_v34 }
 0x140   :  { %v6576_v46 = vadd.f32 %v583_v40, %v6521_v23  ;;  %2052 = vmatprep.subr.bf16.mxu1 %v5797_v44  ;;  %2002 = vmatpush2.bf16.msra.mxu0 %v5792_v48  ;;  %v5798_v23 = vld [vmem:[#allocation8 + $0x300] ss:$16 sps:$4 sm:$0xff]   ;;  %v896_v48 = vmax.f32 %v876_v3, 0.0 }
 0x141   :  { %v585_v47 = vpop.f32.mrf.mxu1  ;;  %2003 = vmatprep.subr.bf16.mxu0 %v5800_v52 }
 0x142   :  { %v6579_v51 = vadd.f32 %v585_v47, %v6525_v28 }
 0x143   :  { %v587_v55 = vpop.f32.mrf.mxu1  ;;  %2053 = vmatpush2.bf16.msra.mxu1 %v5795_v50  ;;  %v897_v50 = vmax.f32 %v877_v4, 0.0 }
 0x144   :  { %v6582_v60 = vadd.f32 %v587_v55, %v6537_v37  ;;  %2054 = vmatprep.subr.bf16.mxu1 %v5803_v56  ;;  %2004 = vmatpush2.bf16.msra.mxu0 %v5798_v23 }
 0x145   :  { %v589_v61 = vpop.f32.mrf.mxu1  ;;  %2395 = vmatprep.subr.bf16.mxu0 %v5806_v58  ;;  %v901_v58 = vmax.f32 %v881_v14, 0.0 }
 0x146   :  { %v6585_v1 = vadd.f32 %v589_v61, %v6545_v43  ;;  %v870_v43 = vsub.s32 3, %v6517_v18 }
 0x147   :  { %v593_v28 = vpop.f32.mrf.mxu1  ;;  %2055 = vmatpush2.bf16.msra.mxu1 %v5801_v62 }
 0x148   :  { %v6588_v2 = vadd.f32 %v593_v28, %v6552_v49  ;;  %2446 = vmatprep.subr.bf16.mxu1 %v5809_v8  ;;  %v6609_v30 = vrot.slane %v6535_v35, %v870_v43 }
 0x149   :  { %v595_v5 = vpop.f32.mrf.mxu1 }
 0x14a   :  { %v6591_v37 = vadd.f32 %v595_v5, %v6562_v57  ;;  %v6602_v57 = vrot.slane %v6535_v35, %v866_v6  ;;  %v580_v35 = vadd.f32 %v6573_v26, %v6514_v0  ;;  %v6629_v0 = vsub.s32 %v940_v39, %v6517_v18 }
 0x14b   :  { %v597_v12 = vpop.f32.mrf.mxu1  ;;  %v6633_v26 = vadd.f32 %v6556_v53, %v6523_v27  ;;  %v900_v5 = vmax.f32 %v880_v36, 0.0 }
 0x14d   :  { %v598_v49 = vpop.f32.mrf.mxu1  ;;  %v905_v21 = vmax.f32 %v6633_v26, 0.0 }
 0x14f   :  { %v807_v25 = vpop.f32.mrf.mxu1 }
 0x150   :  { %v836_v33 = vadd.f32 %v807_v25, %v574_v17 }
 0x151   :  { %v809_v34 = vpop.f32.mrf.mxu1 }
 0x152   :  { %v878_v7 = vadd.f32 %v6602_v57, %v836_v33  ;;  %v837_v16 = vadd.f32 %v809_v34, %v576_v29 }
 0x153   :  { %v811_v40 = vpop.f32.mrf.mxu1 }
 0x154   :  { %v898_v44 = vmax.f32 %v878_v7, 0.0  ;;  %v879_v63 = vadd.f32 %v6609_v30, %v837_v16  ;;  %v840_v47 = vadd.f32 %v811_v40, %v578_v38 }
 0x155   :  { %v813_v13 = vpop.f32.mrf.mxu1 }
 0x156   :  { %v899_v52 = vmax.f32 %v879_v63, 0.0  ;;  %v882_v56 = vadd.f32 %v6602_v57, %v840_v47  ;;  %v841_v55 = vadd.f32 %v813_v13, %v580_v35  ;;  %v916_v23 = vmax.f32 %v896_v48, %v898_v44 }
 0x157   :  { %v817_v61 = vpop.f32.mrf.mxu1 }
 0x158   :  { %v917_v62 = vmax.f32 %v897_v50, %v899_v52  ;;  %v883_v20 = vadd.f32 %v6609_v30, %v841_v55  ;;  %v844_v28 = vadd.f32 %v817_v61, %v6576_v46  ;;  %v902_v8 = vmax.f32 %v882_v56, 0.0 }
 0x159   :  { %v819_v12 = vpop.f32.mrf.mxu1  ;;  %v6647_v46 = vadd.f32 %v6556_v53, %v6543_v42 }
 0x15a   :  { %v936_v49 = vcombine.low %v916_v23, %v917_v62  ;;  %v937_v27 = vcombine.high %v916_v23, %v917_v62  ;;  %v903_v17 = vmax.f32 %v883_v20, 0.0  ;;  %v886_v45 = vadd.f32 %v6602_v57, %v844_v28 }
 0x15b   :  { %v845_v24 = vadd.f32 %v819_v12, %v6579_v51  ;;  %v821_v25 = vpop.f32.mrf.mxu1  ;;  %v918_v4 = vmax.f32 %v900_v5, %v902_v8 }
 0x15c   :  { %v944_v29 = vrot.slane %v936_v49, %v6629_v0  ;;  %v951_v33 = vrot.slane %v937_v27, %v6629_v0  ;;  %v919_v3 = vmax.f32 %v901_v58, %v903_v17  ;;  %v906_v11 = vmax.f32 %v886_v45, 0.0 }
 0x15d   :  { %v6652_v34 = vadd.f32 %v6609_v30, %v845_v24  ;;  %v6655_v38 = vadd.f32 %v821_v25, %v6582_v60  ;;  %v6657_v7 = vpop.f32.mrf.mxu1 }
 0x15e   :  { %v952_v51 = vcombine.high %v944_v29, %v944_v29  ;;  %v953_v16 = vcombine.high %v951_v33, %v951_v33  ;;  %v1022_v42 = vrot.slane %v944_v29, %v6629_v0  ;;  %v1038_v53 = vrot.slane %v951_v33, %v6629_v0 }
 0x15f   :  { %v954_v39 = vcombine.low %v918_v4, %v919_v3  ;;  %v955_v40 = vcombine.high %v918_v4, %v919_v3  ;;  %v6661_v35 = vmax.f32 %v904_v15, %v906_v11  ;;  %v907_v44 = vmax.f32 %v6652_v34, 0.0  ;;  %v6664_v63 = vpop.f32.mrf.mxu1 }
 0x160   :  { %v1023_v47 = vcombine.high %v1022_v42, %v1022_v42  ;;  %v1030_v60 = vrot.slane %v952_v51, %v6629_v0  ;;  %v1039_v48 = vcombine.high %v1038_v53, %v1038_v53  ;;  %v1046_v50 = vrot.slane %v953_v16, %v6629_v0 }
 0x161   :  { %v1177_v36 = vsel %vm1176_vm3, %v1022_v42, -inf  ;;  %v1205_v14 = vsel %vm1176_vm3, %v1038_v53, -inf  ;;  %v6671_v13 = vrot.slane %v954_v39, %v6629_v0  ;;  %v6674_v22 = vrot.slane %v955_v40, %v6629_v0  ;;  %v6676_v52 = vpop.f32.mrf.mxu1 }
 0x162   :  { %v1031_v56 = vcombine.high %v1030_v60, %v1030_v60  ;;  %v1047_v55 = vcombine.high %v1046_v50, %v1046_v50  ;;  %v1178_v61 = vrot.slane %v1177_v36, 4  ;;  %v1184_v23 = vsel %vm1176_vm3, %v1023_v47, -inf }
 0x163   :  { %v1185_v62 = vrot.slane %v1184_v23, 4  ;;  %v1191_v20 = vsel %vm1176_vm3, %v1030_v60, -inf  ;;  %v1206_v28 = vrot.slane %v1205_v14, 4  ;;  %v1212_v5 = vsel %vm1176_vm3, %v1039_v48, -inf  ;;  %v831_v58 = vpop.f32.mrf.mxu1 }
 0x164   :  { %v1179_v8 = vmax.f32 %v1177_v36, %v1178_v61  ;;  %v1192_v12 = vrot.slane %v1191_v20, 4  ;;  %v1198_v15 = vsel %vm1176_vm3, %v1031_v56, -inf  ;;  %v1213_v49 = vrot.slane %v1212_v5, 4 }
 0x165   :  { %v1186_v27 = vmax.f32 %v1184_v23, %v1185_v62  ;;  %v1199_v17 = vrot.slane %v1198_v15, 4  ;;  %v1207_v45 = vmax.f32 %v1205_v14, %v1206_v28  ;;  %v1219_v24 = vsel %vm1176_vm3, %v1046_v50, -inf  ;;  %v832_v25 = vpop.f32.mrf.mxu1 }
 0x166   :  { %v1180_v29 = vrot.slane %v1179_v8, 2  ;;  %v1193_v33 = vmax.f32 %v1191_v20, %v1192_v12  ;;  %v1214_v3 = vmax.f32 %v1212_v5, %v1213_v49  ;;  %v1220_v4 = vrot.slane %v1219_v24, 4 }
 0x167   :  { %v1187_v11 = vrot.slane %v1186_v27, 2  ;;  %v1200_v51 = vmax.f32 %v1198_v15, %v1199_v17  ;;  %v1208_v16 = vrot.slane %v1207_v45, 2  ;;  %v1226_v42 = vsel %vm1176_vm3, %v1047_v55, -inf }
 0x168   :  { %v1181_v53 = vmax.f32 %v1179_v8, %v1180_v29  ;;  %v1194_v39 = vrot.slane %v1193_v33, 2  ;;  %v1215_v40 = vrot.slane %v1214_v3, 2  ;;  %v1221_v47 = vmax.f32 %v1219_v24, %v1220_v4 }
 0x169   :  { %v1188_v60 = vmax.f32 %v1186_v27, %v1187_v11  ;;  %v1201_v48 = vrot.slane %v1200_v51, 2  ;;  %v1209_v50 = vmax.f32 %v1207_v45, %v1208_v16  ;;  %v1227_v36 = vrot.slane %v1226_v42, 4 }
 0x16a   :  { %v1182_v14 = vrot.slane %v1181_v53, 1  ;;  %v1195_v56 = vmax.f32 %v1193_v33, %v1194_v39  ;;  %v1216_v61 = vmax.f32 %v1214_v3, %v1215_v40  ;;  %v1222_v23 = vrot.slane %v1221_v47, 2 }
 0x16b   :  { %v1189_v62 = vrot.slane %v1188_v60, 1  ;;  %v1202_v20 = vmax.f32 %v1200_v51, %v1201_v48  ;;  %v1210_v28 = vrot.slane %v1209_v50, 1  ;;  %v1228_v5 = vmax.f32 %v1226_v42, %v1227_v36 }
 0x16c   :  { %v1183_v58 = vmax.f32 %v1181_v53, %v1182_v14  ;;  %v1196_v12 = vrot.slane %v1195_v56, 1  ;;  %v1217_v55 = vrot.slane %v1216_v61, 1  ;;  %v1223_v15 = vmax.f32 %v1221_v47, %v1222_v23 }
 0x16d   :  { %v1190_v8 = vmax.f32 %v1188_v60, %v1189_v62  ;;  %v1203_v49 = vrot.slane %v1202_v20, 1  ;;  %v1211_v17 = vmax.f32 %v1209_v50, %v1210_v28  ;;  %v1229_v24 = vrot.slane %v1228_v5, 2 }
 0x16e   :  { %v1197_v27 = vmax.f32 %v1195_v56, %v1196_v12  ;;  %v1218_v25 = vmax.f32 %v1216_v61, %v1217_v55  ;;  %v1224_v45 = vrot.slane %v1223_v15, 1  ;;  %v970_v29 = vcombine.high %v6671_v13, %v6671_v13 }
 0x16f   :  { %v1204_v33 = vmax.f32 %v1202_v20, %v1203_v49  ;;  %v1230_v3 = vmax.f32 %v1228_v5, %v1229_v24  ;;  %v971_v4 = vcombine.high %v6674_v22, %v6674_v22  ;;  %v1054_v11 = vrot.slane %v6671_v13, %v6629_v0 }
 0x170   :  { %v1225_v51 = vmax.f32 %v1223_v15, %v1224_v45  ;;  %v1418_v16 = vsel %vm1417_vm4, %v1197_v27, %v1183_v58  ;;  %v1062_v42 = vrot.slane %v970_v29, %v6629_v0  ;;  %v1070_v53 = vrot.slane %v6674_v22, %v6629_v0 }
 0x171   :  { %v1231_v39 = vrot.slane %v1230_v3, 1  ;;  %v1420_v40 = vsel %vm1419_vm5, %v1211_v17, %v1418_v16  ;;  %v1429_v47 = vsel %vm1417_vm4, %v1204_v33, %v1190_v8  ;;  %v1055_v60 = vcombine.high %v1054_v11, %v1054_v11 }
 0x172   :  { %v1422_v48 = vsel %vm1421_vm6, %v1225_v51, %v1420_v40  ;;  %v1430_v50 = vsel %vm1419_vm5, %v1218_v25, %v1429_v47  ;;  %v1063_v36 = vcombine.high %v1062_v42, %v1062_v42  ;;  %v1071_v13 = vcombine.high %v1070_v53, %v1070_v53 }
 0x173   :  { %v1232_v14 = vmax.f32 %v1230_v3, %v1231_v39  ;;  %v1078_v56 = vrot.slane %v971_v4, %v6629_v0  ;;  %v1233_v61 = vsel %vm1176_vm3, %v1054_v11, -inf  ;;  %v1240_v23 = vsel %vm1176_vm3, %v1055_v60, -inf }
 0x174   :  { %v1234_v22 = vrot.slane %v1233_v61, 4  ;;  %v1241_v62 = vrot.slane %v1240_v23, 4  ;;  %v1247_v20 = vsel %vm1176_vm3, %v1062_v42, -inf  ;;  %v1254_v28 = vsel %vm1176_vm3, %v1063_v36, -inf }
 0x175   :  { %v1431_v5 = vsel %vm1421_vm6, %v1232_v14, %v1430_v50  ;;  %v1079_v58 = vcombine.high %v1078_v56, %v1078_v56  ;;  %v1248_v12 = vrot.slane %v1247_v20, 4  ;;  %v1255_v55 = vrot.slane %v1254_v28, 4 }
 0x176   :  { %v1235_v15 = vmax.f32 %v1233_v61, %v1234_v22  ;;  %v1242_v8 = vmax.f32 %v1240_v23, %v1241_v62  ;;  %v1261_v49 = vsel %vm1176_vm3, %v1070_v53, -inf  ;;  %v1268_v17 = vsel %vm1176_vm3, %v1071_v13, -inf }
 0x177   :  { %v1249_v24 = vmax.f32 %v1247_v20, %v1248_v12  ;;  %v1256_v27 = vmax.f32 %v1254_v28, %v1255_v55  ;;  %v1262_v25 = vrot.slane %v1261_v49, 4  ;;  %v1269_v45 = vrot.slane %v1268_v17, 4 }
 0x178   :  { %v1236_v29 = vrot.slane %v1235_v15, 2  ;;  %v1243_v33 = vrot.slane %v1242_v8, 2  ;;  %v1275_v3 = vsel %vm1176_vm3, %v1078_v56, -inf  ;;  %v1282_v4 = vsel %vm1176_vm3, %v1079_v58, -inf }
 0x179   :  { %v1250_v11 = vrot.slane %v1249_v24, 2  ;;  %v1257_v51 = vrot.slane %v1256_v27, 2  ;;  %v1263_v16 = vmax.f32 %v1261_v49, %v1262_v25  ;;  %v1270_v42 = vmax.f32 %v1268_v17, %v1269_v45 }
 0x17a   :  { %v1237_v39 = vmax.f32 %v1235_v15, %v1236_v29  ;;  %v1244_v53 = vmax.f32 %v1242_v8, %v1243_v33  ;;  %v1276_v40 = vrot.slane %v1275_v3, 4  ;;  %v1283_v47 = vrot.slane %v1282_v4, 4 }
 0x17b   :  { %v1251_v60 = vmax.f32 %v1249_v24, %v1250_v11  ;;  %v1258_v50 = vmax.f32 %v1256_v27, %v1257_v51  ;;  %v1264_v36 = vrot.slane %v1263_v16, 2  ;;  %v1271_v13 = vrot.slane %v1270_v42, 2 }
 0x17c   :  { %v1238_v14 = vrot.slane %v1237_v39, 1  ;;  %v1245_v61 = vrot.slane %v1244_v53, 1  ;;  %v1277_v23 = vmax.f32 %v1275_v3, %v1276_v40  ;;  %v1284_v22 = vmax.f32 %v1282_v4, %v1283_v47 }
 0x17d   :  { %v1252_v56 = vrot.slane %v1251_v60, 1  ;;  %v1259_v62 = vrot.slane %v1258_v50, 1  ;;  %v1265_v20 = vmax.f32 %v1263_v16, %v1264_v36  ;;  %v1272_v28 = vmax.f32 %v1270_v42, %v1271_v13 }
 0x17e   :  { %v1239_v58 = vmax.f32 %v1237_v39, %v1238_v14  ;;  %v1246_v12 = vmax.f32 %v1244_v53, %v1245_v61  ;;  %v1278_v55 = vrot.slane %v1277_v23, 2  ;;  %v1285_v49 = vrot.slane %v1284_v22, 2 }
 0x17f   :  { %v1253_v15 = vmax.f32 %v1251_v60, %v1252_v56  ;;  %v1260_v8 = vmax.f32 %v1258_v50, %v1259_v62  ;;  %v1266_v17 = vrot.slane %v1265_v20, 1  ;;  %v1273_v25 = vrot.slane %v1272_v28, 1 }
 0x180   :  { %v1279_v24 = vmax.f32 %v1277_v23, %v1278_v55  ;;  %v1286_v27 = vmax.f32 %v1284_v22, %v1285_v49  ;;  %v1424_v45 = vsel %vm1423_vm7, %v1239_v58, %v1422_v48  ;;  %v1432_v29 = vsel %vm1423_vm7, %v1246_v12, %v1431_v5 }
 0x181   :  { %v1267_v33 = vmax.f32 %v1265_v20, %v1266_v17  ;;  %v1274_v3 = vmax.f32 %v1272_v28, %v1273_v25  ;;  %v1426_v4 = vsel %vm1425_vm8, %v1253_v15, %v1424_v45  ;;  %v1433_v11 = vsel %vm1425_vm8, %v1260_v8, %v1432_v29 }
 0x182   :  { %v1280_v51 = vrot.slane %v1279_v24, 1  ;;  %v1287_v16 = vrot.slane %v1286_v27, 1  ;;  %v921_v42 = vmax.f32 %v905_v21, %v907_v44  ;;  %v890_v39 = vadd.f32 %v6602_v57, %v6655_v38 }
 0x183   :  { %v1428_v48 = vsel %vm1427_vm9, %v1267_v33, %v1426_v4  ;;  %v1434_v5 = vsel %vm1427_vm9, %v1274_v3, %v1433_v11  ;;  %v849_v53 = vadd.f32 %v6657_v7, %v6585_v1  ;;  %v852_v40 = vadd.f32 %v6664_v63, %v6588_v2 }
 0x184   :  { %v1281_v47 = vmax.f32 %v1279_v24, %v1280_v51  ;;  %v1288_v60 = vmax.f32 %v1286_v27, %v1287_v16  ;;  %1439 = vst [vmem:[#allocation2 + $0x28] sm:$0xfe] %v1428_v48  ;;  %1440 = vst [vmem:[#allocation2 + $0x10] sm:$0xfe] %v1434_v5  ;;  %v972_v26 = vcombine.low %v6661_v35, %v921_v42  ;;  %v910_v34 = vmax.f32 %v890_v39, 0.0 }
 0x185   :  { %v973_v21 = vcombine.high %v6661_v35, %v921_v42  ;;  %v891_v38 = vadd.f32 %v6609_v30, %v849_v53  ;;  %v894_v44 = vadd.f32 %v6602_v57, %v852_v40  ;;  %v853_v50 = vadd.f32 %v6676_v52, %v6591_v37 }
 0x186   :  { %v909_v1 = vmax.f32 %v6647_v46, 0.0  ;;  %v912_v2 = vmax.f32 %v6559_v54, 0.0  ;;  %1441 = vst [vmem:[#allocation2 + $0x8] sm:$0x1] %v1281_v47  ;;  %1442 = vst [vmem:[#allocation2] sm:$0x1] %v1288_v60  ;;  %v980_v7 = vrot.slane %v972_v26, %v6629_v0  ;;  %v922_v35 = vmax.f32 %v908_v32, %v910_v34 }
 0x187   :  { %v987_v63 = vrot.slane %v973_v21, %v6629_v0  ;;  %v911_v36 = vmax.f32 %v891_v38, 0.0  ;;  %v914_v13 = vmax.f32 %v894_v44, 0.0  ;;  %v895_v57 = vadd.f32 %v6609_v30, %v853_v50 }
 0x188   :  { %v988_v14 = vcombine.high %v980_v7, %v980_v7  ;;  %v913_v46 = vmax.f32 %v6565_v59, 0.0 }
 0x189   :  { %v989_v61 = vcombine.high %v987_v63, %v987_v63  ;;  %v1094_v37 = vrot.slane %v987_v63, %v6629_v0  ;;  %v923_v54 = vmax.f32 %v909_v1, %v911_v36  ;;  %v6739_v52 = vmax.f32 %v912_v2, %v914_v13 }
 0x18a   :  { %v915_v23 = vmax.f32 %v895_v57, 0.0  ;;  %v1086_v22 = vrot.slane %v988_v14, %v6629_v0 }
 0x18b   :  { %v1095_v56 = vcombine.high %v1094_v37, %v1094_v37  ;;  %v1102_v10 = vrot.slane %v989_v61, %v6629_v0  ;;  %v1303_v32 = vsel %vm1176_vm3, %v1094_v37, -inf  ;;  %v990_v20 = vcombine.low %v922_v35, %v923_v54 }
 0x18c   :  { %v1304_v62 = vrot.slane %v1303_v32, 4  ;;  %v991_v30 = vcombine.high %v922_v35, %v923_v54  ;;  %v6744_v28 = vmax.f32 %v913_v46, %v915_v23  ;;  %v1087_v58 = vcombine.high %v1086_v22, %v1086_v22 }
 0x18d   :  { %v1103_v12 = vcombine.high %v1102_v10, %v1102_v10  ;;  %v1289_v59 = vsel %vm1176_vm3, %v1086_v22, -inf  ;;  %v1310_v55 = vsel %vm1176_vm3, %v1095_v56, -inf  ;;  %v1317_v17 = vsel %vm1176_vm3, %v1102_v10, -inf }
 0x18e   :  { %v1290_v49 = vrot.slane %v1289_v59, 4  ;;  %v1305_v15 = vmax.f32 %v1303_v32, %v1304_v62  ;;  %v1311_v8 = vrot.slane %v1310_v55, 4  ;;  %v1296_v25 = vsel %vm1176_vm3, %v1087_v58, -inf }
 0x18f   :  { %v1318_v24 = vrot.slane %v1317_v17, 4  ;;  %v1324_v27 = vsel %vm1176_vm3, %v1103_v12, -inf  ;;  %v998_v45 = vrot.slane %v990_v20, %v6629_v0  ;;  %v1297_v33 = vrot.slane %v1296_v25, 4 }
 0x190   :  { %v1291_v29 = vmax.f32 %v1289_v59, %v1290_v49  ;;  %v1306_v3 = vrot.slane %v1305_v15, 2  ;;  %v1312_v4 = vmax.f32 %v1310_v55, %v1311_v8  ;;  %v1325_v51 = vrot.slane %v1324_v27, 4 }
 0x191   :  { %v1319_v11 = vmax.f32 %v1317_v17, %v1318_v24  ;;  %v1005_v16 = vrot.slane %v991_v30, %v6629_v0  ;;  %v1006_v42 = vcombine.high %v998_v45, %v998_v45  ;;  %v1298_v48 = vmax.f32 %v1296_v25, %v1297_v33 }
 0x192   :  { %v1292_v39 = vrot.slane %v1291_v29, 2  ;;  %v1307_v5 = vmax.f32 %v1305_v15, %v1306_v3  ;;  %v1313_v53 = vrot.slane %v1312_v4, 2  ;;  %v1326_v47 = vmax.f32 %v1324_v27, %v1325_v51 }
 0x193   :  { %v1320_v40 = vrot.slane %v1319_v11, 2  ;;  %v1007_v60 = vcombine.high %v1005_v16, %v1005_v16  ;;  %v1110_v26 = vrot.slane %v998_v45, %v6629_v0  ;;  %v1299_v34 = vrot.slane %v1298_v48, 2 }
 0x194   :  { %v1293_v21 = vmax.f32 %v1291_v29, %v1292_v39  ;;  %v1308_v38 = vrot.slane %v1307_v5, 1  ;;  %v1314_v44 = vmax.f32 %v1312_v4, %v1313_v53  ;;  %v1327_v1 = vrot.slane %v1326_v47, 2 }
 0x195   :  { %v1321_v50 = vmax.f32 %v1319_v11, %v1320_v40  ;;  %v1111_v2 = vcombine.high %v1110_v26, %v1110_v26  ;;  %v1118_v7 = vrot.slane %v1006_v42, %v6629_v0  ;;  %v1300_v35 = vmax.f32 %v1298_v48, %v1299_v34 }
 0x196   :  { %v1294_v63 = vrot.slane %v1293_v21, 1  ;;  %v1309_v36 = vmax.f32 %v1307_v5, %v1308_v38  ;;  %v1315_v13 = vrot.slane %v1314_v44, 1  ;;  %v1328_v14 = vmax.f32 %v1326_v47, %v1327_v1 }
 0x197   :  { %v1322_v57 = vrot.slane %v1321_v50, 1  ;;  %v1119_v61 = vcombine.high %v1118_v7, %v1118_v7  ;;  %v1126_v37 = vrot.slane %v1005_v16, %v6629_v0  ;;  %v1301_v54 = vrot.slane %v1300_v35, 1 }
 0x198   :  { %v1295_v46 = vmax.f32 %v1293_v21, %v1294_v63  ;;  %v1316_v23 = vmax.f32 %v1314_v44, %v1315_v13  ;;  %v1134_v22 = vrot.slane %v1007_v60, %v6629_v0  ;;  %v1329_v10 = vrot.slane %v1328_v14, 1 }
 0x199   :  { %v1323_v56 = vmax.f32 %v1321_v50, %v1322_v57  ;;  %v1127_v32 = vcombine.high %v1126_v37, %v1126_v37  ;;  %v1331_v62 = vsel %vm1176_vm3, %v1110_v26, -inf  ;;  %v1302_v20 = vmax.f32 %v1300_v35, %v1301_v54 }
 0x19a   :  { %v1459_v30 = vsel %vm1421_vm6, %v1309_v36, %v1295_v46  ;;  %v1135_v58 = vcombine.high %v1134_v22, %v1134_v22  ;;  %v1332_v12 = vrot.slane %v1331_v62, 4  ;;  %v1330_v59 = vmax.f32 %v1328_v14, %v1329_v10 }
 0x19b   :  { %v1460_v55 = vsel %vm1423_vm7, %v1323_v56, %v1459_v30  ;;  %v1338_v49 = vsel %vm1176_vm3, %v1111_v2, -inf  ;;  %v1345_v15 = vsel %vm1176_vm3, %v1118_v7, -inf  ;;  %v1463_v8 = vsel %vm1421_vm6, %v1316_v23, %v1302_v20 }
 0x19c   :  { %v1333_v17 = vmax.f32 %v1331_v62, %v1332_v12  ;;  %v1339_v25 = vrot.slane %v1338_v49, 4  ;;  %v1346_v24 = vrot.slane %v1345_v15, 4  ;;  %v1464_v27 = vsel %vm1423_vm7, %v1330_v59, %v1463_v8 }
 0x19d   :  { %v1352_v45 = vsel %vm1176_vm3, %v1119_v61, -inf  ;;  %v1359_v29 = vsel %vm1176_vm3, %v1126_v37, -inf  ;;  %v1366_v51 = vsel %vm1176_vm3, %v1127_v32, -inf  ;;  %v1373_v16 = vsel %vm1176_vm3, %v1134_v22, -inf }
 0x19e   :  { %v1334_v33 = vrot.slane %v1333_v17, 2  ;;  %v1340_v3 = vmax.f32 %v1338_v49, %v1339_v25  ;;  %v1347_v4 = vmax.f32 %v1345_v15, %v1346_v24  ;;  %v1353_v11 = vrot.slane %v1352_v45, 4 }
 0x19f   :  { %v1380_v42 = vsel %vm1176_vm3, %v1135_v58, -inf  ;;  %v1360_v40 = vrot.slane %v1359_v29, 4  ;;  %v1374_v47 = vrot.slane %v1373_v16, 4  ;;  %v1367_v44 = vrot.slane %v1366_v51, 4 }
 0x1a0   :  { %v1335_v39 = vmax.f32 %v1333_v17, %v1334_v33  ;;  %v1341_v48 = vrot.slane %v1340_v3, 2  ;;  %v1348_v5 = vrot.slane %v1347_v4, 2  ;;  %v1354_v53 = vmax.f32 %v1352_v45, %v1353_v11 }
 0x1a1   :  { %v1381_v60 = vrot.slane %v1380_v42, 4  ;;  %v1375_v50 = vmax.f32 %v1373_v16, %v1374_v47  ;;  %v1361_v35 = vmax.f32 %v1359_v29, %v1360_v40  ;;  %v1368_v37 = vmax.f32 %v1366_v51, %v1367_v44  ;;  %v1481_v44 = vld [vmem:[#allocation2 + $0x10] sm:$0xff] }
 0x1a2   :  { %v1336_v26 = vrot.slane %v1335_v39, 1  ;;  %v1342_v21 = vmax.f32 %v1340_v3, %v1341_v48  ;;  %v1349_v34 = vmax.f32 %v1347_v4, %v1348_v5  ;;  %v1355_v38 = vrot.slane %v1354_v53, 2 }
 0x1a3   :  { %v1382_v36 = vmax.f32 %v1380_v42, %v1381_v60  ;;  %v1376_v46 = vrot.slane %v1375_v50, 2  ;;  %v1008_v56 = vcombine.low %v6739_v52, %v6744_v28  ;;  %v1362_v10 = vrot.slane %v1361_v35, 2 }
 0x1a4   :  { %v1337_v1 = vmax.f32 %v1335_v39, %v1336_v26  ;;  %v1343_v2 = vrot.slane %v1342_v21, 1  ;;  %v1350_v7 = vrot.slane %v1349_v34, 1  ;;  %v1356_v63 = vmax.f32 %v1354_v53, %v1355_v38 }
 0x1a5   :  { %v1383_v32 = vrot.slane %v1382_v36, 2  ;;  %v1015_v20 = vrot.slane %v1008_v56, %v6629_v0  ;;  %v1369_v30 = vrot.slane %v1368_v37, 2  ;;  %v1377_v58 = vmax.f32 %v1375_v50, %v1376_v46 }
 0x1a6   :  { %v1344_v13 = vmax.f32 %v1342_v21, %v1343_v2  ;;  %v1351_v57 = vmax.f32 %v1349_v34, %v1350_v7  ;;  %v1357_v14 = vrot.slane %v1356_v63, 1  ;;  %v1461_v61 = vsel %vm1425_vm8, %v1337_v1, %v1460_v55  ;;  %v1480_v1 = vld [vmem:[#allocation2 + $0x28] sm:$0xff] }
 0x1a7   :  { %v1142_v12 = vrot.slane %v1015_v20, %v6629_v0  ;;  %v1363_v59 = vmax.f32 %v1361_v35, %v1362_v10  ;;  %v1384_v55 = vmax.f32 %v1382_v36, %v1383_v32  ;;  %v1370_v17 = vmax.f32 %v1368_v37, %v1369_v30  ;;  %v5804_v30 = vld [vmem:[#allocation8 + $0xe0] ss:$16 sps:$4 sm:$0xff]  }
 0x1a8   :  { %v1358_v54 = vmax.f32 %v1356_v63, %v1357_v14  ;;  %v1462_v23 = vsel %vm1427_vm9, %v1351_v57, %v1461_v61  ;;  %v1465_v22 = vsel %vm1425_vm8, %v1344_v13, %v1464_v27  ;;  %v1378_v52 = vrot.slane %v1377_v58, 1 }
 0x1a9   :  { %1476 = vst [vmem:[#allocation2 + $0x8] sm:$0xf8] %v1462_v23  ;;  %v1143_v49 = vcombine.high %v1142_v12, %v1142_v12  ;;  %v1387_v15 = vsel %vm1176_vm3, %v1142_v12, -inf  ;;  %v1364_v27 = vrot.slane %v1363_v59, 1  ;;  %v1385_v45 = vrot.slane %v1384_v55, 1 }
 0x1aa   :  { %v1466_v62 = vsel %vm1427_vm9, %v1358_v54, %v1465_v22  ;;  %v1388_v8 = vrot.slane %v1387_v15, 4  ;;  %v1371_v3 = vrot.slane %v1370_v17, 1  ;;  %v1379_v4 = vmax.f32 %v1377_v58, %v1378_v52  ;;  %v5807_v58 = vld [vmem:[#allocation8 + $0xe8] ss:$16 sps:$4 sm:$0xff]   ;;  %v5818_v52 = vld [vmem:[#allocation8 + $0xa4] ss:$16 sps:$4 sm:$0xff]  }
 0x1ab   :  { %1477 = vst [vmem:[#allocation2] sm:$0xf8] %v1466_v62  ;;  %v1394_v28 = vsel %vm1176_vm3, %v1143_v49, -inf  ;;  %v1365_v16 = vmax.f32 %v1363_v59, %v1364_v27  ;;  %v1386_v42 = vmax.f32 %v1384_v55, %v1385_v45  ;;  %v5812_v49 = vld [vmem:[#allocation8 + $0xc4] ss:$16 sps:$4 sm:$0xff]  }
 0x1ac   :  { %v1389_v25 = vmax.f32 %v1387_v15, %v1388_v8  ;;  %v1395_v24 = vrot.slane %v1394_v28, 4  ;;  %v1372_v5 = vmax.f32 %v1370_v17, %v1371_v3  ;;  %v5815_v15 = vld [vmem:[#allocation8 + $0xcc] ss:$16 sps:$4 sm:$0xff]   ;;  %v5810_v8 = vld [vmem:[#allocation8 + $0xc0] ss:$16 sps:$4 sm:$0xff]  }
 0x1ad   :  { %v1468_v53 = vsel %vm1467_vm10, %v1379_v4, %v1365_v16  ;;  %v5813_v17 = vld [vmem:[#allocation8 + $0xc8] ss:$16 sps:$4 sm:$0xff]   ;;  %v5822_v3 = vld [vmem:[#allocation8 + $0x80] ss:$16 sps:$4 sm:$0xff]  }
 0x1ae   :  { %v1390_v29 = vrot.slane %v1389_v25, 2  ;;  %v1396_v33 = vmax.f32 %v1394_v28, %v1395_v24  ;;  %v1470_v26 = vsel %vm1467_vm10, %v1386_v42, %v1372_v5  ;;  %v5821_v28 = vld [vmem:[#allocation8 + $0xac] ss:$16 sps:$4 sm:$0xff]   ;;  %v5816_v24 = vld [vmem:[#allocation8 + $0xa0] ss:$16 sps:$4 sm:$0xff]  }
 0x1af   :  { %v5819_v27 = vld [vmem:[#allocation8 + $0xa8] ss:$16 sps:$4 sm:$0xff]   ;;  %v5828_v16 = vld [vmem:[#allocation8 + $0x60] ss:$16 sps:$4 sm:$0xff]  }
 0x1b0   :  { %v1391_v11 = vmax.f32 %v1389_v25, %v1390_v29  ;;  %v1397_v51 = vrot.slane %v1396_v33, 2  ;;  %v1482_v21 = vld [vmem:[#allocation2 + $0x8] sm:$0xff]  ;;  %v5824_v29 = vld [vmem:[#allocation8 + $0x84] ss:$16 sps:$4 sm:$0xff]   ;;  %v5834_v5 = vld [vmem:[#allocation8 + $0x40] ss:$16 sps:$4 sm:$0xff]  }
 0x1b1   :  { %v6785_v7 = vpack.c.bf16 %v1482_v21, %v1480_v1  ;;  %v5825_v4 = vld [vmem:[#allocation8 + $0x88] ss:$16 sps:$4 sm:$0xff]   ;;  %v5848_v21 = vld [vmem:[#allocation8 + $0x4] ss:$16 sps:$4 sm:$0xff]  }
 0x1b2   :  { %v1392_v39 = vrot.slane %v1391_v11, 1  ;;  %v1398_v48 = vmax.f32 %v1396_v33, %v1397_v51  ;;  %v1483_v60 = vld [vmem:[#allocation2] sm:$0xff]  ;;  %v5827_v33 = vld [vmem:[#allocation8 + $0x8c] ss:$16 sps:$4 sm:$0xff]   ;;  %v5831_v42 = vld [vmem:[#allocation8 + $0x68] ss:$16 sps:$4 sm:$0xff]  }
 0x1b3   :  { %v6782_v50 = vpack.c.bf16 %v1483_v60, %v1481_v44  ;;  %v1622_v35 = vshll.u32 %v6785_v7, 16  ;;  %v1620_v23 = vshrl.u32 %v6785_v7, 16  ;;  %v5833_v51 = vld [vmem:[#allocation8 + $0x6c] ss:$16 sps:$4 sm:$0xff]   ;;  %v5840_v60 = vld [vmem:[#allocation8 + $0x20] ss:$16 sps:$4 sm:$0xff]  }
 0x1b4   :  { %v1393_v40 = vmax.f32 %v1391_v11, %v1392_v39  ;;  %v1399_v47 = vrot.slane %v1398_v48, 1  ;;  %v5830_v11 = vld [vmem:[#allocation8 + $0x64] ss:$16 sps:$4 sm:$0xff]   ;;  %v5849_v44 = vld [vmem:[#allocation8 + $0x8] ss:$16 sps:$4 sm:$0xff]  }
 0x1b5   :  { %v1634_v63 = vshll.u32 %v6782_v50, 16  ;;  %v1624_v61 = vrot.slane %v1622_v35, 1  ;;  %v1632_v46 = vshrl.u32 %v6782_v50, 16  ;;  %v5836_v39 = vld [vmem:[#allocation8 + $0x44] ss:$16 sps:$4 sm:$0xff]  }
 0x1b6   :  { %v1400_v34 = vmax.f32 %v1398_v48, %v1399_v47  ;;  %v1469_v38 = vsel %vm1417_vm4, %v1393_v40, %v1468_v53  ;;  %v5839_v48 = vld [vmem:[#allocation8 + $0x4c] ss:$16 sps:$4 sm:$0xff]   ;;  %v5837_v53 = vld [vmem:[#allocation8 + $0x48] ss:$16 sps:$4 sm:$0xff]   ;;  %v5842_v40 = vld [vmem:[#allocation8 + $0x24] ss:$16 sps:$4 sm:$0xff]  }
 0x1b7   :  { %1478 = vst [vmem:[#allocation2 + $0x18] sm:$0x7] %v1469_v38  ;;  %v1636_v13 = vrot.slane %v1634_v63, 1  ;;  %v1625_v10 = vor.u32 %v1624_v61, %v1620_v23  ;;  %v5845_v47 = vld [vmem:[#allocation8 + $0x2c] ss:$16 sps:$4 sm:$0xff]  }
 0x1b8   :  { %v1471_v2 = vsel %vm1417_vm4, %v1400_v34, %v1470_v26  ;;  %v5843_v26 = vld [vmem:[#allocation8 + $0x28] ss:$16 sps:$4 sm:$0xff]   ;;  %v5851_v34 = vld [vmem:[#allocation8 + $0xc] ss:$16 sps:$4 sm:$0xff]   ;;  %v5846_v38 = vld [vmem:[#allocation8] ss:$16 sps:$4 sm:$0xff]  }
 0x1b9   :  { %1479 = vst [vmem:[#allocation2 + $0x20] sm:$0x7] %v1471_v2  ;;  %v1637_v22 = vor.u32 %v1636_v13, %v1632_v46  ;;  %v5854_v1 = vld [vmem:[#allocation8 + $0x1e4] ss:$16 sps:$4 sm:$0xff]   ;;  %v5857_v2 = vld [vmem:[#allocation8 + $0x1ec] ss:$16 sps:$4 sm:$0xff]  }
 0x1ba   :  { %v5852_v63 = vld [vmem:[#allocation8 + $0x1e0] ss:$16 sps:$4 sm:$0xff]   ;;  %v5855_v35 = vld [vmem:[#allocation8 + $0x1e8] ss:$16 sps:$4 sm:$0xff]   ;;  %v5863_v13 = vld [vmem:[#allocation8 + $0x1cc] ss:$16 sps:$4 sm:$0xff]  }
 0x1bb   :  { %v5861_v61 = vld [vmem:[#allocation8 + $0x1c8] ss:$16 sps:$4 sm:$0xff]   ;;  %v5866_v46 = vld [vmem:[#allocation8 + $0x1a4] ss:$16 sps:$4 sm:$0xff]   ;;  %v5864_v23 = vld [vmem:[#allocation8 + $0x1a0] ss:$16 sps:$4 sm:$0xff]  }
 0x1be   :  { %v1484_v36 = vld [vmem:[#allocation2 + $0x18] sm:$0x3f] }
 0x1bf   :  { %v6789_v57 = vpack.c.bf16 %v1484_v36, %v1484_v36  ;;  %v5860_v36 = vld [vmem:[#allocation8 + $0x1c4] ss:$16 sps:$4 sm:$0xff]  }
 0x1c0   :  { %v1485_v14 = vld [vmem:[#allocation2 + $0x20] sm:$0x3f] }
 0x1c1   :  { %v6791_v37 = vpack.c.bf16 %v1485_v14, %v1485_v14  ;;  %v1627_v54 = vshll.u32 %v6789_v57, 16  ;;  %v1643_v25 = vshrl.u32 %v6789_v57, 16  ;;  %v5858_v14 = vld [vmem:[#allocation8 + $0x1c0] ss:$16 sps:$4 sm:$0xff]  }
 0x1c3   :  { %v1639_v56 = vshll.u32 %v6791_v37, 16  ;;  %v1629_v32 = vrot.slane %v1627_v54, 1  ;;  %v1646_v20 = vshrl.u32 %v6791_v37, 16  ;;  %v5869_v54 = vld [vmem:[#allocation8 + $0x1ac] ss:$16 sps:$4 sm:$0xff]  }
 0x1c5   :  { %v1641_v62 = vrot.slane %v1639_v56, 1  ;;  %v1630_v55 = vsel %vm156_vm0, %v1625_v10, %v1629_v32  ;;  %v1645_v45 = vor.u32 %v1643_v25, %v1629_v32  ;;  %v5872_v56 = vld [vmem:[#allocation8 + $0x184] ss:$16 sps:$4 sm:$0xff]   ;;  %v5875_v10 = vld [vmem:[#allocation8 + $0x18c] ss:$16 sps:$4 sm:$0xff]  }
 0x1c6   :  { %v5870_v32 = vld [vmem:[#allocation8 + $0x180] ss:$16 sps:$4 sm:$0xff]   ;;  %v5896_v25 = vld [vmem:[#allocation8 + $0x104] ss:$16 sps:$4 sm:$0xff]  }
 0x1c7   :  { %v1642_v12 = vsel %vm156_vm0, %v1637_v22, %v1641_v62  ;;  %v1648_v59 = vor.u32 %v1646_v20, %v1641_v62  ;;  %v5867_v22 = vld [vmem:[#allocation8 + $0x1a8] ss:$16 sps:$4 sm:$0xff]   ;;  %v5878_v20 = vld [vmem:[#allocation8 + $0x164] ss:$16 sps:$4 sm:$0xff]  }
 0x1c8   :  { %2005 = vmatprep.mubr.bf16.mxu0 %v1642_v12  ;;  %2056 = vmatprep.mubr.bf16.mxu1 %v1642_v12  ;;  %v5873_v62 = vld [vmem:[#allocation8 + $0x188] ss:$16 sps:$4 sm:$0xff]  }
 0x1c9   :  { %2006 = vmatmul.mubr.bf16.vlgmr.msra.gmra.mxu0 %v1630_v55  ;;  %2057 = vmatmul.mubr.bf16.vlgmr.msra.gmra.mxu1 %v1630_v55  ;;  %v5879_v12 = vld [vmem:[#allocation8 + $0x168] ss:$16 sps:$4 sm:$0xff]   ;;  %v5887_v55 = vld [vmem:[#allocation8 + $0x14c] ss:$16 sps:$4 sm:$0xff]  }
 0x1ca   :  { %2396 = vmatpush1.bf16.msra.mxu0 %v5804_v30  ;;  %2447 = vmatpush1.bf16.msra.mxu1 %v5807_v58  ;;  %v5881_v30 = vld [vmem:[#allocation8 + $0x16c] ss:$16 sps:$4 sm:$0xff]   ;;  %v5876_v58 = vld [vmem:[#allocation8 + $0x160] ss:$16 sps:$4 sm:$0xff]  }
 0x1cb   :  { %2015 = vmatprep.mubr.bf16.mxu0 %v1648_v59  ;;  %2066 = vmatprep.mubr.bf16.mxu1 %v1648_v59  ;;  %v5884_v59 = vld [vmem:[#allocation8 + $0x144] ss:$16 sps:$4 sm:$0xff]  }
 0x1cc   :  { %2397 = vmatprep.subr.bf16.mxu0 %v5812_v49  ;;  %2448 = vmatprep.subr.bf16.mxu1 %v5815_v15  ;;  %v5882_v49 = vld [vmem:[#allocation8 + $0x140] ss:$16 sps:$4 sm:$0xff]   ;;  %v5885_v15 = vld [vmem:[#allocation8 + $0x148] ss:$16 sps:$4 sm:$0xff]  }
 0x1ce   :  { %2398 = vmatpush1.bf16.msra.mxu0 %v5810_v8  ;;  %2449 = vmatpush1.bf16.msra.mxu1 %v5813_v17  ;;  %v5890_v8 = vld [vmem:[#allocation8 + $0x124] ss:$16 sps:$4 sm:$0xff]   ;;  %v5893_v17 = vld [vmem:[#allocation8 + $0x12c] ss:$16 sps:$4 sm:$0xff]  }
 0x1cf   :  { %2399 = vmatprep.subr.bf16.mxu0 %v5818_v52  ;;  %2450 = vmatprep.subr.bf16.mxu1 %v5821_v28  ;;  %v5888_v52 = vld [vmem:[#allocation8 + $0x120] ss:$16 sps:$4 sm:$0xff]   ;;  %v5891_v28 = vld [vmem:[#allocation8 + $0x128] ss:$16 sps:$4 sm:$0xff]  }
 0x1d1   :  { %2016 = vmatmul.mubr.bf16.gmra.mxu0 %v1645_v45  ;;  %2067 = vmatmul.mubr.bf16.gmra.mxu1 %v1645_v45  ;;  %v5897_v45 = vld [vmem:[#allocation8 + $0x108] ss:$16 sps:$4 sm:$0xff]  }
 0x1d2   :  { %2400 = vmatpush1.bf16.msra.mxu0 %v5816_v24  ;;  %2451 = vmatpush1.bf16.msra.mxu1 %v5819_v27  ;;  %v5899_v24 = vld [vmem:[#allocation8 + $0x10c] ss:$16 sps:$4 sm:$0xff]   ;;  %v5894_v27 = vld [vmem:[#allocation8 + $0x100] ss:$16 sps:$4 sm:$0xff]  }
 0x1d3   :  { %2427 = vmatprep.mubr.bf16.mxu0 %v6782_v50  ;;  %2478 = vmatprep.mubr.bf16.mxu1 %v6782_v50 }
 0x1d4   :  { %2401 = vmatprep.subr.bf16.mxu0 %v5824_v29  ;;  %2452 = vmatprep.subr.bf16.mxu1 %v5827_v33  ;;  %v5902_v29 = vld [vmem:[#allocation8 + $0x4e4] ss:$16 sps:$4 sm:$0xff]   ;;  %v5905_v33 = vld [vmem:[#allocation8 + $0x4ec] ss:$16 sps:$4 sm:$0xff]  }
 0x1d6   :  { %2402 = vmatpush1.bf16.msra.mxu0 %v5822_v3  ;;  %2453 = vmatpush1.bf16.msra.mxu1 %v5825_v4  ;;  %v5900_v3 = vld [vmem:[#allocation8 + $0x4e0] ss:$16 sps:$4 sm:$0xff]   ;;  %v5903_v4 = vld [vmem:[#allocation8 + $0x4e8] ss:$16 sps:$4 sm:$0xff]  }
 0x1d7   :  { %2403 = vmatprep.subr.bf16.mxu0 %v5830_v11  ;;  %2454 = vmatprep.subr.bf16.mxu1 %v5833_v51  ;;  %v5908_v11 = vld [vmem:[#allocation8 + $0x4c4] ss:$16 sps:$4 sm:$0xff]   ;;  %v5911_v51 = vld [vmem:[#allocation8 + $0x4cc] ss:$16 sps:$4 sm:$0xff]  }
 0x1da   :  { %2404 = vmatpush1.bf16.msra.mxu0 %v5828_v16  ;;  %2455 = vmatpush1.bf16.msra.mxu1 %v5831_v42  ;;  %v5906_v16 = vld [vmem:[#allocation8 + $0x4c0] ss:$16 sps:$4 sm:$0xff]   ;;  %v5909_v42 = vld [vmem:[#allocation8 + $0x4c8] ss:$16 sps:$4 sm:$0xff]  }
 0x1db   :  { %2405 = vmatprep.subr.bf16.mxu0 %v5836_v39  ;;  %2456 = vmatprep.subr.bf16.mxu1 %v5839_v48  ;;  %v5914_v39 = vld [vmem:[#allocation8 + $0x4a4] ss:$16 sps:$4 sm:$0xff]   ;;  %v5917_v48 = vld [vmem:[#allocation8 + $0x4ac] ss:$16 sps:$4 sm:$0xff]  }
 0x1de   :  { %2406 = vmatpush1.bf16.msra.mxu0 %v5834_v5  ;;  %2457 = vmatpush1.bf16.msra.mxu1 %v5837_v53  ;;  %v6808_v5 = vrot.slane %v6791_v37, 1  ;;  %v5912_v53 = vld [vmem:[#allocation8 + $0x4a0] ss:$16 sps:$4 sm:$0xff]  }
 0x1df   :  { %2407 = vmatprep.subr.bf16.mxu0 %v5842_v40  ;;  %2458 = vmatprep.subr.bf16.mxu1 %v5845_v47  ;;  %v5915_v40 = vld [vmem:[#allocation8 + $0x4a8] ss:$16 sps:$4 sm:$0xff]   ;;  %v2569_v47 = vrot.slane %v6782_v50, 1  ;;  %v5926_v50 = vld [vmem:[#allocation8 + $0x464] ss:$16 sps:$4 sm:$0xff]  }
 0x1e2   :  { %2408 = vmatpush1.bf16.msra.mxu0 %v5840_v60  ;;  %2459 = vmatpush1.bf16.msra.mxu1 %v5843_v26  ;;  %v5920_v60 = vld [vmem:[#allocation8 + $0x484] ss:$16 sps:$4 sm:$0xff]   ;;  %v5923_v26 = vld [vmem:[#allocation8 + $0x48c] ss:$16 sps:$4 sm:$0xff]  }
 0x1e3   :  { %2409 = vmatprep.subr.bf16.mxu0 %v5848_v21  ;;  %2460 = vmatprep.subr.bf16.mxu1 %v5851_v34  ;;  %v2571_v21 = vsel %vm617_vm2, %v2569_v47, %v6808_v5  ;;  %v5921_v34 = vld [vmem:[#allocation8 + $0x488] ss:$16 sps:$4 sm:$0xff]  }
 0x1e4   :  { %v5993_v47 = vld [vmem:[#allocation8 + $0x508] ss:$16 sps:$4 sm:$0xff]  }
 0x1e6   :  { %2410 = vmatpush1.bf16.msra.mxu0 %v5846_v38  ;;  %2461 = vmatpush1.bf16.msra.mxu1 %v5849_v44  ;;  %v5929_v38 = vld [vmem:[#allocation8 + $0x46c] ss:$16 sps:$4 sm:$0xff]   ;;  %v5924_v44 = vld [vmem:[#allocation8 + $0x460] ss:$16 sps:$4 sm:$0xff]  }
 0x1e7   :  { %2411 = vmatprep.subr.bf16.mxu0 %v5854_v1  ;;  %2462 = vmatprep.subr.bf16.mxu1 %v5857_v2  ;;  %v5927_v1 = vld [vmem:[#allocation8 + $0x468] ss:$16 sps:$4 sm:$0xff]   ;;  %v5932_v2 = vld [vmem:[#allocation8 + $0x444] ss:$16 sps:$4 sm:$0xff]  }
 0x1ea   :  { %2412 = vmatpush2.bf16.msra.mxu0 %v5852_v63  ;;  %2463 = vmatpush2.bf16.msra.mxu1 %v5855_v35  ;;  %v5935_v63 = vld [vmem:[#allocation8 + $0x44c] ss:$16 sps:$4 sm:$0xff]   ;;  %v5930_v35 = vld [vmem:[#allocation8 + $0x440] ss:$16 sps:$4 sm:$0xff]  }
 0x1eb   :  { %2413 = vmatprep.subr.bf16.mxu0 %v5860_v36  ;;  %2464 = vmatprep.subr.bf16.mxu1 %v5863_v13  ;;  %v5933_v36 = vld [vmem:[#allocation8 + $0x448] ss:$16 sps:$4 sm:$0xff]   ;;  %v5938_v13 = vld [vmem:[#allocation8 + $0x424] ss:$16 sps:$4 sm:$0xff]  }
 0x1ee   :  { %2414 = vmatpush2.bf16.msra.mxu0 %v5858_v14  ;;  %2465 = vmatpush2.bf16.msra.mxu1 %v5861_v61  ;;  %v5941_v14 = vld [vmem:[#allocation8 + $0x42c] ss:$16 sps:$4 sm:$0xff]   ;;  %v5936_v61 = vld [vmem:[#allocation8 + $0x420] ss:$16 sps:$4 sm:$0xff]  }
 0x1ef   :  { %2415 = vmatprep.subr.bf16.mxu0 %v5866_v46  ;;  %2466 = vmatprep.subr.bf16.mxu1 %v5869_v54  ;;  %v5939_v46 = vld [vmem:[#allocation8 + $0x428] ss:$16 sps:$4 sm:$0xff]   ;;  %v5944_v54 = vld [vmem:[#allocation8 + $0x404] ss:$16 sps:$4 sm:$0xff]  }
 0x1f2   :  { %2416 = vmatpush2.bf16.msra.mxu0 %v5864_v23  ;;  %2467 = vmatpush2.bf16.msra.mxu1 %v5867_v22  ;;  %v5947_v23 = vld [vmem:[#allocation8 + $0x40c] ss:$16 sps:$4 sm:$0xff]   ;;  %v5942_v22 = vld [vmem:[#allocation8 + $0x400] ss:$16 sps:$4 sm:$0xff]  }
 0x1f3   :  { %2417 = vmatprep.subr.bf16.mxu0 %v5872_v56  ;;  %2468 = vmatprep.subr.bf16.mxu1 %v5875_v10  ;;  %v5945_v56 = vld [vmem:[#allocation8 + $0x408] ss:$16 sps:$4 sm:$0xff]   ;;  %v5950_v10 = vld [vmem:[#allocation8 + $0x5e4] ss:$16 sps:$4 sm:$0xff]  }
 0x1f6   :  { %2418 = vmatpush2.bf16.msra.mxu0 %v5870_v32  ;;  %2469 = vmatpush2.bf16.msra.mxu1 %v5873_v62  ;;  %v5953_v32 = vld [vmem:[#allocation8 + $0x5ec] ss:$16 sps:$4 sm:$0xff]   ;;  %v5948_v62 = vld [vmem:[#allocation8 + $0x5e0] ss:$16 sps:$4 sm:$0xff]  }
 0x1f7   :  { %2419 = vmatprep.subr.bf16.mxu0 %v5878_v20  ;;  %2470 = vmatprep.subr.bf16.mxu1 %v5881_v30  ;;  %v5951_v20 = vld [vmem:[#allocation8 + $0x5e8] ss:$16 sps:$4 sm:$0xff]   ;;  %v5956_v30 = vld [vmem:[#allocation8 + $0x5c4] ss:$16 sps:$4 sm:$0xff]  }
 0x1fa   :  { %2420 = vmatpush2.bf16.msra.mxu0 %v5876_v58  ;;  %2471 = vmatpush2.bf16.msra.mxu1 %v5879_v12  ;;  %v5959_v58 = vld [vmem:[#allocation8 + $0x5cc] ss:$16 sps:$4 sm:$0xff]   ;;  %v5954_v12 = vld [vmem:[#allocation8 + $0x5c0] ss:$16 sps:$4 sm:$0xff]  }
 0x1fb   :  { %2421 = vmatprep.subr.bf16.mxu0 %v5884_v59  ;;  %2472 = vmatprep.subr.bf16.mxu1 %v5887_v55  ;;  %v5957_v59 = vld [vmem:[#allocation8 + $0x5c8] ss:$16 sps:$4 sm:$0xff]   ;;  %v5962_v55 = vld [vmem:[#allocation8 + $0x5a4] ss:$16 sps:$4 sm:$0xff]  }
 0x1fe   :  { %2422 = vmatpush2.bf16.msra.mxu0 %v5882_v49  ;;  %2473 = vmatpush2.bf16.msra.mxu1 %v5885_v15  ;;  %v5965_v49 = vld [vmem:[#allocation8 + $0x5ac] ss:$16 sps:$4 sm:$0xff]   ;;  %v5960_v15 = vld [vmem:[#allocation8 + $0x5a0] ss:$16 sps:$4 sm:$0xff]  }
 0x1ff   :  { %2423 = vmatprep.subr.bf16.mxu0 %v5890_v8  ;;  %2474 = vmatprep.subr.bf16.mxu1 %v5893_v17  ;;  %v5963_v8 = vld [vmem:[#allocation8 + $0x5a8] ss:$16 sps:$4 sm:$0xff]   ;;  %v5968_v17 = vld [vmem:[#allocation8 + $0x584] ss:$16 sps:$4 sm:$0xff]  }
 0x202   :  { %2424 = vmatpush2.bf16.msra.mxu0 %v5888_v52  ;;  %2475 = vmatpush2.bf16.msra.mxu1 %v5891_v28  ;;  %v5971_v52 = vld [vmem:[#allocation8 + $0x58c] ss:$16 sps:$4 sm:$0xff]   ;;  %v5966_v28 = vld [vmem:[#allocation8 + $0x580] ss:$16 sps:$4 sm:$0xff]  }
 0x203   :  { %2425 = vmatprep.subr.bf16.mxu0 %v5896_v25  ;;  %2476 = vmatprep.subr.bf16.mxu1 %v5899_v24  ;;  %v5969_v25 = vld [vmem:[#allocation8 + $0x588] ss:$16 sps:$4 sm:$0xff]   ;;  %v5974_v24 = vld [vmem:[#allocation8 + $0x564] ss:$16 sps:$4 sm:$0xff]  }
 0x206   :  { %2426 = vmatpush2.bf16.msra.mxu0 %v5894_v27  ;;  %2477 = vmatpush2.bf16.msra.mxu1 %v5897_v45  ;;  %v5977_v27 = vld [vmem:[#allocation8 + $0x56c] ss:$16 sps:$4 sm:$0xff]   ;;  %v5972_v45 = vld [vmem:[#allocation8 + $0x560] ss:$16 sps:$4 sm:$0xff]  }
 0x207   :  { %2896 = vmatprep.subr.bf16.mxu0 %v5902_v29  ;;  %2947 = vmatprep.subr.bf16.mxu1 %v5905_v33  ;;  %v5975_v29 = vld [vmem:[#allocation8 + $0x568] ss:$16 sps:$4 sm:$0xff]   ;;  %v5980_v33 = vld [vmem:[#allocation8 + $0x544] ss:$16 sps:$4 sm:$0xff]  }
 0x209   :  { %2428 = vmatmul.mubr.bf16.vlgmr.msra.gmra.mxu0 %v6785_v7  ;;  %2479 = vmatmul.mubr.bf16.vlgmr.msra.gmra.mxu1 %v6785_v7 }
 0x20a   :  { %2437 = vmatprep.mubr.bf16.mxu0 %v6791_v37  ;;  %2488 = vmatprep.mubr.bf16.mxu1 %v6791_v37  ;;  %v5918_v37 = vld [vmem:[#allocation8 + $0x480] ss:$16 sps:$4 sm:$0xff]  }
 0x20b   :  { %2897 = vmatpush1.bf16.msra.mxu0 %v5900_v3  ;;  %2948 = vmatpush1.bf16.msra.mxu1 %v5903_v4  ;;  %v5983_v3 = vld [vmem:[#allocation8 + $0x54c] ss:$16 sps:$4 sm:$0xff]   ;;  %v5978_v4 = vld [vmem:[#allocation8 + $0x540] ss:$16 sps:$4 sm:$0xff]  }
 0x20c   :  { %2898 = vmatprep.subr.bf16.mxu0 %v5908_v11  ;;  %2949 = vmatprep.subr.bf16.mxu1 %v5911_v51  ;;  %v5981_v11 = vld [vmem:[#allocation8 + $0x548] ss:$16 sps:$4 sm:$0xff]   ;;  %v5986_v51 = vld [vmem:[#allocation8 + $0x524] ss:$16 sps:$4 sm:$0xff]  }
 0x20f   :  { %2899 = vmatpush1.bf16.msra.mxu0 %v5906_v16  ;;  %2950 = vmatpush1.bf16.msra.mxu1 %v5909_v42  ;;  %v5989_v16 = vld [vmem:[#allocation8 + $0x52c] ss:$16 sps:$4 sm:$0xff]   ;;  %v5984_v42 = vld [vmem:[#allocation8 + $0x520] ss:$16 sps:$4 sm:$0xff]  }
 0x210   :  { %2900 = vmatprep.subr.bf16.mxu0 %v5914_v39  ;;  %2951 = vmatprep.subr.bf16.mxu1 %v5917_v48  ;;  %v5987_v39 = vld [vmem:[#allocation8 + $0x528] ss:$16 sps:$4 sm:$0xff]   ;;  %v5992_v48 = vld [vmem:[#allocation8 + $0x504] ss:$16 sps:$4 sm:$0xff]  }
 0x211   :  { %2438 = vmatmul.mubr.bf16.gmra.mxu0 %v6789_v57  ;;  %2489 = vmatmul.mubr.bf16.gmra.mxu1 %v6789_v57 }
 0x212   :  { %2928 = vmatprep.mubr.bf16.mxu0 %v2571_v21  ;;  %2979 = vmatprep.mubr.bf16.mxu1 %v2571_v21 }
 0x213   :  { %2901 = vmatpush1.bf16.msra.mxu0 %v5912_v53  ;;  %2952 = vmatpush1.bf16.msra.mxu1 %v5915_v40  ;;  %v5995_v53 = vld [vmem:[#allocation8 + $0x50c] ss:$16 sps:$4 sm:$0xff]   ;;  %v5990_v40 = vld [vmem:[#allocation8 + $0x500] ss:$16 sps:$4 sm:$0xff]  }
 0x214   :  { %2902 = vmatprep.subr.bf16.mxu0 %v5920_v60  ;;  %2953 = vmatprep.subr.bf16.mxu1 %v5923_v26  ;;  %v2567_v60 = vrot.slane %v6789_v57, 1  ;;  %v2566_v26 = vrot.slane %v6785_v7, 1  ;;  %v5999_v57 = vld [vmem:[#allocation10 + $0x60] ss:$8 sps:$4 sm:$0xff]   ;;  %v6010_v7 = vld [vmem:[#allocation10 + $0x164] ss:$8 sps:$4 sm:$0xff]  }
 0x216   :  { %v2568_v21 = vsel %vm617_vm2, %v2566_v26, %v2567_v60  ;;  %v6055_v26 = vld [vmem:[#allocation10 + $0xd4] ss:$8 sps:$4 sm:$0xff]  }
 0x217   :  { %2903 = vmatpush1.bf16.msra.mxu0 %v5918_v37  ;;  %2954 = vmatpush1.bf16.msra.mxu1 %v5921_v34  ;;  %v5996_v37 = vld [vmem:[#allocation10 + $0x70] ss:$8 sps:$4 sm:$0xff]   ;;  %v5998_v34 = vld [vmem:[#allocation10 + $0x74] ss:$8 sps:$4 sm:$0xff]  }
 0x218   :  { %2904 = vmatprep.subr.bf16.mxu0 %v5926_v50  ;;  %2955 = vmatprep.subr.bf16.mxu1 %v5929_v38  ;;  %v6001_v50 = vld [vmem:[#allocation10 + $0x64] ss:$8 sps:$4 sm:$0xff]   ;;  %v6002_v38 = vld [vmem:[#allocation10 + $0x170] ss:$8 sps:$4 sm:$0xff]  }
 0x21b   :  { %2905 = vmatpush1.bf16.msra.mxu0 %v5924_v44  ;;  %2956 = vmatpush1.bf16.msra.mxu1 %v5927_v1  ;;  %v6004_v44 = vld [vmem:[#allocation10 + $0x174] ss:$8 sps:$4 sm:$0xff]  }
 0x21c   :  { %2906 = vmatprep.subr.bf16.mxu0 %v5932_v2  ;;  %2957 = vmatprep.subr.bf16.mxu1 %v5935_v63  ;;  %v6007_v1 = vld [vmem:[#allocation10 + $0x54] ss:$8 sps:$4 sm:$0xff]   ;;  %v6008_v2 = vld [vmem:[#allocation10 + $0x160] ss:$8 sps:$4 sm:$0xff]   ;;  %v6005_v63 = vld [vmem:[#allocation10 + $0x50] ss:$8 sps:$4 sm:$0xff]  }
 0x21f   :  { %2907 = vmatpush1.bf16.msra.mxu0 %v5930_v35  ;;  %2958 = vmatpush1.bf16.msra.mxu1 %v5933_v36 }
 0x220   :  { %2908 = vmatprep.subr.bf16.mxu0 %v5938_v13  ;;  %2959 = vmatprep.subr.bf16.mxu1 %v5941_v14  ;;  %v6011_v13 = vld [vmem:[#allocation10 + $0x40] ss:$8 sps:$4 sm:$0xff]   ;;  %v6016_v14 = vld [vmem:[#allocation10 + $0x154] ss:$8 sps:$4 sm:$0xff]  }
 0x223   :  { %2909 = vmatpush1.bf16.msra.mxu0 %v5936_v61  ;;  %2960 = vmatpush1.bf16.msra.mxu1 %v5939_v46  ;;  %v6014_v61 = vld [vmem:[#allocation10 + $0x150] ss:$8 sps:$4 sm:$0xff]  }
 0x224   :  { %2910 = vmatprep.subr.bf16.mxu0 %v5944_v54  ;;  %2961 = vmatprep.subr.bf16.mxu1 %v5947_v23 }
 0x227   :  { %2911 = vmatpush1.bf16.msra.mxu0 %v5942_v22  ;;  %2962 = vmatpush1.bf16.msra.mxu1 %v5945_v56 }
 0x228   :  { %2912 = vmatprep.subr.bf16.mxu0 %v5950_v10  ;;  %2963 = vmatprep.subr.bf16.mxu1 %v5953_v32  ;;  %v6019_v32 = vld [vmem:[#allocation10 + $0x34] ss:$8 sps:$4 sm:$0xff]  }
 0x22b   :  { %2913 = vmatpush2.bf16.msra.mxu0 %v5948_v62  ;;  %2964 = vmatpush2.bf16.msra.mxu1 %v5951_v20 }
 0x22c   :  { %2914 = vmatprep.subr.bf16.mxu0 %v5956_v30  ;;  %2965 = vmatprep.subr.bf16.mxu1 %v5959_v58  ;;  %v6017_v30 = vld [vmem:[#allocation10 + $0x30] ss:$8 sps:$4 sm:$0xff]   ;;  %v6022_v58 = vld [vmem:[#allocation10 + $0x144] ss:$8 sps:$4 sm:$0xff]  }
 0x22f   :  { %2915 = vmatpush2.bf16.msra.mxu0 %v5954_v12  ;;  %2966 = vmatpush2.bf16.msra.mxu1 %v5957_v59  ;;  %v6020_v12 = vld [vmem:[#allocation10 + $0x140] ss:$8 sps:$4 sm:$0xff]  }
 0x230   :  { %2916 = vmatprep.subr.bf16.mxu0 %v5962_v55  ;;  %2967 = vmatprep.subr.bf16.mxu1 %v5965_v49 }
 0x233   :  { %2917 = vmatpush2.bf16.msra.mxu0 %v5960_v15  ;;  %2968 = vmatpush2.bf16.msra.mxu1 %v5963_v8 }
 0x234   :  { %2918 = vmatprep.subr.bf16.mxu0 %v5968_v17  ;;  %2969 = vmatprep.subr.bf16.mxu1 %v5971_v52  ;;  %v6025_v52 = vld [vmem:[#allocation10 + $0x24] ss:$8 sps:$4 sm:$0xff]  }
 0x237   :  { %2919 = vmatpush2.bf16.msra.mxu0 %v5966_v28  ;;  %2970 = vmatpush2.bf16.msra.mxu1 %v5969_v25  ;;  %v6023_v28 = vld [vmem:[#allocation10 + $0x20] ss:$8 sps:$4 sm:$0xff]   ;;  %v6028_v25 = vld [vmem:[#allocation10 + $0x134] ss:$8 sps:$4 sm:$0xff]  }
 0x238   :  { %2920 = vmatprep.subr.bf16.mxu0 %v5974_v24  ;;  %2971 = vmatprep.subr.bf16.mxu1 %v5977_v27  ;;  %v6026_v24 = vld [vmem:[#allocation10 + $0x130] ss:$8 sps:$4 sm:$0xff]   ;;  %v6031_v27 = vld [vmem:[#allocation10 + $0x14] ss:$8 sps:$4 sm:$0xff]  }
 0x23b   :  { %2921 = vmatpush2.bf16.msra.mxu0 %v5972_v45  ;;  %2972 = vmatpush2.bf16.msra.mxu1 %v5975_v29  ;;  %v6029_v45 = vld [vmem:[#allocation10 + $0x10] ss:$8 sps:$4 sm:$0xff]   ;;  %v6034_v29 = vld [vmem:[#allocation10 + $0x124] ss:$8 sps:$4 sm:$0xff]  }
 0x23c   :  { %2922 = vmatprep.subr.bf16.mxu0 %v5980_v33  ;;  %2973 = vmatprep.subr.bf16.mxu1 %v5983_v3  ;;  %v6032_v33 = vld [vmem:[#allocation10 + $0x120] ss:$8 sps:$4 sm:$0xff]   ;;  %v6037_v3 = vld [vmem:[#allocation10 + $0x4] ss:$8 sps:$4 sm:$0xff]  }
 0x23f   :  { %2923 = vmatpush2.bf16.msra.mxu0 %v5978_v4  ;;  %2974 = vmatpush2.bf16.msra.mxu1 %v5981_v11  ;;  %v6035_v4 = vld [vmem:[#allocation10] ss:$8 sps:$4 sm:$0xff]   ;;  %v6040_v11 = vld [vmem:[#allocation10 + $0x114] ss:$8 sps:$4 sm:$0xff]  }
 0x240   :  { %2924 = vmatprep.subr.bf16.mxu0 %v5986_v51  ;;  %2975 = vmatprep.subr.bf16.mxu1 %v5989_v16  ;;  %v6038_v51 = vld [vmem:[#allocation10 + $0x110] ss:$8 sps:$4 sm:$0xff]   ;;  %v6043_v16 = vld [vmem:[#allocation10 + $0xf4] ss:$8 sps:$4 sm:$0xff]  }
 0x243   :  { %2925 = vmatpush2.bf16.msra.mxu0 %v5984_v42  ;;  %2976 = vmatpush2.bf16.msra.mxu1 %v5987_v39  ;;  %v6041_v42 = vld [vmem:[#allocation10 + $0xf0] ss:$8 sps:$4 sm:$0xff]   ;;  %v6046_v39 = vld [vmem:[#allocation10 + $0x104] ss:$8 sps:$4 sm:$0xff]  }
 0x244   :  { %2926 = vmatprep.subr.bf16.mxu0 %v5992_v48  ;;  %2977 = vmatprep.subr.bf16.mxu1 %v5995_v53  ;;  %v6044_v48 = vld [vmem:[#allocation10 + $0x100] ss:$8 sps:$4 sm:$0xff]   ;;  %v6049_v53 = vld [vmem:[#allocation10 + $0xe4] ss:$8 sps:$4 sm:$0xff]  }
 0x247   :  { %2927 = vmatpush2.bf16.msra.mxu0 %v5990_v40  ;;  %2978 = vmatpush2.bf16.msra.mxu1 %v5993_v47  ;;  %v6047_v40 = vld [vmem:[#allocation10 + $0xe0] ss:$8 sps:$4 sm:$0xff]   ;;  %v6052_v47 = vld [vmem:[#allocation10 + $0x1f4] ss:$8 sps:$4 sm:$0xff]  }
 0x248   :  { %3792 = vmatprep.subr.bf16.mxu1 %v5998_v34  ;;  %3589 = vmatprep.subr.bf16.mxu0 %v6004_v44  ;;  %v6056_v34 = vld [vmem:[#allocation10 + $0x1e0] ss:$8 sps:$4 sm:$0xff]   ;;  %v6064_v44 = vld [vmem:[#allocation10 + $0x1d4] ss:$8 sps:$4 sm:$0xff]  }
 0x24a   :  { %2929 = vmatmul.mubr.bf16.vlgmr.msra.gmra.mxu0 %v2568_v21  ;;  %2980 = vmatmul.mubr.bf16.vlgmr.msra.gmra.mxu1 %v2568_v21  ;;  %v6053_v21 = vld [vmem:[#allocation10 + $0xd0] ss:$8 sps:$4 sm:$0xff]  }
 0x24b   :  { %2938 = vmatprep.mubr.bf16.mxu0 %v6808_v5  ;;  %2989 = vmatprep.mubr.bf16.mxu1 %v6808_v5  ;;  %v6013_v5 = vld [vmem:[#allocation10 + $0x44] ss:$8 sps:$4 sm:$0xff]  }
 0x24c   :  { %3793 = vmatpush1.bf16.msra.mxu1 %v5996_v37  ;;  %3590 = vmatpush1.bf16.msra.mxu0 %v6002_v38  ;;  %v6058_v37 = vld [vmem:[#allocation10 + $0x1e4] ss:$8 sps:$4 sm:$0xff]   ;;  %v6059_v38 = vld [vmem:[#allocation10 + $0xc0] ss:$8 sps:$4 sm:$0xff]  }
 0x24d   :  { %3794 = vmatprep.subr.bf16.mxu1 %v6001_v50  ;;  %3591 = vmatprep.subr.bf16.mxu0 %v6010_v7  ;;  %v6061_v50 = vld [vmem:[#allocation10 + $0xc4] ss:$8 sps:$4 sm:$0xff]   ;;  %v6067_v7 = vld [vmem:[#allocation10 + $0xb4] ss:$8 sps:$4 sm:$0xff]  }
 0x250   :  { %3795 = vmatpush1.bf16.msra.mxu1 %v5999_v57  ;;  %3592 = vmatpush1.bf16.msra.mxu0 %v6008_v2  ;;  %v6062_v57 = vld [vmem:[#allocation10 + $0x1d0] ss:$8 sps:$4 sm:$0xff]   ;;  %v6070_v2 = vld [vmem:[#allocation10 + $0x1c4] ss:$8 sps:$4 sm:$0xff]  }
 0x251   :  { %3796 = vmatprep.subr.bf16.mxu1 %v6007_v1  ;;  %3593 = vmatprep.subr.bf16.mxu0 %v6016_v14  ;;  %v6065_v1 = vld [vmem:[#allocation10 + $0xb0] ss:$8 sps:$4 sm:$0xff]   ;;  %v6073_v14 = vld [vmem:[#allocation10 + $0xa4] ss:$8 sps:$4 sm:$0xff]  }
 0x252   :  { %2939 = vmatmul.mubr.bf16.gmra.mxu0 %v2567_v60  ;;  %2990 = vmatmul.mubr.bf16.gmra.mxu1 %v2567_v60  ;;  %v6050_v60 = vld [vmem:[#allocation10 + $0x1f0] ss:$8 sps:$4 sm:$0xff]  }
 0x254   :  { %3797 = vmatpush1.bf16.msra.mxu1 %v6005_v63  ;;  %3594 = vmatpush1.bf16.msra.mxu0 %v6014_v61  ;;  %v6068_v63 = vld [vmem:[#allocation10 + $0x1c0] ss:$8 sps:$4 sm:$0xff]  }
 0x255   :  { %3798 = vmatprep.subr.bf16.mxu1 %v6013_v5  ;;  %3595 = vmatprep.subr.bf16.mxu0 %v6022_v58  ;;  %v6076_v58 = vld [vmem:[#allocation10 + $0x1b4] ss:$8 sps:$4 sm:$0xff]  }
 0x258   :  { %3799 = vmatpush1.bf16.msra.mxu1 %v6011_v13  ;;  %3596 = vmatpush1.bf16.msra.mxu0 %v6020_v12 }
 0x259   :  { %3800 = vmatprep.subr.bf16.mxu1 %v6019_v32  ;;  %3597 = vmatprep.subr.bf16.mxu0 %v6028_v25 }
 0x25c   :  { %3801 = vmatpush1.bf16.msra.mxu1 %v6017_v30  ;;  %3598 = vmatpush1.bf16.msra.mxu0 %v6026_v24  ;;  %v6071_v30 = vld [vmem:[#allocation10 + $0xa0] ss:$8 sps:$4 sm:$0xff]  }
 0x25d   :  { %3802 = vmatprep.subr.bf16.mxu1 %v6025_v52  ;;  %3599 = vmatprep.subr.bf16.mxu0 %v6034_v29  ;;  %v6077_v52 = vld [vmem:[#allocation10 + $0x90] ss:$8 sps:$4 sm:$0xff]  }
 0x260   :  { %3803 = vmatpush1.bf16.msra.mxu1 %v6023_v28  ;;  %3600 = vmatpush1.bf16.msra.mxu0 %v6032_v33  ;;  %v6079_v28 = vld [vmem:[#allocation10 + $0x94] ss:$8 sps:$4 sm:$0xff]  }
 0x261   :  { %3804 = vmatprep.subr.bf16.mxu1 %v6031_v27  ;;  %3601 = vmatprep.subr.bf16.mxu0 %v6040_v11  ;;  %v6082_v27 = vld [vmem:[#allocation10 + $0x1a4] ss:$8 sps:$4 sm:$0xff]   ;;  %v6088_v33 = vld [vmem:[#allocation10 + $0x194] ss:$8 sps:$4 sm:$0xff]   ;;  %v6083_v11 = vld [vmem:[#allocation10 + $0x80] ss:$8 sps:$4 sm:$0xff]  }
 0x264   :  { %3805 = vmatpush1.bf16.msra.mxu1 %v6029_v45  ;;  %3602 = vmatpush1.bf16.msra.mxu0 %v6038_v51 }
 0x265   :  { %3806 = vmatprep.subr.bf16.mxu1 %v6037_v3  ;;  %3603 = vmatprep.subr.bf16.mxu0 %v6046_v39 }
 0x268   :  { %3807 = vmatpush1.bf16.msra.mxu1 %v6035_v4  ;;  %3604 = vmatpush1.bf16.msra.mxu0 %v6044_v48 }
 0x269   :  { %3808 = vmatprep.subr.bf16.mxu1 %v6043_v16  ;;  %3605 = vmatprep.subr.bf16.mxu0 %v6052_v47  ;;  %v6091_v47 = vld [vmem:[#allocation10 + $0x184] ss:$8 sps:$4 sm:$0xff]  }
 0x26c   :  { %3809 = vmatpush2.bf16.msra.mxu1 %v6041_v42  ;;  %3606 = vmatpush2.bf16.msra.mxu0 %v6050_v60  ;;  %v6086_v42 = vld [vmem:[#allocation10 + $0x190] ss:$8 sps:$4 sm:$0xff]  }
 0x26d   :  { %3810 = vmatprep.subr.bf16.mxu1 %v6049_v53  ;;  %3607 = vmatprep.subr.bf16.mxu0 %v6058_v37 }
 0x270   :  { %3811 = vmatpush2.bf16.msra.mxu1 %v6047_v40  ;;  %3608 = vmatpush2.bf16.msra.mxu0 %v6056_v34 }
 0x271   :  { %3812 = vmatprep.subr.bf16.mxu1 %v6055_v26  ;;  %3609 = vmatprep.subr.bf16.mxu0 %v6064_v44 }
 0x274   :  { %3813 = vmatpush2.bf16.msra.mxu1 %v6053_v21  ;;  %3610 = vmatpush2.bf16.msra.mxu0 %v6062_v57  ;;  %v6089_v21 = vld [vmem:[#allocation10 + $0x180] ss:$8 sps:$4 sm:$0xff]  }
 0x275   :  { %3814 = vmatprep.subr.bf16.mxu1 %v6061_v50  ;;  %3611 = vmatprep.subr.bf16.mxu0 %v6070_v2 }
 0x278   :  { %3815 = vmatpush2.bf16.msra.mxu1 %v6059_v38  ;;  %3612 = vmatpush2.bf16.msra.mxu0 %v6068_v63 }
 0x279   :  { %3816 = vmatprep.subr.bf16.mxu1 %v6067_v7  ;;  %3613 = vmatprep.subr.bf16.mxu0 %v6076_v58 }
 0x27c   :  { %3817 = vmatpush2.bf16.msra.mxu1 %v6065_v1 }
 0x27d   :  { %3818 = vmatprep.subr.bf16.mxu1 %v6073_v14 }
 0x280   :  { %3819 = vmatpush2.bf16.msra.mxu1 %v6071_v30 }
 0x281   :  { %3820 = vmatprep.subr.bf16.mxu1 %v6079_v28 }
 0x284   :  { %3821 = vmatpush2.bf16.msra.mxu1 %v6077_v52 }
 0x289   :  { %v6820_v35 = vpop.f32.mrf.mxu0  ;;  %v6822_v36 = vpop.f32.mrf.mxu1 }
 0x28b   :  { %v6824_v46 = vpop.f32.mrf.mxu0  ;;  %v6826_v54 = vpop.f32.mrf.mxu1 }
 0x28d   :  { %v6828_v23 = vpop.f32.mrf.mxu0  ;;  %v6830_v22 = vpop.f32.mrf.mxu1 }
 0x28f   :  { %v6832_v56 = vpop.f32.mrf.mxu0  ;;  %v6834_v10 = vpop.f32.mrf.mxu1 }
 0x291   :  { %v6836_v62 = vpop.f32.mrf.mxu0  ;;  %v6838_v20 = vpop.f32.mrf.mxu1 }
 0x293   :  { %v6840_v59 = vpop.f32.mrf.mxu0  ;;  %v6842_v55 = vpop.f32.mrf.mxu1 }
 0x295   :  { %v2021_v49 = vpop.f32.mrf.mxu0  ;;  %v2072_v15 = vpop.f32.mrf.mxu1 }
 0x296   :  { %v6074_v15 = vld [vmem:[#allocation10 + $0x1b0] ss:$8 sps:$4 sm:$0xff]  }
 0x297   :  { %v2022_v8 = vpop.f32.mrf.mxu0  ;;  %v2073_v17 = vpop.f32.mrf.mxu1  ;;  %3614 = vmatpush2.bf16.msra.mxu0 %v6074_v15 }
 0x298   :  { %3615 = vmatprep.subr.bf16.mxu0 %v6082_v27 }
 0x2c9   :  { %v2429_v5 = vpop.f32.mrf.mxu0  ;;  %v2480_v13 = vpop.f32.mrf.mxu1 }
 0x2ca   :  { %v2430_v61 = vadd.f32 %v2429_v5, %v6820_v35  ;;  %v2481_v32 = vadd.f32 %v2480_v13, %v6822_v36  ;;  %v6080_v35 = vld [vmem:[#allocation10 + $0x1a0] ss:$8 sps:$4 sm:$0xff]   ;;  %v6085_v36 = vld [vmem:[#allocation10 + $0x84] ss:$8 sps:$4 sm:$0xff]  }
 0x2cb   :  { %v2431_v12 = vpop.f32.mrf.mxu0  ;;  %v2482_v49 = vpop.f32.mrf.mxu1  ;;  %3616 = vmatpush2.bf16.msra.mxu0 %v6080_v35  ;;  %3822 = vmatprep.subr.bf16.mxu1 %v6085_v36 }
 0x2cc   :  { %v2432_v8 = vadd.f32 %v2431_v12, %v6824_v46  ;;  %v2483_v17 = vadd.f32 %v2482_v49, %v6826_v54  ;;  %3617 = vmatprep.subr.bf16.mxu0 %v6088_v33  ;;  %3823 = vmatpush2.bf16.msra.mxu1 %v6083_v11 }
 0x2cd   :  { %v2433_v25 = vpop.f32.mrf.mxu0  ;;  %v2484_v24 = vpop.f32.mrf.mxu1 }
 0x2ce   :  { %v2434_v45 = vadd.f32 %v2433_v25, %v6828_v23  ;;  %v2485_v29 = vadd.f32 %v2484_v24, %v6830_v22 }
 0x2cf   :  { %v2435_v3 = vpop.f32.mrf.mxu0  ;;  %v2486_v46 = vpop.f32.mrf.mxu1  ;;  %3618 = vmatpush2.bf16.msra.mxu0 %v6086_v42 }
 0x2d0   :  { %v2436_v54 = vadd.f32 %v2435_v3, %v6832_v56  ;;  %v2487_v4 = vadd.f32 %v2486_v46, %v6834_v10  ;;  %3619 = vmatprep.subr.bf16.mxu0 %v6091_v47 }
 0x2d1   :  { %v2439_v51 = vpop.f32.mrf.mxu0  ;;  %v2490_v16 = vpop.f32.mrf.mxu1 }
 0x2d2   :  { %v2440_v23 = vadd.f32 %v2439_v51, %v6836_v62  ;;  %v2491_v22 = vadd.f32 %v2490_v16, %v6838_v20  ;;  %v6094_v62 = vld [vmem:[#allocation10 + $0x274] ss:$8 sps:$4 sm:$0xff]   ;;  %v3010_v20 = vld [vmem:[%s7180_s4] sm:$0xf]  ;;  %s6337_s4 = smov [#allocation13]  }
 0x2d3   :  { %v2441_v39 = vpop.f32.mrf.mxu0  ;;  %v2492_v48 = vpop.f32.mrf.mxu1  ;;  %3620 = vmatpush2.bf16.msra.mxu0 %v6089_v21  ;;  %v3019_v44 = vrot.slane %v3010_v20, %v6540_v41  ;;  %v6869_v57 = vrot.slane %v3010_v20, %v870_v43 }
 0x2d4   :  { %v6855_v53 = vadd.f32 %v2441_v39, %v6840_v59  ;;  %v6858_v56 = vadd.f32 %v2492_v48, %v6842_v55  ;;  %4034 = vmatprep.subr.bf16.mxu0 %v6094_v62  ;;  %v3015_v59 = vrot.slane %v3010_v20, %v6528_v31  ;;  %v3023_v55 = vrot.slane %v3010_v20, %v866_v6 }
 0x2d5   :  { %v2443_v10 = vpop.f32.mrf.mxu0  ;;  %v2494_v40 = vpop.f32.mrf.mxu1 }
 0x2d7   :  { %v2444_v60 = vpop.f32.mrf.mxu0  ;;  %v2495_v26 = vpop.f32.mrf.mxu1 }
 0x30a   :  { %v2930_v37 = vpop.f32.mrf.mxu0  ;;  %v2981_v34 = vpop.f32.mrf.mxu1 }
 0x30b   :  { %v2998_v50 = vadd.f32 %v2930_v37, %v2430_v61  ;;  %v3000_v38 = vadd.f32 %v2981_v34, %v2481_v32 }
 0x30c   :  { %v2932_v7 = vpop.f32.mrf.mxu0  ;;  %v2983_v1 = vpop.f32.mrf.mxu1 }
 0x30d   :  { %v3032_v2 = vadd.f32 %v3015_v59, %v2998_v50  ;;  %v3034_v63 = vadd.f32 %v3023_v55, %v3000_v38  ;;  %v2999_v5 = vadd.f32 %v2932_v7, %v2432_v8  ;;  %v3001_v13 = vadd.f32 %v2983_v1, %v2483_v17 }
 0x30e   :  { %v2934_v14 = vpop.f32.mrf.mxu0  ;;  %v2985_v30 = vpop.f32.mrf.mxu1 }
 0x30f   :  { %v3044_v58 = vmax.f32 %v3032_v2, 0.0  ;;  %v3046_v6 = vmax.f32 %v3034_v63, 0.0  ;;  %v3033_v12 = vadd.f32 %v3019_v44, %v2999_v5  ;;  %v3035_v61 = vadd.f32 %v6869_v57, %v3001_v13 }
 0x310   :  { %v3002_v32 = vadd.f32 %v2934_v14, %v2434_v45  ;;  %v3004_v49 = vadd.f32 %v2985_v30, %v2485_v29  ;;  %v2936_v15 = vpop.f32.mrf.mxu0  ;;  %v2987_v52 = vpop.f32.mrf.mxu1 }
 0x311   :  { %v3056_v28 = vmax.f32 %v3044_v58, %v3046_v6  ;;  %v3045_v43 = vmax.f32 %v3033_v12, 0.0  ;;  %v3047_v25 = vmax.f32 %v3035_v61, 0.0  ;;  %v3003_v24 = vadd.f32 %v2936_v15, %v2436_v54 }
 0x312   :  { %v3036_v35 = vadd.f32 %v3015_v59, %v3002_v32  ;;  %v3038_v27 = vadd.f32 %v3023_v55, %v3004_v49  ;;  %v3005_v36 = vadd.f32 %v2987_v52, %v2487_v4  ;;  %v2940_v8 = vpop.f32.mrf.mxu0  ;;  %v2991_v17 = vpop.f32.mrf.mxu1 }
 0x313   :  { %v3057_v33 = vmax.f32 %v3045_v43, %v3047_v25  ;;  %v3037_v3 = vadd.f32 %v3019_v44, %v3003_v24  ;;  %v3006_v46 = vadd.f32 %v2940_v8, %v2440_v23  ;;  %v3008_v11 = vadd.f32 %v2991_v17, %v2491_v22 }
 0x314   :  { %v3048_v51 = vmax.f32 %v3036_v35, 0.0  ;;  %v3050_v16 = vmax.f32 %v3038_v27, 0.0  ;;  %v3039_v45 = vadd.f32 %v6869_v57, %v3005_v36  ;;  %v2942_v29 = vpop.f32.mrf.mxu0  ;;  %v2993_v42 = vpop.f32.mrf.mxu1 }
 0x315   :  { %v3068_v39 = vcombine.low %v3056_v28, %v3057_v33  ;;  %v3069_v48 = vcombine.high %v3056_v28, %v3057_v33  ;;  %v3049_v10 = vmax.f32 %v3037_v3, 0.0  ;;  %v3040_v40 = vadd.f32 %v3015_v59, %v3006_v46 }
 0x316   :  { %v3058_v54 = vmax.f32 %v3048_v51, %v3050_v16  ;;  %v3051_v47 = vmax.f32 %v3039_v45, 0.0  ;;  %v3042_v60 = vadd.f32 %v3023_v55, %v3008_v11  ;;  %v3007_v4 = vadd.f32 %v2942_v29, %v6855_v53  ;;  %v2944_v26 = vpop.f32.mrf.mxu0  ;;  %v2995_v21 = vpop.f32.mrf.mxu1 }
 0x317   :  { %v3076_v23 = vrot.slane %v3068_v39, %v6629_v0  ;;  %v3083_v22 = vrot.slane %v3069_v48, %v6629_v0  ;;  %v3052_v62 = vmax.f32 %v3040_v40, 0.0  ;;  %v6877_v34 = vadd.f32 %v2993_v42, %v6858_v56 }
 0x318   :  { %v3059_v20 = vmax.f32 %v3049_v10, %v3051_v47  ;;  %v3054_v37 = vmax.f32 %v3042_v60, 0.0  ;;  %v2945_v50 = vpop.f32.mrf.mxu0  ;;  %v2996_v38 = vpop.f32.mrf.mxu1  ;;  %v6883_v5 = vadd.f32 %v3019_v44, %v3007_v4 }
 0x319   :  { %v3084_v59 = vcombine.high %v3076_v23, %v3076_v23  ;;  %v3085_v7 = vcombine.high %v3083_v22, %v3083_v22  ;;  %v3118_v55 = vrot.slane %v3076_v23, %v6629_v0  ;;  %v3134_v53 = vrot.slane %v3083_v22, %v6629_v0 }
 0x31a   :  { %v3086_v1 = vcombine.low %v3058_v54, %v3059_v20  ;;  %v3087_v2 = vcombine.high %v3058_v54, %v3059_v20  ;;  %v6881_v63 = vmax.f32 %v3052_v62, %v3054_v37 }
 0x31b   :  { %v3119_v13 = vcombine.high %v3118_v55, %v3118_v55  ;;  %v3126_v14 = vrot.slane %v3084_v59, %v6629_v0  ;;  %v3135_v30 = vcombine.high %v3134_v53, %v3134_v53  ;;  %v3142_v56 = vrot.slane %v3085_v7, %v6629_v0 }
 0x31c   :  { %v3192_v58 = vsel %vm1176_vm3, %v3118_v55, -inf  ;;  %v3220_v6 = vsel %vm1176_vm3, %v3134_v53, -inf  ;;  %v3094_v12 = vrot.slane %v3086_v1, %v6629_v0  ;;  %v6891_v61 = vrot.slane %v3087_v2, %v6629_v0 }
 0x31d   :  { %v3127_v32 = vcombine.high %v3126_v14, %v3126_v14  ;;  %v3143_v49 = vcombine.high %v3142_v56, %v3142_v56  ;;  %v3193_v15 = vrot.slane %v3192_v58, 4  ;;  %v3199_v44 = vsel %vm1176_vm3, %v3119_v13, -inf }
 0x31e   :  { %v3200_v52 = vrot.slane %v3199_v44, 4  ;;  %v3206_v28 = vsel %vm1176_vm3, %v3126_v14, -inf  ;;  %v3221_v43 = vrot.slane %v3220_v6, 4  ;;  %v3227_v25 = vsel %vm1176_vm3, %v3135_v30, -inf }
 0x31f   :  { %v3194_v24 = vmax.f32 %v3192_v58, %v3193_v15  ;;  %v3207_v35 = vrot.slane %v3206_v28, 4  ;;  %v3213_v27 = vsel %vm1176_vm3, %v3127_v32, -inf  ;;  %v3228_v36 = vrot.slane %v3227_v25, 4 }
 0x320   :  { %v3201_v8 = vmax.f32 %v3199_v44, %v3200_v52  ;;  %v3214_v17 = vrot.slane %v3213_v27, 4  ;;  %v3222_v33 = vmax.f32 %v3220_v6, %v3221_v43  ;;  %v3234_v3 = vsel %vm1176_vm3, %v3142_v56, -inf }
 0x321   :  { %v3195_v46 = vrot.slane %v3194_v24, 2  ;;  %v3208_v11 = vmax.f32 %v3206_v28, %v3207_v35  ;;  %v3229_v51 = vmax.f32 %v3227_v25, %v3228_v36  ;;  %v3235_v16 = vrot.slane %v3234_v3, 4 }
 0x322   :  { %v3202_v45 = vrot.slane %v3201_v8, 2  ;;  %v3215_v29 = vmax.f32 %v3213_v27, %v3214_v17  ;;  %v3223_v42 = vrot.slane %v3222_v33, 2  ;;  %v3241_v39 = vsel %vm1176_vm3, %v3143_v49, -inf }
 0x323   :  { %v3196_v48 = vmax.f32 %v3194_v24, %v3195_v46  ;;  %v3209_v10 = vrot.slane %v3208_v11, 2  ;;  %v3230_v40 = vrot.slane %v3229_v51, 2  ;;  %v3236_v54 = vmax.f32 %v3234_v3, %v3235_v16 }
 0x324   :  { %v3203_v47 = vmax.f32 %v3201_v8, %v3202_v45  ;;  %v3216_v60 = vrot.slane %v3215_v29, 2  ;;  %v3224_v4 = vmax.f32 %v3222_v33, %v3223_v42  ;;  %v3242_v26 = vrot.slane %v3241_v39, 4 }
 0x325   :  { %v3197_v21 = vrot.slane %v3196_v48, 1  ;;  %v3210_v23 = vmax.f32 %v3208_v11, %v3209_v10  ;;  %v3231_v22 = vmax.f32 %v3229_v51, %v3230_v40  ;;  %v3237_v62 = vrot.slane %v3236_v54, 2 }
 0x326   :  { %v3204_v20 = vrot.slane %v3203_v47, 1  ;;  %v3217_v37 = vmax.f32 %v3215_v29, %v3216_v60  ;;  %v3225_v50 = vrot.slane %v3224_v4, 1  ;;  %v3243_v38 = vmax.f32 %v3241_v39, %v3242_v26 }
 0x327   :  { %v3211_v59 = vrot.slane %v3210_v23, 1  ;;  %v3232_v7 = vrot.slane %v3231_v22, 1  ;;  %v3238_v55 = vmax.f32 %v3236_v54, %v3237_v62  ;;  %v3053_v53 = vmax.f32 %v6883_v5, 0.0 }
 0x328   :  { %v3198_v1 = vmax.f32 %v3196_v48, %v3197_v21  ;;  %v3205_v2 = vmax.f32 %v3203_v47, %v3204_v20  ;;  %v3218_v13 = vrot.slane %v3217_v37, 1  ;;  %v3244_v14 = vrot.slane %v3243_v38, 2 }
 0x329   :  { %v3212_v30 = vmax.f32 %v3210_v23, %v3211_v59  ;;  %v3226_v56 = vmax.f32 %v3224_v4, %v3225_v50  ;;  %v3239_v58 = vrot.slane %v3238_v55, 1  ;;  %v3102_v6 = vcombine.high %v3094_v12, %v3094_v12 }
 0x32a   :  { %v3219_v32 = vmax.f32 %v3217_v37, %v3218_v13  ;;  %v3245_v49 = vmax.f32 %v3243_v38, %v3244_v14  ;;  %v3103_v15 = vcombine.high %v6891_v61, %v6891_v61  ;;  %v3158_v44 = vrot.slane %v6891_v61, %v6629_v0 }
 0x32b   :  { %v3233_v52 = vmax.f32 %v3231_v22, %v3232_v7  ;;  %v3240_v28 = vmax.f32 %v3238_v55, %v3239_v58  ;;  %v3312_v5 = vsel %vm1417_vm4, %v3212_v30, %v3198_v1  ;;  %v3150_v43 = vrot.slane %v3102_v6, %v6629_v0 }
 0x32c   :  { %v3246_v25 = vrot.slane %v3245_v49, 1  ;;  %v3313_v24 = vsel %vm1419_vm5, %v3226_v56, %v3312_v5  ;;  %v3315_v35 = vsel %vm1417_vm4, %v3219_v32, %v3205_v2  ;;  %v3159_v12 = vcombine.high %v3158_v44, %v3158_v44 }
 0x32d   :  { %v3314_v27 = vsel %vm1421_vm6, %v3240_v28, %v3313_v24  ;;  %v3316_v36 = vsel %vm1419_vm5, %v3233_v52, %v3315_v35  ;;  %v3151_v8 = vcombine.high %v3150_v43, %v3150_v43  ;;  %v3166_v17 = vrot.slane %v3103_v15, %v6629_v0 }
 0x32e   :  { %v3247_v61 = vmax.f32 %v3245_v49, %v3246_v25  ;;  %3320 = vst [vmem:[#allocation3] sm:$0x1e] %v3314_v27  ;;  %v3248_v33 = vsel %vm1176_vm3, %v3150_v43, -inf  ;;  %v3262_v3 = vsel %vm1176_vm3, %v3158_v44, -inf  ;;  %v3043_v46 = vadd.f32 %v6869_v57, %v6877_v34 }
 0x32f   :  { %v3167_v11 = vcombine.high %v3166_v17, %v3166_v17  ;;  %v3249_v51 = vrot.slane %v3248_v33, 4  ;;  %v3255_v16 = vsel %vm1176_vm3, %v3151_v8, -inf  ;;  %v3269_v45 = vsel %vm1176_vm3, %v3159_v12, -inf }
 0x330   :  { %v3317_v29 = vsel %vm1421_vm6, %v3247_v61, %v3316_v36  ;;  %v3256_v42 = vrot.slane %v3255_v16, 4  ;;  %v3263_v39 = vrot.slane %v3262_v3, 4  ;;  %v3276_v48 = vsel %vm1176_vm3, %v3166_v17, -inf }
 0x331   :  { %3321 = vst [vmem:[#allocation3 + $0x8] sm:$0x1e] %v3317_v29  ;;  %v3250_v10 = vmax.f32 %v3248_v33, %v3249_v51  ;;  %v3277_v40 = vrot.slane %v3276_v48, 4  ;;  %v3283_v54 = vsel %vm1176_vm3, %v3167_v11, -inf  ;;  %v3270_v60 = vrot.slane %v3269_v45, 4 }
 0x332   :  { %v3257_v47 = vmax.f32 %v3255_v16, %v3256_v42  ;;  %v3284_v57 = vrot.slane %v3283_v54, 4  ;;  %v3055_v34 = vmax.f32 %v3043_v46, 0.0  ;;  %v3264_v23 = vmax.f32 %v3262_v3, %v3263_v39 }
 0x333   :  { %v3251_v4 = vrot.slane %v3250_v10, 2  ;;  %v3278_v26 = vmax.f32 %v3276_v48, %v3277_v40  ;;  %v3271_v50 = vmax.f32 %v3269_v45, %v3270_v60 }
 0x334   :  { %v3258_v21 = vrot.slane %v3257_v47, 2  ;;  %v3285_v22 = vmax.f32 %v3283_v54, %v3284_v57  ;;  %v3061_v62 = vmax.f32 %v3053_v53, %v3055_v34  ;;  %v3265_v1 = vrot.slane %v3264_v23, 2 }
 0x335   :  { %v3252_v20 = vmax.f32 %v3250_v10, %v3251_v4  ;;  %v3279_v38 = vrot.slane %v3278_v26, 2  ;;  %v3272_v56 = vrot.slane %v3271_v50, 2 }
 0x336   :  { %v3259_v37 = vmax.f32 %v3257_v47, %v3258_v21  ;;  %v3104_v59 = vcombine.low %v6881_v63, %v3061_v62  ;;  %v3286_v2 = vrot.slane %v3285_v22, 2  ;;  %v3266_v53 = vmax.f32 %v3264_v23, %v3265_v1  ;;  %v6103_v1 = vld [vmem:[#allocation10 + $0x244] ss:$8 sps:$4 sm:$0xff]  }
 0x337   :  { %v3253_v7 = vrot.slane %v3252_v20, 1  ;;  %v3280_v58 = vmax.f32 %v3278_v26, %v3279_v38  ;;  %v3273_v44 = vmax.f32 %v3271_v50, %v3272_v56  ;;  %v6097_v50 = vld [vmem:[#allocation10 + $0x264] ss:$8 sps:$4 sm:$0xff]   ;;  %v6107_v56 = vld [vmem:[#allocation10 + $0x220] ss:$8 sps:$4 sm:$0xff]  }
 0x338   :  { %v3260_v55 = vrot.slane %v3259_v37, 1  ;;  %v3111_v13 = vrot.slane %v3104_v59, %v6629_v0  ;;  %v3287_v32 = vmax.f32 %v3285_v22, %v3286_v2  ;;  %v3267_v25 = vrot.slane %v3266_v53, 1  ;;  %v6095_v59 = vld [vmem:[#allocation10 + $0x260] ss:$8 sps:$4 sm:$0xff]  }
 0x339   :  { %v3254_v14 = vmax.f32 %v3252_v20, %v3253_v7  ;;  %v3281_v52 = vrot.slane %v3280_v58, 1  ;;  %v3274_v27 = vrot.slane %v3273_v44, 1  ;;  %v6092_v20 = vld [vmem:[#allocation10 + $0x270] ss:$8 sps:$4 sm:$0xff]   ;;  %v6100_v7 = vld [vmem:[#allocation10 + $0x254] ss:$8 sps:$4 sm:$0xff]  }
 0x33a   :  { %v3261_v30 = vmax.f32 %v3259_v37, %v3260_v55  ;;  %v3174_v6 = vrot.slane %v3111_v13, %v6629_v0  ;;  %v3288_v24 = vrot.slane %v3287_v32, 1  ;;  %v3268_v61 = vmax.f32 %v3266_v53, %v3267_v25  ;;  %v6098_v55 = vld [vmem:[#allocation10 + $0x250] ss:$8 sps:$4 sm:$0xff]   ;;  %v6101_v2 = vld [vmem:[#allocation10 + $0x240] ss:$8 sps:$4 sm:$0xff]  }
 0x33b   :  { %3338 = vst [vmem:[#allocation3] sm:$0x80] %v3254_v14  ;;  %v3282_v36 = vmax.f32 %v3280_v58, %v3281_v52  ;;  %v3275_v11 = vmax.f32 %v3273_v44, %v3274_v27  ;;  %v6106_v13 = vld [vmem:[#allocation10 + $0x234] ss:$8 sps:$4 sm:$0xff]   ;;  %v6104_v14 = vld [vmem:[#allocation10 + $0x230] ss:$8 sps:$4 sm:$0xff]  }
 0x33c   :  { %3339 = vst [vmem:[#allocation3 + $0x8] sm:$0x80] %v3261_v30  ;;  %v3175_v49 = vcombine.high %v3174_v6, %v3174_v6  ;;  %v3290_v15 = vsel %vm1176_vm3, %v3174_v6, -inf  ;;  %v3289_v33 = vmax.f32 %v3287_v32, %v3288_v24  ;;  %v6109_v30 = vld [vmem:[#allocation10 + $0x224] ss:$8 sps:$4 sm:$0xff]  }
 0x33d   :  { %v3291_v63 = vrot.slane %v3290_v15, 4  ;;  %v3330_v51 = vsel %vm1467_vm10, %v3282_v36, %v3268_v61  ;;  %v6112_v58 = vld [vmem:[#allocation10 + $0x214] ss:$8 sps:$4 sm:$0xff]   ;;  %v6110_v6 = vld [vmem:[#allocation10 + $0x210] ss:$8 sps:$4 sm:$0xff]  }
 0x33e   :  { %v3297_v28 = vsel %vm1176_vm3, %v3175_v49, -inf  ;;  %v3332_v29 = vsel %vm1467_vm10, %v3289_v33, %v3275_v11  ;;  %v6115_v53 = vld [vmem:[#allocation10 + $0x204] ss:$8 sps:$4 sm:$0xff]   ;;  %v6113_v32 = vld [vmem:[#allocation10 + $0x200] ss:$8 sps:$4 sm:$0xff]   ;;  %v6140_v33 = vld [vmem:[%s7183_s7 + $0x78] sm:$0xff]  }
 0x33f   :  { %v3292_v5 = vmax.f32 %v3290_v15, %v3291_v63  ;;  %v3298_v43 = vrot.slane %v3297_v28, 4  ;;  %v6118_v49 = vld [vmem:[#allocation10 + $0x2f4] ss:$8 sps:$4 sm:$0xff]   ;;  %v6116_v15 = vld [vmem:[#allocation10 + $0x2f0] ss:$8 sps:$4 sm:$0xff]   ;;  %5500 = vmatprep.subr.bf16.mxu1 %v6140_v33 }
 0x340   :  { %v6121_v63 = vld [vmem:[#allocation10 + $0x2e4] ss:$8 sps:$4 sm:$0xff]   ;;  %v6119_v44 = vld [vmem:[#allocation10 + $0x2e0] ss:$8 sps:$4 sm:$0xff]   ;;  %v6124_v52 = vld [vmem:[#allocation10 + $0x2d4] ss:$8 sps:$4 sm:$0xff]  }
 0x341   :  { %v3293_v35 = vrot.slane %v3292_v5, 2  ;;  %v3299_v12 = vmax.f32 %v3297_v28, %v3298_v43  ;;  %v6122_v28 = vld [vmem:[#allocation10 + $0x2d0] ss:$8 sps:$4 sm:$0xff]   ;;  %v6125_v43 = vld [vmem:[#allocation10 + $0x2c0] ss:$8 sps:$4 sm:$0xff]  }
 0x342   :  { %v3342_v10 = vld [vmem:[#allocation3] sm:$0xff] }
 0x343   :  { %v3294_v8 = vmax.f32 %v3292_v5, %v3293_v35  ;;  %v3300_v17 = vrot.slane %v3299_v12, 2  ;;  %v3343_v47 = vld [vmem:[#allocation3 + $0x8] sm:$0xff]  ;;  %v6127_v5 = vld [vmem:[#allocation10 + $0x2c4] ss:$8 sps:$4 sm:$0xff]   ;;  %v6143_v11 = vld [vmem:[%s7183_s7 + $0x70] sm:$0xff]  }
 0x344   :  { %v6130_v25 = vld [vmem:[#allocation10 + $0x2b4] ss:$8 sps:$4 sm:$0xff]   ;;  %v6128_v24 = vld [vmem:[#allocation10 + $0x2b0] ss:$8 sps:$4 sm:$0xff]   ;;  %v6133_v35 = vld [vmem:[#allocation10 + $0x2a4] ss:$8 sps:$4 sm:$0xff]  }
 0x345   :  { %v3295_v3 = vrot.slane %v3294_v8, 1  ;;  %v3301_v46 = vmax.f32 %v3299_v12, %v3300_v17  ;;  %v6131_v12 = vld [vmem:[#allocation10 + $0x2a0] ss:$8 sps:$4 sm:$0xff]   ;;  %v6136_v27 = vld [vmem:[#allocation10 + $0x294] ss:$8 sps:$4 sm:$0xff]  }
 0x346   :  { %v6134_v36 = vld [vmem:[#allocation10 + $0x290] ss:$8 sps:$4 sm:$0xff]   ;;  %v6137_v17 = vld [vmem:[#allocation10 + $0x280] ss:$8 sps:$4 sm:$0xff]  }
 0x347   :  { %v3296_v16 = vmax.f32 %v3294_v8, %v3295_v3  ;;  %v3302_v45 = vrot.slane %v3301_v46, 1  ;;  %v6139_v8 = vld [vmem:[#allocation10 + $0x284] ss:$8 sps:$4 sm:$0xff]   ;;  %v6141_v3 = vld [vmem:[%s7183_s7 + $0x38] sm:$0xff]  }
 0x349   :  { %v3303_v42 = vmax.f32 %v3301_v46, %v3302_v45  ;;  %v3331_v39 = vsel %vm1417_vm4, %v3296_v16, %v3330_v51  ;;  %v6142_v46 = vld [vmem:[%s7183_s7 + $0x178] sm:$0xff]   ;;  %v6145_v16 = vld [vmem:[%s7183_s7 + $0x30] sm:$0xff]  }
 0x34a   :  { %3340 = vst [vmem:[#allocation3 + $0x10] sm:$0x7] %v3331_v39  ;;  %v6144_v51 = vld [vmem:[%s7183_s7 + $0x138] sm:$0xff]   ;;  %v6146_v45 = vld [vmem:[%s7183_s7 + $0x170] sm:$0xff]   ;;  %v6149_v39 = vld [vmem:[%s7183_s7 + $0x28] sm:$0xff]  }
 0x34b   :  { %v3333_v48 = vsel %vm1417_vm4, %v3303_v42, %v3332_v29  ;;  %v6147_v29 = vld [vmem:[%s7183_s7 + $0x68] sm:$0xff]   ;;  %v6148_v42 = vld [vmem:[%s7183_s7 + $0x130] sm:$0xff]  }
 0x34c   :  { %3341 = vst [vmem:[#allocation3 + $0x18] sm:$0x7] %v3333_v48  ;;  %v6150_v48 = vld [vmem:[%s7183_s7 + $0x168] sm:$0xff]  }
 0x351   :  { %v3344_v40 = vld [vmem:[#allocation3 + $0x10] sm:$0x3f] }
 0x352   :  { %v6929_v54 = vpack.c.bf16 %v3344_v40, %v3342_v10  ;;  %v6151_v10 = vld [vmem:[%s7183_s7 + $0x60] sm:$0xff]   ;;  %v6152_v40 = vld [vmem:[%s7183_s7 + $0x128] sm:$0xff]  }
 0x353   :  { %v3345_v60 = vld [vmem:[#allocation3 + $0x18] sm:$0x3f] }
 0x354   :  { %v3347_v57 = vpack.c.bf16 %v3345_v60, %v3343_v47  ;;  %v3416_v34 = vshll.u32 %v6929_v54, 16  ;;  %v3414_v22 = vshrl.u32 %v6929_v54, 16  ;;  %v3870_v61 = vrot.slane %v6929_v54, 1  ;;  %v6154_v47 = vld [vmem:[%s7183_s7 + $0x160] sm:$0xff]   ;;  %v6155_v60 = vld [vmem:[%s7183_s7 + $0x58] sm:$0xff]  }
 0x356   :  { %3824 = vmatprep.mubr.bf16.mxu1 %v3347_v57  ;;  %v3423_v4 = vshll.u32 %v3347_v57, 16  ;;  %v3418_v26 = vrot.slane %v3416_v34, 1  ;;  %v3421_v21 = vshrl.u32 %v3347_v57, 16  ;;  %v3871_v38 = vrot.slane %v3347_v57, 1  ;;  %v6156_v57 = vld [vmem:[%s7183_s7 + $0x120] sm:$0xff]   ;;  %v6157_v34 = vld [vmem:[%s7183_s7 + $0x18] sm:$0xff]  }
 0x357   :  { %3825 = vmatmul.mubr.bf16.vlgmr.msra.gmra.mxu1 %v6929_v54  ;;  %v6153_v54 = vld [vmem:[%s7183_s7 + $0x20] sm:$0xff]  }
 0x358   :  { %v3425_v23 = vrot.slane %v3423_v4, 1  ;;  %v3419_v37 = vor.u32 %v3418_v26, %v3414_v22  ;;  %5501 = vmatpush3.bf16.msra.mxu1 %v6141_v3  ;;  %v6158_v4 = vld [vmem:[%s7183_s7 + $0x158] sm:$0xff]   ;;  %v6159_v26 = vld [vmem:[%s7183_s7 + $0x50] sm:$0xff]  }
 0x359   :  { %5502 = vmatprep.subr.bf16.mxu1 %v6143_v11  ;;  %v6162_v22 = vld [vmem:[%s7183_s7 + $0x150] sm:$0xff]  }
 0x35a   :  { %v3426_v62 = vor.u32 %v3425_v23, %v3421_v21  ;;  %v6160_v21 = vld [vmem:[%s7183_s7 + $0x118] sm:$0xff]   ;;  %v6161_v23 = vld [vmem:[%s7183_s7 + $0x10] sm:$0xff]  }
 0x35c   :  { %3621 = vmatprep.mubr.bf16.mxu0 %v3426_v62  ;;  %5503 = vmatpush3.bf16.msra.mxu1 %v6145_v16  ;;  %v6163_v62 = vld [vmem:[%s7183_s7 + $0x48] sm:$0xff]  }
 0x35d   :  { %3622 = vmatmul.mubr.bf16.vlgmr.msra.gmra.mxu0 %v3419_v37  ;;  %5504 = vmatprep.subr.bf16.mxu1 %v6147_v29  ;;  %v6165_v37 = vld [vmem:[%s7183_s7 + $0x8] sm:$0xff]  }
 0x35e   :  { %4035 = vmatpush1.bf16.msra.mxu0 %v6092_v20  ;;  %4066 = vmatprep.mubr.bf16.mxu0 %v3871_v38  ;;  %v6164_v20 = vld [vmem:[%s7183_s7 + $0x110] sm:$0xff]   ;;  %v6167_v38 = vld [vmem:[%s7183_s7 + $0x40] sm:$0xff]  }
 0x35f   :  { %4036 = vmatprep.subr.bf16.mxu0 %v6097_v50  ;;  %v6166_v50 = vld [vmem:[%s7183_s7 + $0x148] sm:$0xff]  }
 0x360   :  { %5505 = vmatpush3.bf16.msra.mxu1 %v6149_v39 }
 0x361   :  { %5506 = vmatprep.subr.bf16.mxu1 %v6151_v10  ;;  %v6202_v10 = vld [vmem:[%s7183_s7 + $0x1c8] sm:$0xff]  }
 0x362   :  { %4037 = vmatpush1.bf16.msra.mxu0 %v6095_v59  ;;  %v6168_v59 = vld [vmem:[%s7183_s7 + $0x108] sm:$0xff]  }
 0x363   :  { %4038 = vmatprep.subr.bf16.mxu0 %v6100_v7  ;;  %v6169_v7 = vld [vmem:[%s7183_s7] sm:$0xff]  }
 0x364   :  { %5507 = vmatpush3.bf16.msra.mxu1 %v6153_v54 }
 0x365   :  { %5508 = vmatprep.subr.bf16.mxu1 %v6155_v60 }
 0x366   :  { %4039 = vmatpush1.bf16.msra.mxu0 %v6098_v55  ;;  %v6170_v55 = vld [vmem:[%s7183_s7 + $0x140] sm:$0xff]  }
 0x367   :  { %4040 = vmatprep.subr.bf16.mxu0 %v6103_v1  ;;  %v6171_v1 = vld [vmem:[%s7183_s7 + $0xf8] sm:$0xff]  }
 0x368   :  { %5509 = vmatpush3.bf16.msra.mxu1 %v6157_v34 }
 0x369   :  { %5510 = vmatprep.subr.bf16.mxu1 %v6159_v26 }
 0x36a   :  { %4041 = vmatpush1.bf16.msra.mxu0 %v6101_v2  ;;  %v6172_v2 = vld [vmem:[%s7183_s7 + $0x100] sm:$0xff]  }
 0x36b   :  { %4042 = vmatprep.subr.bf16.mxu0 %v6106_v13 }
 0x36c   :  { %5511 = vmatpush3.bf16.msra.mxu1 %v6161_v23 }
 0x36d   :  { %5512 = vmatprep.subr.bf16.mxu1 %v6163_v62 }
 0x36e   :  { %4043 = vmatpush1.bf16.msra.mxu0 %v6104_v14 }
 0x36f   :  { %4044 = vmatprep.subr.bf16.mxu0 %v6109_v30 }
 0x370   :  { %5513 = vmatpush3.bf16.msra.mxu1 %v6165_v37 }
 0x371   :  { %5514 = vmatprep.subr.bf16.mxu1 %v6167_v38 }
 0x372   :  { %4045 = vmatpush1.bf16.msra.mxu0 %v6107_v56 }
 0x373   :  { %4046 = vmatprep.subr.bf16.mxu0 %v6112_v58 }
 0x374   :  { %5515 = vmatpush3.bf16.msra.mxu1 %v6169_v7 }
 0x375   :  { %5522 = vmatprep.subr.bf16.mxu1 %v6171_v1 }
 0x376   :  { %4047 = vmatpush1.bf16.msra.mxu0 %v6110_v6  ;;  %v4081_v6 = vld [vmem:[%s7182_s6] sm:$0x3] }
 0x377   :  { %4048 = vmatprep.subr.bf16.mxu0 %v6115_v53 }
 0x37a   :  { %4049 = vmatpush1.bf16.msra.mxu0 %v6113_v32 }
 0x37b   :  { %4050 = vmatprep.subr.bf16.mxu0 %v6118_v49  ;;  %v4086_v49 = vrot.slane %v4081_v6, %v6528_v31 }
 0x37e   :  { %4051 = vmatpush2.bf16.msra.mxu0 %v6116_v15  ;;  %v6335_v15 = vmov 1966171168  }
 0x37f   :  { %4052 = vmatprep.subr.bf16.mxu0 %v6121_v63  ;;  %v4105_v63 = vunpack.c.l.s4 %v6335_v15  ;;  %v6176_v15 = vld [vmem:[%s7183_s7 + $0xb0] sm:$0xff]  }
 0x382   :  { %4053 = vmatpush2.bf16.msra.mxu0 %v6119_v44 }
 0x383   :  { %4054 = vmatprep.subr.bf16.mxu0 %v6124_v52 }
 0x386   :  { %4055 = vmatpush2.bf16.msra.mxu0 %v6122_v28 }
 0x387   :  { %4056 = vmatprep.subr.bf16.mxu0 %v6127_v5 }
 0x38a   :  { %4057 = vmatpush2.bf16.msra.mxu0 %v6125_v43  ;;  %v4090_v43 = vrot.slane %v4081_v6, %v6540_v41  ;;  %v6175_v6 = vld [vmem:[%s7183_s7 + $0xf0] sm:$0xff]  }
 0x38b   :  { %4058 = vmatprep.subr.bf16.mxu0 %v6130_v25 }
 0x38e   :  { %4059 = vmatpush2.bf16.msra.mxu0 %v6128_v24 }
 0x38f   :  { %4060 = vmatprep.subr.bf16.mxu0 %v6133_v35 }
 0x392   :  { %4061 = vmatpush2.bf16.msra.mxu0 %v6131_v12 }
 0x393   :  { %4062 = vmatprep.subr.bf16.mxu0 %v6136_v27  ;;  %v4106_v27 = vunpack.c.0.s8 %v4105_v63  ;;  %v6177_v63 = vld [vmem:[%s7183_s7 + $0xe8] sm:$0xff]  }
 0x395   :  { %v4109_v11 = vsub.s32 %v4106_v27, %v6517_v18  ;;  %v6186_v27 = vld [vmem:[%s7183_s7 + $0x88] sm:$0xff]  }
 0x396   :  { %4063 = vmatpush2.bf16.msra.mxu0 %v6134_v36 }
 0x397   :  { %4064 = vmatprep.subr.bf16.mxu0 %v6139_v8 }
 0x39a   :  { %4065 = vmatpush2.bf16.msra.mxu0 %v6137_v17 }
 0x39b   :  { %5544 = vmatprep.subr.bf16.mxu0 %v6142_v46 }
 0x39d   :  { %4067 = vmatmul.mubr.bf16.vlgmr.msra.gmra.mxu0 %v3870_v61 }
 0x39e   :  { %5545 = vmatpush3.bf16.msra.mxu0 %v6144_v51 }
 0x39f   :  { %5546 = vmatprep.subr.bf16.mxu0 %v6146_v45 }
 0x3a2   :  { %5547 = vmatpush3.bf16.msra.mxu0 %v6148_v42 }
 0x3a3   :  { %5548 = vmatprep.subr.bf16.mxu0 %v6150_v48 }
 0x3a6   :  { %5549 = vmatpush3.bf16.msra.mxu0 %v6152_v40 }
 0x3a7   :  { %5550 = vmatprep.subr.bf16.mxu0 %v6154_v47 }
 0x3aa   :  { %5551 = vmatpush3.bf16.msra.mxu0 %v6156_v57 }
 0x3ab   :  { %5552 = vmatprep.subr.bf16.mxu0 %v6158_v4 }
 0x3ae   :  { %5553 = vmatpush3.bf16.msra.mxu0 %v6160_v21 }
 0x3af   :  { %5554 = vmatprep.subr.bf16.mxu0 %v6162_v22 }
 0x3b2   :  { %5555 = vmatpush3.bf16.msra.mxu0 %v6164_v20 }
 0x3b3   :  { %5556 = vmatprep.subr.bf16.mxu0 %v6166_v50 }
 0x3b6   :  { %5557 = vmatpush3.bf16.msra.mxu0 %v6168_v59 }
 0x3b7   :  { %5558 = vmatprep.subr.bf16.mxu0 %v6170_v55 }
 0x3ba   :  { %5559 = vmatpush3.bf16.msra.mxu0 %v6172_v2 }
 0x3bb   :  { %5597 = vmatprep.subr.bf16.mxu0 %v6333_v19 }
 0x417   :  { %v3826_v30 = vpop.f32.mrf.mxu1 }
 0x419   :  { %v3828_v58 = vpop.f32.mrf.mxu1 }
 0x41b   :  { %v3830_v44 = vpop.f32.mrf.mxu1 }
 0x41d   :  { %v3623_v13 = vpop.f32.mrf.mxu0  ;;  %v3832_v36 = vpop.f32.mrf.mxu1 }
 0x41e   :  { %v3827_v32 = vadd.f32 %v3826_v30, %v3623_v13 }
 0x41f   :  { %v3625_v14 = vpop.f32.mrf.mxu0 }
 0x420   :  { %v3829_v28 = vadd.f32 %v3828_v58, %v3625_v14  ;;  %v6173_v14 = vld [vmem:[%s7183_s7 + $0xb8] sm:$0xff]  }
 0x421   :  { %v3627_v56 = vpop.f32.mrf.mxu0 }
 0x422   :  { %v3831_v24 = vadd.f32 %v3830_v44, %v3627_v56  ;;  %v6178_v44 = vld [vmem:[%s7183_s7 + $0xa8] sm:$0xff]  }
 0x423   :  { %v3629_v53 = vpop.f32.mrf.mxu0 }
 0x424   :  { %v3833_v17 = vadd.f32 %v3832_v36, %v3629_v53  ;;  %v6187_v36 = vld [vmem:[%s7183_s7 + $0xc0] sm:$0xff]  }
 0x45d   :  { %v4068_v52 = vpop.f32.mrf.mxu0 }
 0x45e   :  { %v4077_v5 = vadd.f32 %v4068_v52, %v3827_v32  ;;  %v6179_v52 = vld [vmem:[%s7183_s7 + $0xe0] sm:$0xff]  }
 0x45f   :  { %v4070_v25 = vpop.f32.mrf.mxu0 }
 0x460   :  { %v4093_v35 = vadd.f32 %v4086_v49, %v4077_v5  ;;  %v4078_v12 = vadd.f32 %v4070_v25, %v3829_v28  ;;  %v6180_v28 = vld [vmem:[%s7183_s7 + $0xa0] sm:$0xff]   ;;  %v6181_v5 = vld [vmem:[%s7183_s7 + $0xd8] sm:$0xff]   ;;  %v6183_v25 = vld [vmem:[%s7183_s7 + $0xd0] sm:$0xff]  }
 0x461   :  { %v4072_v8 = vpop.f32.mrf.mxu0 }
 0x462   :  { %v4094_v61 = vadd.f32 %v4090_v43, %v4078_v12  ;;  %v4079_v33 = vadd.f32 %v4072_v8, %v3831_v24  ;;  %v4097_v31 = vmax.f32 %v4093_v35, 0.0  ;;  %v6184_v24 = vld [vmem:[%s7183_s7 + $0x90] sm:$0xff]   ;;  %v6185_v35 = vld [vmem:[%s7183_s7 + $0xc8] sm:$0xff]  }
 0x463   :  { %v4074_v3 = vpop.f32.mrf.mxu0 }
 0x464   :  { %v4098_v46 = vmax.f32 %v4094_v61, 0.0  ;;  %v4080_v51 = vadd.f32 %v4074_v3, %v3833_v17  ;;  %v4095_v16 = vadd.f32 %v4086_v49, %v4079_v33  ;;  %v6188_v17 = vld [vmem:[%s7183_s7 + $0x80] sm:$0xff]   ;;  %v6189_v61 = vld [vmem:[%s7183_s7 + $0x1f8] sm:$0xff]  }
 0x465   :  { %v6190_v3 = vld [vmem:[%s7183_s7 + $0x1b8] sm:$0xff]  }
 0x466   :  { %v4103_v45 = vcombine.low %v4097_v31, %v4098_v46  ;;  %v4143_v29 = vcombine.high %v4097_v31, %v4098_v46  ;;  %v4096_v41 = vadd.f32 %v4090_v43, %v4080_v51  ;;  %v4099_v40 = vmax.f32 %v4095_v16, 0.0  ;;  %v6182_v43 = vld [vmem:[%s7183_s7 + $0x98] sm:$0xff]   ;;  %v6194_v51 = vld [vmem:[%s7183_s7 + $0x1e8] sm:$0xff]  }
 0x467   :  { %v6195_v16 = vld [vmem:[%s7183_s7 + $0x1a8] sm:$0xff]  }
 0x468   :  { %v4110_v42 = vrot.slane %v4103_v45, %v4109_v11  ;;  %v4150_v39 = vrot.slane %v4143_v29, %v4109_v11  ;;  %v4100_v48 = vmax.f32 %v4096_v41, 0.0  ;;  %v6196_v45 = vld [vmem:[%s7183_s7 + $0x1e0] sm:$0xff]   ;;  %v6198_v41 = vld [vmem:[%s7183_s7 + $0x1d8] sm:$0xff]  }
 0x469   :  { %v6197_v29 = vld [vmem:[%s7183_s7 + $0x1a0] sm:$0xff]  }
 0x46a   :  { %v4117_v54 = vrot.slane %v4110_v42, %v4109_v11  ;;  %v4124_v47 = vcombine.high %v4110_v42, %v4110_v42  ;;  %v4157_v60 = vrot.slane %v4150_v39, %v4109_v11  ;;  %v4162_v57 = vcombine.high %v4150_v39, %v4150_v39  ;;  %v6199_v42 = vld [vmem:[%s7183_s7 + $0x198] sm:$0xff]   ;;  %v6200_v39 = vld [vmem:[%s7183_s7 + $0x1d0] sm:$0xff]  }
 0x46b   :  { %v4176_v34 = vcombine.low %v4099_v40, %v4100_v48  ;;  %v6201_v48 = vld [vmem:[%s7183_s7 + $0x190] sm:$0xff]   ;;  %v6203_v40 = vld [vmem:[%s7183_s7 + $0x188] sm:$0xff]  }
 0x46c   :  { %4123 = vst.msk [vmem:[#allocation4] ss:$2 sm:$0x3] %vm7042_vm11, %v4117_v54  ;;  %v4131_v18 = vrot.slane %v4124_v47, %v4109_v11  ;;  %v4135_v4 = vcombine.high %v4117_v54, %v4117_v54  ;;  %v4158_v26 = vcombine.high %v4157_v60, %v4157_v60  ;;  %v4169_v21 = vrot.slane %v4162_v57, %v4109_v11  ;;  %v6204_v54 = vld [vmem:[%s7183_s7 + $0x1c0] sm:$0xff]   ;;  %v6206_v57 = vld [vmem:[#allocation11 + $0x38] sm:$0xff]  }
 0x46d   :  { %v4183_v23 = vrot.slane %v4176_v34, %v4109_v11  ;;  %v6205_v47 = vld [vmem:[%s7183_s7 + $0x180] sm:$0xff]   ;;  %v6207_v34 = vld [vmem:[#allocation11 + $0x30] sm:$0xff]  }
 0x46e   :  { %4134 = vst.msk [vmem:[#allocation4 + $0x4] ss:$2 sm:$0x3] %vm7042_vm11, %v4131_v18  ;;  %4138 = vst.msk [vmem:[#allocation4 + $0x8] ss:$2 sm:$0x3] %vm7042_vm11, %v4135_v4  ;;  %v4139_v9 = vcombine.high %v4131_v18, %v4131_v18  ;;  %v4170_v22 = vcombine.high %v4169_v21, %v4169_v21 }
 0x46f   :  { %4161 = vst.msk [vmem:[#allocation4 + $0x1] ss:$2 sm:$0x3] %vm7042_vm11, %v4158_v26  ;;  %v4190_v62 = vrot.slane %v4183_v23, %v4109_v11  ;;  %v4194_v20 = vcombine.high %v4183_v23, %v4183_v23  ;;  %v6208_v18 = vld [vmem:[#allocation11 + $0x28] sm:$0xff]   ;;  %v6209_v4 = vld [vmem:[#allocation11 + $0x20] sm:$0xff]   ;;  %v6210_v26 = vld [vmem:[#allocation11 + $0x18] sm:$0xff]  }
 0x470   :  { %4142 = vst.msk [vmem:[#allocation4 + $0xc] ss:$2 sm:$0x3] %vm7042_vm11, %v4139_v9  ;;  %4173 = vst.msk [vmem:[#allocation4 + $0x5] ss:$2 sm:$0x3] %vm7042_vm11, %v4170_v22 }
 0x471   :  { %4193 = vst.msk [vmem:[#allocation4 + $0x9] ss:$2 sm:$0x3] %vm7042_vm11, %v4190_v62  ;;  %v4201_v37 = vrot.slane %v4194_v20, %v4109_v11  ;;  %v6193_v11 = vld [vmem:[%s7183_s7 + $0x1b0] sm:$0xff]   ;;  %v6212_v23 = vld [vmem:[#allocation11 + $0x8] sm:$0xff]   ;;  %v6213_v9 = vld [vmem:[#allocation11] sm:$0xff]  }
 0x472   :  { %v6211_v21 = vld [vmem:[#allocation11 + $0x10] sm:$0xff]  }
 0x473   :  { %4204 = vst.msk [vmem:[#allocation4 + $0xd] ss:$2 sm:$0x3] %vm7042_vm11, %v4201_v37 }
 0x477   :  { %v4205_v50 = vld [vmem:[#allocation4] sm:$0xff] }
 0x478   :  { %v4216_v38 = vrot.slane %v4205_v50, %v6629_v0  ;;  %v4209_v59 = vcombine.high %v4205_v50, %v4205_v50 }
 0x47a   :  { %v4224_v7 = vcombine.high %v4216_v38, %v4216_v38  ;;  %v4223_v55 = vrot.slane %v4209_v59, %v6629_v0  ;;  %v4206_v1 = vld [vmem:[#allocation4 + $0x8] sm:$0xff]  ;;  %v4251_v56 = vpack.c.bf16 %v4216_v38, %v4216_v38 }
 0x47b   :  { %v4233_v2 = vrot.slane %v4206_v1, %v6629_v0  ;;  %v4226_v12 = vcombine.high %v4206_v1, %v4206_v1 }
 0x47c   :  { %v4252_v13 = vpack.c.bf16 %v4224_v7, %v4224_v7  ;;  %v4225_v30 = vcombine.high %v4223_v55, %v4223_v55  ;;  %v4253_v31 = vpack.c.bf16 %v4223_v55, %v4223_v55 }
 0x47d   :  { %v4241_v58 = vcombine.high %v4233_v2, %v4233_v2  ;;  %v4255_v49 = vpack.c.bf16 %v4233_v2, %v4233_v2  ;;  %v4240_v8 = vrot.slane %v4226_v12, %v6629_v0  ;;  %v6192_v0 = vld [vmem:[%s7183_s7 + $0x1f0] sm:$0xff]  }
 0x47e   :  { %4810 = vmatprep.mubr.bf16.mxu1 %v4252_v13  ;;  %v4254_v53 = vpack.c.bf16 %v4225_v30, %v4225_v30  ;;  %v5426_v30 = vld [vmem:[%s7184_s8] ss:$0 sm:$0xff]  ;;  %s5058_s8 = sshll.u32 %s6337_s4, 4  ;;  %s5059_s8 = int_to_ptr.vmem [resolvable:$true] %s5058_s8 }
 0x47f   :  { %4811 = vmatmul.mubr.bf16.vlgmr.msra.gmra.mxu1 %v4251_v56  ;;  %v4256_v32 = vpack.c.bf16 %v4241_v58, %v4241_v58  ;;  %v4242_v33 = vcombine.high %v4240_v8, %v4240_v8  ;;  %v4257_v60 = vpack.c.bf16 %v4240_v8, %v4240_v8  ;;  %s6294_s28 = scalar_lea.vmem %s5059_s8, 32  ;;  %p6299_p7 = scmp.lt.s32.totalorder %s5059_s8, %s5059_s8 }
 0x480   :  { %5523 = vmatpush3.bf16.msra.mxu1 %v6173_v14  ;;  %4850 = vmatprep.mubr.bf16.mxu1 %v4254_v53  ;;  %p6295_p6 = scmp.ne.s32.totalorder %s5059_s8, %s6294_s28  ;;  %p6300_p8 = scmp.lt.s32.totalorder %s6294_s28, %s6294_s28 }
 0x481   :  { %4890 = vmatprep.mubr.bf16.mxu0 %v4256_v32  ;;  %5524 = vmatprep.subr.bf16.mxu1 %v6175_v6  ;;  %v4258_v46 = vpack.c.bf16 %v4242_v33, %v4242_v33 }
 0x482   :  { %4891 = vmatmul.mubr.bf16.vlgmr.msra.gmra.mxu0 %v4255_v49  ;;  %p6301_p9 = por %p6300_p8, %p6299_p7 }
 0x483   :  { %5598 = vmatpush3.bf16.msra.mxu0 %v6206_v57  ;;  %5613 = vmatprep.mubr.msk.bf16.mxu0 %vm6336_vm12, %v6333_v19 }
 0x484   :  { %5525 = vmatpush3.bf16.msra.mxu1 %v6176_v15  ;;  %5599 = vmatprep.subr.bf16.mxu0 %v6333_v19  ;;  %p6302_p10 = pnand %p6301_p9, %p6295_p6 }
 0x485   :  { %5526 = vmatprep.subr.bf16.mxu1 %v6177_v63 }
 0x487   :  { %5600 = vmatpush3.bf16.msra.mxu0 %v6207_v34 }
 0x488   :  { %5527 = vmatpush3.bf16.msra.mxu1 %v6178_v44  ;;  %5601 = vmatprep.subr.bf16.mxu0 %v6333_v19 }
 0x489   :  { %5528 = vmatprep.subr.bf16.mxu1 %v6179_v52 }
 0x48b   :  { %5602 = vmatpush3.bf16.msra.mxu0 %v6208_v18 }
 0x48c   :  { %5529 = vmatpush3.bf16.msra.mxu1 %v6180_v28  ;;  %5603 = vmatprep.subr.bf16.mxu0 %v6333_v19 }
 0x48d   :  { %5530 = vmatprep.subr.bf16.mxu1 %v6181_v5 }
 0x48f   :  { %5604 = vmatpush3.bf16.msra.mxu0 %v6209_v4 }
 0x490   :  { %5531 = vmatpush3.bf16.msra.mxu1 %v6182_v43  ;;  %5605 = vmatprep.subr.bf16.mxu0 %v6333_v19  ;;  %v5491_v43 = vld [vmem:[%s7186_s10] ss:$0 sm:$0xff] }
 0x491   :  { %5532 = vmatprep.subr.bf16.mxu1 %v6183_v25 }
 0x493   :  { %5606 = vmatpush3.bf16.msra.mxu0 %v6210_v26 }
 0x494   :  { %5533 = vmatpush3.bf16.msra.mxu1 %v6184_v24  ;;  %5607 = vmatprep.subr.bf16.mxu0 %v6333_v19 }
 0x495   :  { %5534 = vmatprep.subr.bf16.mxu1 %v6185_v35 }
 0x497   :  { %5608 = vmatpush3.bf16.msra.mxu0 %v6211_v21 }
 0x498   :  { %5535 = vmatpush3.bf16.msra.mxu1 %v6186_v27  ;;  %5609 = vmatprep.subr.bf16.mxu0 %v6333_v19 }
 0x499   :  { %5536 = vmatprep.subr.bf16.mxu1 %v6187_v36 }
 0x49b   :  { %5610 = vmatpush3.bf16.msra.mxu0 %v6212_v23 }
 0x49c   :  { %5537 = vmatpush3.bf16.msra.mxu1 %v6188_v17  ;;  %5611 = vmatprep.subr.bf16.mxu0 %v6333_v19 }
 0x49d   :  { %5566 = vmatprep.subr.bf16.mxu1 %v6189_v61 }
 0x49f   :  { %4851 = vmatmul.mubr.bf16.vlgmr.msra.gmra.mxu1 %v4253_v31  ;;  %5612 = vmatpush3.bf16.msra.mxu0 %v6213_v9 }
 0x4a0   :  { %5567 = vmatpush3.bf16.msra.mxu1 %v6190_v3  ;;  %4930 = vmatprep.mubr.bf16.mxu1 %v4258_v46 }
 0x4a1   :  { %5568 = vmatprep.subr.bf16.mxu1 %v6192_v0 }
 0x4a4   :  { %5569 = vmatpush3.bf16.msra.mxu1 %v6193_v11 }
 0x4a5   :  { %5570 = vmatprep.subr.bf16.mxu1 %v6194_v51 }
 0x4a8   :  { %5571 = vmatpush3.bf16.msra.mxu1 %v6195_v16 }
 0x4a9   :  { %5572 = vmatprep.subr.bf16.mxu1 %v6196_v45 }
 0x4ac   :  { %5573 = vmatpush3.bf16.msra.mxu1 %v6197_v29 }
 0x4ad   :  { %5574 = vmatprep.subr.bf16.mxu1 %v6198_v41 }
 0x4b0   :  { %5575 = vmatpush3.bf16.msra.mxu1 %v6199_v42 }
 0x4b1   :  { %5576 = vmatprep.subr.bf16.mxu1 %v6200_v39 }
 0x4b4   :  { %5577 = vmatpush3.bf16.msra.mxu1 %v6201_v48 }
 0x4b5   :  { %5578 = vmatprep.subr.bf16.mxu1 %v6202_v10 }
 0x4b8   :  { %5579 = vmatpush3.bf16.msra.mxu1 %v6203_v40 }
 0x4b9   :  { %5580 = vmatprep.subr.bf16.mxu1 %v6204_v54 }
 0x4bc   :  { %5581 = vmatpush3.bf16.msra.mxu1 %v6205_v47 }
 0x4bf   :  { %4931 = vmatmul.mubr.bf16.vlgmr.msra.gmra.mxu1 %v4257_v60 }
 0x53f   :  { %v5516_v22 = vpop.f32.mrf.mxu1 }
 0x541   :  { %v5517_v62 = vpop.f32.mrf.mxu1 }
 0x542   :  { %v5560_v20 = vpop.f32.mrf.mxu0  ;;  %v5518_v14 = vadd.f32 %v5517_v62, %v5516_v22 }
 0x543   :  { %v5519_v37 = vpop.f32.mrf.mxu1 }
 0x544   :  { %v5561_v50 = vpop.f32.mrf.mxu0  ;;  %v4813_v58 = vadd.f32 %v5518_v14, %v5426_v30 }
 0x545   :  { %v5520_v38 = vpop.f32.mrf.mxu1  ;;  %v5562_v53 = vadd.f32 %v5561_v50, %v5560_v20 }
 0x546   :  { %v5563_v59 = vpop.f32.mrf.mxu0 }
 0x548   :  { %v5564_v7 = vpop.f32.mrf.mxu0 }
 0x55f   :  { %v5538_v55 = vpop.f32.mrf.mxu1 }
 0x561   :  { %v5539_v1 = vpop.f32.mrf.mxu1 }
 0x562   :  { %v5540_v56 = vadd.f32 %v5539_v1, %v5538_v55 }
 0x563   :  { %v5541_v2 = vpop.f32.mrf.mxu1 }
 0x564   :  { %v4853_v19 = vadd.f32 %v5540_v56, %v4813_v58 }
 0x565   :  { %v5542_v13 = vpop.f32.mrf.mxu1 }
 0x566   :  { %v4893_v49 = vadd.f32 %v5562_v53, %v4853_v19 }
 0x57f   :  { %v5582_v6 = vpop.f32.mrf.mxu1 }
 0x581   :  { %v5583_v32 = vpop.f32.mrf.mxu1 }
 0x582   :  { %v5584_v15 = vadd.f32 %v5583_v32, %v5582_v6 }
 0x583   :  { %v5585_v63 = vpop.f32.mrf.mxu1 }
 0x584   :  { %v4933_v44 = vadd.f32 %v5584_v15, %v4893_v49 }
 0x585   :  { %v5586_v52 = vpop.f32.mrf.mxu1 }
 0x586   :  { %v4938_v28 = vmax.f32 %v4933_v44, 0.0 }
 0x588   :  { %v4939_v5 = vpack.c.bf16 %v4938_v28, %v4938_v28 }
 0x58a   :  { %5614 = vmatmul.mubr.bf16.vlgmr.msra.gmra.mxu0 %v4939_v5 }
 0x64a   :  { %v5045_v25 = vpop.f32.mrf.mxu0 }
 0x64b   :  { %v5046_v24 = vadd.f32 %v5491_v43, %v5045_v25 }
 0x64c   :  { %v5615_v35 = vpop.f32.mrf.mxu0 }
 0x64d   :  { %5051 = vst [vmem:[#allocation13] sm:$0x3] %v5046_v24 }
 0x64e   :  { %v5048_v12 = vpop.f32.mrf.mxu0 }
 0x64f   :  { %6305 = shalt.err (!%p6302_p10)
}
 0x650   :  { %5061 = dma.vmem_to_hbm [thread:$0]  %s5059_s8, 32, %s7187_s11, [#allocation7]   ;;  %v5616_v27 = vpop.f32.mrf.mxu0 }
 0x651   :  { %6320 = dma.done.wait [#allocation7], 32  }
 0x652   :  { %6321 = vsyncadd [#allocation7], 4294967264 }
 0x653   :  { %5065 = vsyncpa [#allocation6], 1 }
 0x654   :  { %5066 = vsyncpa [#allocation9], 1 }
 0x655   :  { %5067 = vsyncpa [#allocation12], 1 }
 0x656   :  { %5068 = vsyncpa [#allocation7], 1 }

</bundles_post_ra>
